<compile_context>
chip_gen: v7x
topology: tpu7x:2x2x1
jax: 0.10.0
libtpu: 0.0.40
codegen_flags: <defaults>
</compile_context>

<pallas_src>
import jax
import jax.numpy as jnp
from jax.experimental import pallas as pl
from jax.experimental.pallas import tpu as pltpu

EPS = 1e-5


def _stage1_kernel(x_ref, s1_ref, t1_ref, w1_ref, h1_ref, stat_ref):
    # x_ref : (nb, H, W, Cin)  activation tile (NHWC)
    # s1/t1 : (1, Cin)         folded BN1 scale / shift (f32)
    # w1    : (Cin, C1)        1x1 conv weight (bf16)
    # h1_ref: (nb, H, W, C1)   pre-BN2 activation (f32)
    # stat  : (1, 2, C1)       per-tile [sum, sumsq] of h1 for BN2
    nb, H, W, Cin = x_ref.shape
    C1 = w1_ref.shape[1]
    M = nb * H * W

    x = x_ref[...].reshape(M, Cin)
    a1 = jnp.maximum(x * s1_ref[...] + t1_ref[...], 0.0)          # BN1 + ReLU (f32)
    h1 = jnp.dot(a1.astype(jnp.bfloat16), w1_ref[...],
                 preferred_element_type=jnp.float32)              # (M, C1) on MXU

    h1_ref[...] = h1.reshape(nb, H, W, C1)

    # One-pass stats (sum, sum of squares) for BN2; reduced across tiles in the wrapper.
    stat_ref[0, 0:1, :] = jnp.sum(h1, axis=0, keepdims=True)
    stat_ref[0, 1:2, :] = jnp.sum(h1 * h1, axis=0, keepdims=True)


def _stage2_kernel(h1_ref, s2_ref, t2_ref, w2_ref, o_ref, pad_ref):
    # h1_ref : (nb, H, W, C1)       pre-BN2 activation tile (f32)
    # s2/t2  : (1, C1)              folded BN2 scale / shift (f32)
    # w2     : (9*C1, Cg)           3x3 conv weight, taps row-major (bf16)
    # o_ref  : (nb, H, W, Cg)       conv output (identity concat done in wrapper)
    # pad_ref: (nb, H+2, W+2, C1)   bf16 VMEM scratch holding the zero-padded activation
    nb, H, W, C1 = h1_ref.shape
    Cg = w2_ref.shape[1]
    M = nb * H * W

    h1 = h1_ref[...].reshape(M, C1)
    a2 = jnp.maximum(h1 * s2_ref[...] + t2_ref[...], 0.0)         # BN2 + ReLU (f32)

    # Zero the padded scratch every step (scratch is per-core; zeroing only at
    # program_id==0 would be wrong when the "parallel" axis is split across TCs).
    pad_ref[...] = jnp.zeros_like(pad_ref)
    pad_ref[:, 1:H + 1, 1:W + 1, :] = a2.reshape(nb, H, W, C1).astype(pad_ref.dtype)

    # im2col: one (M, 9*C1) x (9*C1, Cg) MXU matmul instead of 9 tiny K=C1 matmuls.
    patches = [
        pad_ref[:, ky:ky + H, kx:kx + W, :].reshape(M, C1)
        for ky in range(3) for kx in range(3)
    ]
    pm = jnp.concatenate(patches, axis=1)                          # (M, 9*C1) bf16
    out = jnp.dot(pm, w2_ref[...], preferred_element_type=jnp.float32)

    o_ref[...] = out.reshape(nb, H, W, Cg).astype(o_ref.dtype)


@jax.jit
def bottleneck_forward(x_nchw, params):
    """x_nchw: (N, Cin, H, W) f32.  Returns (N, growth + Cin, H, W) f32."""
    g1, b1, w1, g2, b2, w2_hwio = params   # (Cin,), (Cin,), (Cin,C1), (C1,), (C1,), (3,3,C1,Cg)
    N, Cin, H, W = x_nchw.shape
    C1 = w1.shape[1]
    Cg = w2_hwio.shape[3]
    nb = 1                                  # batch tile
    n_tiles = N // nb
    nhw = N * H * W

    x_nhwc = jnp.transpose(x_nchw, (0, 2, 3, 1)).astype(jnp.float32)

    # ---- BN1 batch stats (biased var) folded to scale/shift, precomputed in XLA ----
    m1 = jnp.mean(x_nhwc, axis=(0, 1, 2))
    v1 = jnp.mean(x_nhwc * x_nhwc, axis=(0, 1, 2)) - m1 * m1
    s1 = (g1 * jax.lax.rsqrt(v1 + EPS)).astype(jnp.float32)
    t1 = (b1 - m1 * s1).astype(jnp.float32)

    w1_bf = w1.astype(jnp.bfloat16)
    w2_flat = w2_hwio.reshape(9 * C1, Cg).astype(jnp.bfloat16)     # (ky,kx,c) row-major

    cparams = pltpu.CompilerParams(
        dimension_semantics=("parallel",),
        vmem_limit_bytes=48 * 1024 * 1024,
    )

    # ---- Stage 1: BN1 + ReLU + 1x1 conv, emitting BN2 partial stats ----
    cost1 = pl.CostEstimate(
        flops=2 * nhw * Cin * C1 + 4 * nhw * Cin,
        transcendentals=0,
        bytes_accessed=4 * nhw * (Cin + C1) + 2 * Cin * C1,
    )
    h1, stats = pl.pallas_call(
        _stage1_kernel,
        out_shape=(jax.ShapeDtypeStruct((N, H, W, C1), jnp.float32),
                   jax.ShapeDtypeStruct((n_tiles, 2, C1), jnp.float32)),
        grid_spec=pltpu.PrefetchScalarGridSpec(
            num_scalar_prefetch=0,
            grid=(n_tiles,),
            in_specs=[
                pl.BlockSpec((nb, H, W, Cin), lambda i: (i, 0, 0, 0)),
                pl.BlockSpec((1, Cin), lambda i: (0, 0)),
                pl.BlockSpec((1, Cin), lambda i: (0, 0)),
                pl.BlockSpec((Cin, C1), lambda i: (0, 0)),
            ],
            out_specs=[
                pl.BlockSpec((nb, H, W, C1), lambda i: (i, 0, 0, 0)),
                pl.BlockSpec((1, 2, C1), lambda i: (i, 0, 0)),
            ]),
        compiler_params=cparams,
        cost_estimate=cost1,
    )(x_nhwc, s1.reshape(1, Cin), t1.reshape(1, Cin), w1_bf)

    # ---- Reduce BN2 partial stats (global batch statistics, one-pass variance) ----
    cnt = jnp.float32(nhw)
    m2 = jnp.sum(stats[:, 0, :], axis=0) / cnt
    v2 = jnp.sum(stats[:, 1, :], axis=0) / cnt - m2 * m2
    s2 = (g2 * jax.lax.rsqrt(v2 + EPS)).astype(jnp.float32)
    t2 = (b2 - m2 * s2).astype(jnp.float32)

    # ---- Stage 2: BN2 + ReLU + 3x3 conv (im2col matmul) ----
    cost2 = pl.CostEstimate(
        flops=2 * nhw * 9 * C1 * Cg + 4 * nhw * C1,
        transcendentals=0,
        bytes_accessed=4 * nhw * (C1 + Cg) + 2 * 9 * C1 * Cg,
    )
    out_nhwc = pl.pallas_call(
        _stage2_kernel,
        out_shape=jax.ShapeDtypeStruct((N, H, W, Cg), jnp.float32),
        grid_spec=pltpu.PrefetchScalarGridSpec(
            num_scalar_prefetch=0,
            grid=(n_tiles,),
            in_specs=[
                pl.BlockSpec((nb, H, W, C1), lambda i: (i, 0, 0, 0)),
                pl.BlockSpec((1, C1), lambda i: (0, 0)),
                pl.BlockSpec((1, C1), lambda i: (0, 0)),
                pl.BlockSpec((9 * C1, Cg), lambda i: (0, 0)),
            ],
            out_specs=pl.BlockSpec((nb, H, W, Cg), lambda i: (i, 0, 0, 0)),
            scratch_shapes=[pltpu.VMEM((nb, H + 2, W + 2, C1), jnp.bfloat16)]),
        compiler_params=cparams,
        cost_estimate=cost2,
    )(h1, s2.reshape(1, C1), t2.reshape(1, C1), w2_flat)

    # Identity branch never touches the kernels: concat + layout change in XLA.
    out_full = jnp.concatenate([out_nhwc, x_nhwc], axis=-1)
    return jnp.transpose(out_full, (0, 3, 1, 2))


def _reference(x_nchw, g1, b1, w1, g2, b2, w2_hwio):
    """Pure-JAX f32 reference matching PyTorch training-mode BN + convs."""
    xh = jnp.transpose(x_nchw, (0, 2, 3, 1))
    m1 = xh.mean(axis=(0, 1, 2))
    v1 = xh.var(axis=(0, 1, 2))
    a1 = jnp.maximum((xh - m1) * jax.lax.rsqrt(v1 + EPS) * g1 + b1, 0.0)
    h1 = jnp.einsum("nhwc,cd->nhwd", a1, w1)
    m2 = h1.mean(axis=(0, 1, 2))
    v2 = h1.var(axis=(0, 1, 2))
    a2 = jnp.maximum((h1 - m2) * jax.lax.rsqrt(v2 + EPS) * g2 + b2, 0.0)
    o2 = jax.lax.conv_general_dilated(
        a2, w2_hwio, (1, 1), "SAME", dimension_numbers=("NHWC", "HWIO", "NHWC"))
    return jnp.transpose(jnp.concatenate([o2, xh], axis=-1), (0, 3, 1, 2))


if __name__ == "__main__":
    # Small shapes: batch=2, in_planes=16, growth_rate=8, spatial=16x16
    N, Cin, H, W = 2, 16, 16, 16
    growth = 8
    C1 = 4 * growth

    key = jax.random.PRNGKey(0)
    ks = jax.random.split(key, 7)
    x = jax.random.normal(ks[0], (N, Cin, H, W), jnp.float32)

    # Deterministic synthetic parameters (shapes per the module's __init__).
    g1 = 1.0 + 0.1 * jax.random.normal(ks[1], (Cin,), jnp.float32)
    b1 = 0.1 * jax.random.normal(ks[2], (Cin,), jnp.float32)
    w1 = 0.1 * jax.random.normal(ks[3], (Cin, C1), jnp.float32)            # 1x1 conv
    g2 = 1.0 + 0.1 * jax.random.normal(ks[4], (C1,), jnp.float32)
    b2 = 0.1 * jax.random.normal(ks[5], (C1,), jnp.float32)
    w2_hwio = 0.1 * jax.random.normal(ks[6], (3, 3, C1, growth), jnp.float32)  # 3x3 conv

    out = bottleneck_forward(x, (g1, b1, w1, g2, b2, w2_hwio))
    out = jax.block_until_ready(out)

    ref = _reference(x, g1, b1, w1, g2, b2, w2_hwio)
    assert out.shape == (N, growth + Cin, H, W), out.shape
    # bf16 matmul inputs (f32 accumulation): tolerance loosened vs pure-f32 reference.
    max_err = float(jnp.max(jnp.abs(out - ref)))
    assert max_err < 5e-2, f"max abs error {max_err}"

    print("KERNEL_OK")
</pallas_src>

<mosaic_0001>
module attributes {stable_mosaic.version = 11 : i64} {
  func.func @_stage1_kernel(%arg0: i32, %arg1: memref<1x16x16x16xf32, #tpu.memory_space<vmem>>, %arg2: memref<1x16xf32, #tpu.memory_space<vmem>>, %arg3: memref<1x16xf32, #tpu.memory_space<vmem>>, %arg4: memref<16x32xbf16, #tpu.memory_space<vmem>>, %arg5: memref<1x16x16x32xf32, #tpu.memory_space<vmem>>, %arg6: memref<1x2x32xf32, #tpu.memory_space<vmem>>) attributes {dimension_semantics = [#tpu.dimension_semantics<parallel>], iteration_bounds = array<i64: 2>, scalar_prefetch = 0 : i64, scratch_operands = 0 : i64, tpu.core_type = #tpu.core_type<tc>, window_params = [{transform_indices = @transform_0, window_bounds = array<i64: 1, 16, 16, 16>}, {pipeline_mode = #tpu.pipeline_mode<synchronous>, transform_indices = @transform_1, window_bounds = array<i64: 1, 16>}, {pipeline_mode = #tpu.pipeline_mode<synchronous>, transform_indices = @transform_2, window_bounds = array<i64: 1, 16>}, {pipeline_mode = #tpu.pipeline_mode<synchronous>, transform_indices = @transform_3, window_bounds = array<i64: 16, 32>}, {transform_indices = @transform_4, window_bounds = array<i64: 1, 16, 16, 32>}, {transform_indices = @transform_5, window_bounds = array<i64: 1, 2, 32>}]} {
    %c0 = arith.constant 0 : index
    %c0_0 = arith.constant 0 : index
    %c0_1 = arith.constant 0 : index
    %c0_2 = arith.constant 0 : index
    %0 = vector.load %arg1[%c0, %c0_0, %c0_1, %c0_2] : memref<1x16x16x16xf32, #tpu.memory_space<vmem>>, vector<1x16x16x16xf32>
    %1 = vector.shape_cast %0 : vector<1x16x16x16xf32> to vector<256x16xf32>
    %c0_3 = arith.constant 0 : index
    %c0_4 = arith.constant 0 : index
    %2 = vector.load %arg2[%c0_3, %c0_4] : memref<1x16xf32, #tpu.memory_space<vmem>>, vector<1x16xf32>
    %3 = vector.broadcast %2 : vector<1x16xf32> to vector<256x16xf32>
    %4 = arith.mulf %1, %3 : vector<256x16xf32>
    %c0_5 = arith.constant 0 : index
    %c0_6 = arith.constant 0 : index
    %5 = vector.load %arg3[%c0_5, %c0_6] : memref<1x16xf32, #tpu.memory_space<vmem>>, vector<1x16xf32>
    %6 = vector.broadcast %5 : vector<1x16xf32> to vector<256x16xf32>
    %7 = arith.addf %4, %6 : vector<256x16xf32>
    %cst = arith.constant 0.000000e+00 : f32
    %8 = vector.broadcast %cst : f32 to vector<256x16xf32>
    %9 = arith.maximumf %7, %8 : vector<256x16xf32>
    %10 = arith.truncf %9 : vector<256x16xf32> to vector<256x16xbf16>
    %c0_7 = arith.constant 0 : index
    %c0_8 = arith.constant 0 : index
    %11 = vector.load %arg4[%c0_7, %c0_8] : memref<16x32xbf16, #tpu.memory_space<vmem>>, vector<16x32xbf16>
    %cst_9 = arith.constant dense<0.000000e+00> : vector<256x32xf32>
    %12 = tpu.matmul %10, %11, %cst_9 {dimension_numbers = #tpu.dot_dimension_numbers<[1], [0], [0], [1], [0, 0, 1, 1], [], []>} : vector<256x16xbf16>, vector<16x32xbf16>, vector<256x32xf32> -> vector<256x32xf32>
    %13 = vector.shape_cast %12 : vector<256x32xf32> to vector<1x16x16x32xf32>
    %c0_10 = arith.constant 0 : index
    %c0_11 = arith.constant 0 : index
    %c0_12 = arith.constant 0 : index
    %c0_13 = arith.constant 0 : index
    %14 = vector.load %arg5[%c0_10, %c0_11, %c0_12, %c0_13] : memref<1x16x16x32xf32, #tpu.memory_space<vmem>>, vector<1x16x16x32xf32>
    tpu.vector_store %arg5[%c0_10, %c0_11, %c0_12, %c0_13], %13 {strides = array<i32>} : memref<1x16x16x32xf32, #tpu.memory_space<vmem>>, vector<1x16x16x32xf32>,
    %cst_14 = arith.constant dense<0.000000e+00> : vector<32xf32>
    %15 = vector.multi_reduction <add>, %12, %cst_14 [0] : vector<256x32xf32> to vector<32xf32>
    %16 = vector.shape_cast %15 : vector<32xf32> to vector<1x32xf32>
    %c0_15 = arith.constant 0 : index
    %c0_16 = arith.constant 0 : index
    %c0_17 = arith.constant 0 : index
    %17 = vector.load %arg6[%c0_15, %c0_16, %c0_17] : memref<1x2x32xf32, #tpu.memory_space<vmem>>, vector<1x1x32xf32>
    %18 = vector.shape_cast %17 : vector<1x1x32xf32> to vector<1x32xf32>
    %19 = vector.shape_cast %16 : vector<1x32xf32> to vector<1x1x32xf32>
    tpu.vector_store %arg6[%c0_15, %c0_16, %c0_17], %19 {strides = array<i32>} : memref<1x2x32xf32, #tpu.memory_space<vmem>>, vector<1x1x32xf32>,
    %20 = arith.mulf %12, %12 : vector<256x32xf32>
    %cst_18 = arith.constant dense<0.000000e+00> : vector<32xf32>
    %21 = vector.multi_reduction <add>, %20, %cst_18 [0] : vector<256x32xf32> to vector<32xf32>
    %22 = vector.shape_cast %21 : vector<32xf32> to vector<1x32xf32>
    %c0_19 = arith.constant 0 : index
    %c1 = arith.constant 1 : index
    %c0_20 = arith.constant 0 : index
    %23 = vector.load %arg6[%c0_19, %c1, %c0_20] : memref<1x2x32xf32, #tpu.memory_space<vmem>>, vector<1x1x32xf32>
    %24 = vector.shape_cast %23 : vector<1x1x32xf32> to vector<1x32xf32>
    %25 = vector.shape_cast %22 : vector<1x32xf32> to vector<1x1x32xf32>
    tpu.vector_store %arg6[%c0_19, %c1, %c0_20], %25 {strides = array<i32>} : memref<1x2x32xf32, #tpu.memory_space<vmem>>, vector<1x1x32xf32>,
    return
  }
  func.func @transform_0(%arg0: i32) -> (i32, i32, i32, i32) {
    %c0_i32 = arith.constant 0 : i32
    %c0_i32_0 = arith.constant 0 : i32
    %c0_i32_1 = arith.constant 0 : i32
    %c0_i32_2 = arith.constant 0 : i32
    return %arg0, %c0_i32, %c0_i32_0, %c0_i32_1 : i32, i32, i32, i32
  }
  func.func @transform_1(%arg0: i32) -> (i32, i32) {
    %c0_i32 = arith.constant 0 : i32
    %c0_i32_0 = arith.constant 0 : i32
    %c0_i32_1 = arith.constant 0 : i32
    return %c0_i32, %c0_i32_0 : i32, i32
  }
  func.func @transform_2(%arg0: i32) -> (i32, i32) {
    %c0_i32 = arith.constant 0 : i32
    %c0_i32_0 = arith.constant 0 : i32
    %c0_i32_1 = arith.constant 0 : i32
    return %c0_i32, %c0_i32_0 : i32, i32
  }
  func.func @transform_3(%arg0: i32) -> (i32, i32) {
    %c0_i32 = arith.constant 0 : i32
    %c0_i32_0 = arith.constant 0 : i32
    %c0_i32_1 = arith.constant 0 : i32
    return %c0_i32, %c0_i32_0 : i32, i32
  }
  func.func @transform_4(%arg0: i32) -> (i32, i32, i32, i32) {
    %c0_i32 = arith.constant 0 : i32
    %c0_i32_0 = arith.constant 0 : i32
    %c0_i32_1 = arith.constant 0 : i32
    %c0_i32_2 = arith.constant 0 : i32
    return %arg0, %c0_i32, %c0_i32_0, %c0_i32_1 : i32, i32, i32, i32
  }
  func.func @transform_5(%arg0: i32) -> (i32, i32, i32) {
    %c0_i32 = arith.constant 0 : i32
    %c0_i32_0 = arith.constant 0 : i32
    %c0_i32_1 = arith.constant 0 : i32
    return %arg0, %c0_i32, %c0_i32_0 : i32, i32, i32
  }
}

module attributes {stable_mosaic.version = 11 : i64} {
  func.func @_stage2_kernel(%arg0: i32, %arg1: memref<1x16x16x32xf32, #tpu.memory_space<vmem>>, %arg2: memref<1x32xf32, #tpu.memory_space<vmem>>, %arg3: memref<1x32xf32, #tpu.memory_space<vmem>>, %arg4: memref<288x8xbf16, #tpu.memory_space<vmem>>, %arg5: memref<1x16x16x8xf32, #tpu.memory_space<vmem>>, %arg6: memref<1x18x18x32xbf16, #tpu.memory_space<vmem>>) attributes {dimension_semantics = [#tpu.dimension_semantics<parallel>], iteration_bounds = array<i64: 2>, scalar_prefetch = 0 : i64, scratch_operands = 1 : i64, tpu.core_type = #tpu.core_type<tc>, window_params = [{transform_indices = @transform_0, window_bounds = array<i64: 1, 16, 16, 32>}, {pipeline_mode = #tpu.pipeline_mode<synchronous>, transform_indices = @transform_1, window_bounds = array<i64: 1, 32>}, {pipeline_mode = #tpu.pipeline_mode<synchronous>, transform_indices = @transform_2, window_bounds = array<i64: 1, 32>}, {pipeline_mode = #tpu.pipeline_mode<synchronous>, transform_indices = @transform_3, window_bounds = array<i64: 288, 8>}, {transform_indices = @transform_4, window_bounds = array<i64: 1, 16, 16, 8>}]} {
    %c0 = arith.constant 0 : index
    %c0_0 = arith.constant 0 : index
    %c0_1 = arith.constant 0 : index
    %c0_2 = arith.constant 0 : index
    %0 = vector.load %arg1[%c0, %c0_0, %c0_1, %c0_2] : memref<1x16x16x32xf32, #tpu.memory_space<vmem>>, vector<1x16x16x32xf32>
    %1 = vector.shape_cast %0 : vector<1x16x16x32xf32> to vector<256x32xf32>
    %c0_3 = arith.constant 0 : index
    %c0_4 = arith.constant 0 : index
    %2 = vector.load %arg2[%c0_3, %c0_4] : memref<1x32xf32, #tpu.memory_space<vmem>>, vector<1x32xf32>
    %3 = vector.broadcast %2 : vector<1x32xf32> to vector<256x32xf32>
    %4 = arith.mulf %1, %3 : vector<256x32xf32>
    %c0_5 = arith.constant 0 : index
    %c0_6 = arith.constant 0 : index
    %5 = vector.load %arg3[%c0_5, %c0_6] : memref<1x32xf32, #tpu.memory_space<vmem>>, vector<1x32xf32>
    %6 = vector.broadcast %5 : vector<1x32xf32> to vector<256x32xf32>
    %7 = arith.addf %4, %6 : vector<256x32xf32>
    %cst = arith.constant 0.000000e+00 : f32
    %8 = vector.broadcast %cst : f32 to vector<256x32xf32>
    %9 = arith.maximumf %7, %8 : vector<256x32xf32>
    %cst_7 = arith.constant 0.000000e+00 : bf16
    %10 = vector.broadcast %cst_7 : bf16 to vector<1x18x18x32xbf16>
    %c0_8 = arith.constant 0 : index
    %c0_9 = arith.constant 0 : index
    %c0_10 = arith.constant 0 : index
    %c0_11 = arith.constant 0 : index
    %11 = vector.load %arg6[%c0_8, %c0_9, %c0_10, %c0_11] : memref<1x18x18x32xbf16, #tpu.memory_space<vmem>>, vector<1x18x18x32xbf16>
    tpu.vector_store %arg6[%c0_8, %c0_9, %c0_10, %c0_11], %10 {strides = array<i32>} : memref<1x18x18x32xbf16, #tpu.memory_space<vmem>>, vector<1x18x18x32xbf16>,
    %12 = vector.shape_cast %9 : vector<256x32xf32> to vector<1x16x16x32xf32>
    %13 = arith.truncf %12 : vector<1x16x16x32xf32> to vector<1x16x16x32xbf16>
    %c0_12 = arith.constant 0 : index
    %c1 = arith.constant 1 : index
    %c1_13 = arith.constant 1 : index
    %c0_14 = arith.constant 0 : index
    %14 = vector.load %arg6[%c0_12, %c1, %c1_13, %c0_14] : memref<1x18x18x32xbf16, #tpu.memory_space<vmem>>, vector<1x16x16x32xbf16>
    tpu.vector_store %arg6[%c0_12, %c1, %c1_13, %c0_14], %13 {strides = array<i32>} : memref<1x18x18x32xbf16, #tpu.memory_space<vmem>>, vector<1x16x16x32xbf16>,
    %c0_15 = arith.constant 0 : index
    %c0_16 = arith.constant 0 : index
    %c0_17 = arith.constant 0 : index
    %c0_18 = arith.constant 0 : index
    %15 = vector.load %arg6[%c0_15, %c0_16, %c0_17, %c0_18] : memref<1x18x18x32xbf16, #tpu.memory_space<vmem>>, vector<1x16x16x32xbf16>
    %16 = vector.shape_cast %15 : vector<1x16x16x32xbf16> to vector<256x32xbf16>
    %c0_19 = arith.constant 0 : index
    %c0_20 = arith.constant 0 : index
    %c1_21 = arith.constant 1 : index
    %c0_22 = arith.constant 0 : index
    %17 = vector.load %arg6[%c0_19, %c0_20, %c1_21, %c0_22] : memref<1x18x18x32xbf16, #tpu.memory_space<vmem>>, vector<1x16x16x32xbf16>
    %18 = vector.shape_cast %17 : vector<1x16x16x32xbf16> to vector<256x32xbf16>
    %c0_23 = arith.constant 0 : index
    %c0_24 = arith.constant 0 : index
    %c2 = arith.constant 2 : index
    %c0_25 = arith.constant 0 : index
    %19 = vector.load %arg6[%c0_23, %c0_24, %c2, %c0_25] : memref<1x18x18x32xbf16, #tpu.memory_space<vmem>>, vector<1x16x16x32xbf16>
    %20 = vector.shape_cast %19 : vector<1x16x16x32xbf16> to vector<256x32xbf16>
    %c0_26 = arith.constant 0 : index
    %c1_27 = arith.constant 1 : index
    %c0_28 = arith.constant 0 : index
    %c0_29 = arith.constant 0 : index
    %21 = vector.load %arg6[%c0_26, %c1_27, %c0_28, %c0_29] : memref<1x18x18x32xbf16, #tpu.memory_space<vmem>>, vector<1x16x16x32xbf16>
    %22 = vector.shape_cast %21 : vector<1x16x16x32xbf16> to vector<256x32xbf16>
    %c0_30 = arith.constant 0 : index
    %c1_31 = arith.constant 1 : index
    %c1_32 = arith.constant 1 : index
    %c0_33 = arith.constant 0 : index
    %23 = vector.load %arg6[%c0_30, %c1_31, %c1_32, %c0_33] : memref<1x18x18x32xbf16, #tpu.memory_space<vmem>>, vector<1x16x16x32xbf16>
    %24 = vector.shape_cast %23 : vector<1x16x16x32xbf16> to vector<256x32xbf16>
    %c0_34 = arith.constant 0 : index
    %c1_35 = arith.constant 1 : index
    %c2_36 = arith.constant 2 : index
    %c0_37 = arith.constant 0 : index
    %25 = vector.load %arg6[%c0_34, %c1_35, %c2_36, %c0_37] : memref<1x18x18x32xbf16, #tpu.memory_space<vmem>>, vector<1x16x16x32xbf16>
    %26 = vector.shape_cast %25 : vector<1x16x16x32xbf16> to vector<256x32xbf16>
    %c0_38 = arith.constant 0 : index
    %c2_39 = arith.constant 2 : index
    %c0_40 = arith.constant 0 : index
    %c0_41 = arith.constant 0 : index
    %27 = vector.load %arg6[%c0_38, %c2_39, %c0_40, %c0_41] : memref<1x18x18x32xbf16, #tpu.memory_space<vmem>>, vector<1x16x16x32xbf16>
    %28 = vector.shape_cast %27 : vector<1x16x16x32xbf16> to vector<256x32xbf16>
    %c0_42 = arith.constant 0 : index
    %c2_43 = arith.constant 2 : index
    %c1_44 = arith.constant 1 : index
    %c0_45 = arith.constant 0 : index
    %29 = vector.load %arg6[%c0_42, %c2_43, %c1_44, %c0_45] : memref<1x18x18x32xbf16, #tpu.memory_space<vmem>>, vector<1x16x16x32xbf16>
    %30 = vector.shape_cast %29 : vector<1x16x16x32xbf16> to vector<256x32xbf16>
    %c0_46 = arith.constant 0 : index
    %c2_47 = arith.constant 2 : index
    %c2_48 = arith.constant 2 : index
    %c0_49 = arith.constant 0 : index
    %31 = vector.load %arg6[%c0_46, %c2_47, %c2_48, %c0_49] : memref<1x18x18x32xbf16, #tpu.memory_space<vmem>>, vector<1x16x16x32xbf16>
    %32 = vector.shape_cast %31 : vector<1x16x16x32xbf16> to vector<256x32xbf16>
    %33 = tpu.concatenate %16, %18, %20, %22, %24, %26, %28, %30, %32 in 1 : vector<256x32xbf16>, vector<256x32xbf16>, vector<256x32xbf16>, vector<256x32xbf16>, vector<256x32xbf16>, vector<256x32xbf16>, vector<256x32xbf16>, vector<256x32xbf16>, vector<256x32xbf16> -> vector<256x288xbf16>
    %c0_50 = arith.constant 0 : index
    %c0_51 = arith.constant 0 : index
    %34 = vector.load %arg4[%c0_50, %c0_51] : memref<288x8xbf16, #tpu.memory_space<vmem>>, vector<288x8xbf16>
    %cst_52 = arith.constant dense<0.000000e+00> : vector<256x8xf32>
    %35 = tpu.matmul %33, %34, %cst_52 {dimension_numbers = #tpu.dot_dimension_numbers<[1], [0], [0], [1], [0, 0, 1, 1], [], []>} : vector<256x288xbf16>, vector<288x8xbf16>, vector<256x8xf32> -> vector<256x8xf32>
    %36 = vector.shape_cast %35 : vector<256x8xf32> to vector<1x16x16x8xf32>
    %c0_53 = arith.constant 0 : index
    %c0_54 = arith.constant 0 : index
    %c0_55 = arith.constant 0 : index
    %c0_56 = arith.constant 0 : index
    %37 = vector.load %arg5[%c0_53, %c0_54, %c0_55, %c0_56] : memref<1x16x16x8xf32, #tpu.memory_space<vmem>>, vector<1x16x16x8xf32>
    tpu.vector_store %arg5[%c0_53, %c0_54, %c0_55, %c0_56], %36 {strides = array<i32>} : memref<1x16x16x8xf32, #tpu.memory_space<vmem>>, vector<1x16x16x8xf32>,
    return
  }
  func.func @transform_0(%arg0: i32) -> (i32, i32, i32, i32) {
    %c0_i32 = arith.constant 0 : i32
    %c0_i32_0 = arith.constant 0 : i32
    %c0_i32_1 = arith.constant 0 : i32
    %c0_i32_2 = arith.constant 0 : i32
    return %arg0, %c0_i32, %c0_i32_0, %c0_i32_1 : i32, i32, i32, i32
  }
  func.func @transform_1(%arg0: i32) -> (i32, i32) {
    %c0_i32 = arith.constant 0 : i32
    %c0_i32_0 = arith.constant 0 : i32
    %c0_i32_1 = arith.constant 0 : i32
    return %c0_i32, %c0_i32_0 : i32, i32
  }
  func.func @transform_2(%arg0: i32) -> (i32, i32) {
    %c0_i32 = arith.constant 0 : i32
    %c0_i32_0 = arith.constant 0 : i32
    %c0_i32_1 = arith.constant 0 : i32
    return %c0_i32, %c0_i32_0 : i32, i32
  }
  func.func @transform_3(%arg0: i32) -> (i32, i32) {
    %c0_i32 = arith.constant 0 : i32
    %c0_i32_0 = arith.constant 0 : i32
    %c0_i32_1 = arith.constant 0 : i32
    return %c0_i32, %c0_i32_0 : i32, i32
  }
  func.func @transform_4(%arg0: i32) -> (i32, i32, i32, i32) {
    %c0_i32 = arith.constant 0 : i32
    %c0_i32_0 = arith.constant 0 : i32
    %c0_i32_1 = arith.constant 0 : i32
    %c0_i32_2 = arith.constant 0 : i32
    return %arg0, %c0_i32, %c0_i32_0, %c0_i32_1 : i32, i32, i32, i32
  }
}

</mosaic_0001>

<bundles_post_ra>
// kernel: bottleneck_forward.2
= control target key start
LH: loop header
LB: loop body
LE: loop exit
PB: predicated region body
PF: predicated region fallthrough
CT: control target
= control target key end

     0   :  { %s1038_s18 = smov 0   ;;  %s1398_s0 = inlined_call_operand.vmem [shape: f32[2,16,16,16], index: 0, kind: input, shape index: {}]   ;;  %s1399_s1 = inlined_call_operand.vmem [shape: f32[1,16], index: 1, kind: input, shape index: {}]   ;;  %s1400_s2 = inlined_call_operand.vmem [shape: f32[1,16], index: 2, kind: input, shape index: {}]   ;;  %s1401_s3 = inlined_call_operand.vmem [shape: bf16[16,32], index: 3, kind: input, shape index: {}]   ;;  %s1402_s4 = inlined_call_operand.vmem [shape: f32[2,16,16,32], index: 4, kind: output, shape index: {0}]   ;;  %s1403_s5 = inlined_call_operand.vmem [shape: f32[2,2,32], index: 5, kind: output, shape index: {1}]  }
   0x1 LB: > { %s905_s19 = sadd.s32 4294967295, %s1006_s18   ;;  %p909_p0 = scmp.ge.s32.totalorder %s1006_s18, 1  ;;  %s1006_s18 = sphi %s1038_s18, %s16_s18  }
   0x2   : > { %p190_p1 = scmp.lt.s32.totalorder %s1006_s18, 3 }
   0x4   : > { %p191_p2 = pnand %p909_p0, %p190_p1 }
   0x5   : > { %v999_v0 = vld [vmem:[%s1401_s3] sm:$0xff] (!%p191_p2)   ;;  %p222_p3 = scmp.lt.s32.totalorder (!%p191_p2), %s905_s19, 1  ;;  %vm403_vm0 = vcmask (!%p191_p2), 130048   ;;  %vm613_vm1 = vcmask (!%p191_p2), 261120   ;;  %vm715_vm2 = vcmask (!%p191_p2), 253952  }
   0x6   : > { %194 = sbr.rel (%p191_p2) target bundleno = 319 (0x13f), region = 36  ;;  %955 = vmatprep.subr.bf16.mxu0 (!%p191_p2), %v999_v0  ;;  %989 = vmatprep.subr.bf16.mxu1 (!%p191_p2), %v999_v0  ;;  %v1055_v1 = vld [vmem:[%s1399_s1] ss:$0 sm:$0xff] (!%p191_p2) }
   0x7   : > { %956 = vmatpush3.bf16.msra.mxu0 (!%p191_p2), %v999_v0  ;;  %990 = vmatpush3.bf16.msra.mxu1 (!%p191_p2), %v999_v0  ;;  %v1067_v2 = vld [vmem:[%s1400_s2] ss:$0 sm:$0xff] (!%p191_p2) }
   0xd   : > { %s1405_s19 = smov (!%p222_p3, %s905_s19), 1 }
   0xe   : > { %s936_s22 = sshll.u32 %s1405_s19, 8  ;;  %s914_s8 = sshll.u32 %s1405_s19, 1 }
   0xf   : > { %s1062_s27 = scalar_lea.vmem %s1398_s0, %s936_s22  ;;  %s1189_s7 = scalar_lea.vmem %s1402_s4, %s936_s22 }
  0x10   : > { %v237_v3 = vld [vmem:[%s1062_s27] sm:$0xff]  ;;  %v238_v4 = vld [vmem:[%s1062_s27 + $0x8] sm:$0xff]  ;;  %v239_v5 = vld [vmem:[%s1062_s27 + $0x10] sm:$0xff]  ;;  %s235_s11 = scalar_lea.vmem %s1403_s5, %s914_s8 }
  0x11   : > { %v276_v6 = vmul.f32 %v1055_v1, %v237_v3  ;;  %v277_v7 = vmul.f32 %v1055_v1, %v238_v4  ;;  %v240_v8 = vld [vmem:[%s1062_s27 + $0x18] sm:$0xff]  ;;  %v278_v9 = vmul.f32 %v1055_v1, %v239_v5  ;;  %v241_v10 = vld [vmem:[%s1062_s27 + $0x20] sm:$0xff]  ;;  %v242_v11 = vld [vmem:[%s1062_s27 + $0x28] sm:$0xff] }
  0x12   : > { %v279_v12 = vmul.f32 %v1055_v1, %v240_v8  ;;  %v280_v13 = vmul.f32 %v1055_v1, %v241_v10  ;;  %v281_v14 = vmul.f32 %v1055_v1, %v242_v11  ;;  %v243_v15 = vld [vmem:[%s1062_s27 + $0x30] sm:$0xff]  ;;  %v244_v16 = vld [vmem:[%s1062_s27 + $0x38] sm:$0xff]  ;;  %v245_v25 = vld [vmem:[%s1062_s27 + $0x40] sm:$0xff] }
  0x13   : > { %v315_v17 = vadd.f32 %v1067_v2, %v276_v6  ;;  %v316_v18 = vadd.f32 %v1067_v2, %v277_v7  ;;  %v317_v19 = vadd.f32 %v1067_v2, %v278_v9  ;;  %v282_v20 = vmul.f32 %v1055_v1, %v243_v15  ;;  %v246_v26 = vld [vmem:[%s1062_s27 + $0x48] sm:$0xff]  ;;  %v247_v31 = vld [vmem:[%s1062_s27 + $0x50] sm:$0xff]  ;;  %v248_v36 = vld [vmem:[%s1062_s27 + $0x58] sm:$0xff] }
  0x14   : > { %v318_v21 = vadd.f32 %v1067_v2, %v279_v12  ;;  %v319_v22 = vadd.f32 %v1067_v2, %v280_v13  ;;  %v320_v23 = vadd.f32 %v1067_v2, %v281_v14  ;;  %v283_v24 = vmul.f32 %v1055_v1, %v244_v16  ;;  %v249_v37 = vld [vmem:[%s1062_s27 + $0x60] sm:$0xff]  ;;  %v250_v42 = vld [vmem:[%s1062_s27 + $0x68] sm:$0xff]  ;;  %v251_v43 = vld [vmem:[%s1062_s27 + $0x70] sm:$0xff] }
  0x15   : > { %v347_v27 = vmax.f32 %v315_v17, 0.0  ;;  %v348_v28 = vmax.f32 %v316_v18, 0.0  ;;  %v349_v29 = vmax.f32 %v317_v19, 0.0  ;;  %v321_v30 = vadd.f32 %v1067_v2, %v282_v20  ;;  %v252_v52 = vld [vmem:[%s1062_s27 + $0x78] sm:$0xff]  ;;  %v253_v56 = vld [vmem:[%s1062_s27 + $0x80] sm:$0xff]  ;;  %v254_v61 = vld [vmem:[%s1062_s27 + $0x88] sm:$0xff] }
  0x16   : > { %v350_v32 = vmax.f32 %v318_v21, 0.0  ;;  %v351_v33 = vmax.f32 %v319_v22, 0.0  ;;  %v352_v34 = vmax.f32 %v320_v23, 0.0  ;;  %v322_v35 = vadd.f32 %v1067_v2, %v283_v24  ;;  %v255_v0 = vld [vmem:[%s1062_s27 + $0x90] sm:$0xff]  ;;  %v256_v3 = vld [vmem:[%s1062_s27 + $0x98] sm:$0xff]  ;;  %v257_v7 = vld [vmem:[%s1062_s27 + $0xa0] sm:$0xff] }
  0x17   : > { %v379_v38 = vpack.c.bf16 %v348_v28, %v347_v27  ;;  %v353_v39 = vmax.f32 %v321_v30, 0.0  ;;  %v284_v40 = vmul.f32 %v1055_v1, %v245_v25  ;;  %v285_v41 = vmul.f32 %v1055_v1, %v246_v26  ;;  %v258_v12 = vld [vmem:[%s1062_s27 + $0xa8] sm:$0xff]  ;;  %v259_v17 = vld [vmem:[%s1062_s27 + $0xb0] sm:$0xff]  ;;  %v260_v22 = vld [vmem:[%s1062_s27 + $0xb8] sm:$0xff] }
  0x18   : > { %v380_v44 = vpack.c.bf16 %v350_v32, %v349_v29  ;;  %v381_v45 = vpack.c.bf16 %v352_v34, %v351_v33  ;;  %v354_v46 = vmax.f32 %v322_v35, 0.0  ;;  %v286_v47 = vmul.f32 %v1055_v1, %v247_v31  ;;  %v261_v27 = vld [vmem:[%s1062_s27 + $0xc0] sm:$0xff]  ;;  %v262_v32 = vld [vmem:[%s1062_s27 + $0xc8] sm:$0xff] }
  0x19   : > { %957 = vmatprep.mubr.msk.bf16.mxu0 %vm403_vm0, %v379_v38  ;;  %v323_v48 = vadd.f32 %v1067_v2, %v284_v40  ;;  %v324_v49 = vadd.f32 %v1067_v2, %v285_v41  ;;  %v287_v50 = vmul.f32 %v1055_v1, %v248_v36  ;;  %v288_v51 = vmul.f32 %v1055_v1, %v249_v37  ;;  %v263_v37 = vld [vmem:[%s1062_s27 + $0xd0] sm:$0xff] }
  0x1a   : > { %958 = vmatmul.mubr.msk.bf16.vlgmr.msra.gmra.mrb[0].mxu0 %vm403_vm0, %v380_v44  ;;  %v325_v53 = vadd.f32 %v1067_v2, %v286_v47  ;;  %v289_v54 = vmul.f32 %v1055_v1, %v250_v42  ;;  %v290_v55 = vmul.f32 %v1055_v1, %v251_v43  ;;  %v291_v63 = vmul.f32 %v1055_v1, %v252_v52  ;;  %v264_v42 = vld [vmem:[%s1062_s27 + $0xd8] sm:$0xff]  ;;  %v265_v47 = vld [vmem:[%s1062_s27 + $0xe0] sm:$0xff] }
  0x1b   : > { %961 = vmatprep.mubr.msk.bf16.mxu0 %vm403_vm0, %v381_v45  ;;  %v355_v57 = vmax.f32 %v323_v48, 0.0  ;;  %v356_v58 = vmax.f32 %v324_v49, 0.0  ;;  %v326_v59 = vadd.f32 %v1067_v2, %v287_v50  ;;  %v327_v60 = vadd.f32 %v1067_v2, %v288_v51  ;;  %v266_v48 = vld [vmem:[%s1062_s27 + $0xe8] sm:$0xff] }
  0x1c   : > { %v328_v62 = vadd.f32 %v1067_v2, %v289_v54  ;;  %v382_v4 = vpack.c.bf16 %v354_v46, %v353_v39  ;;  %v357_v5 = vmax.f32 %v325_v53, 0.0  ;;  %v292_v6 = vmul.f32 %v1055_v1, %v253_v56 }
  0x1d   : > { %v383_v8 = vpack.c.bf16 %v356_v58, %v355_v57  ;;  %v358_v9 = vmax.f32 %v326_v59, 0.0  ;;  %v1125_v10 = vadd.f32 %v1067_v2, %v290_v55  ;;  %v293_v11 = vmul.f32 %v1055_v1, %v254_v61 }
  0x1e   : > { %v359_v13 = vmax.f32 %v327_v60, 0.0  ;;  %v331_v14 = vadd.f32 %v1067_v2, %v292_v6  ;;  %v294_v15 = vmul.f32 %v1055_v1, %v255_v0  ;;  %v295_v16 = vmul.f32 %v1055_v1, %v256_v3 }
  0x1f   : > { %v360_v18 = vmax.f32 %v328_v62, 0.0  ;;  %v330_v19 = vadd.f32 %v1067_v2, %v291_v63  ;;  %v332_v20 = vadd.f32 %v1067_v2, %v293_v11  ;;  %v296_v21 = vmul.f32 %v1055_v1, %v257_v7  ;;  %v267_v7 = vld [vmem:[%s1062_s27 + $0xf0] sm:$0xff] }
  0x20   : > { %v363_v23 = vmax.f32 %v331_v14, 0.0  ;;  %v333_v24 = vadd.f32 %v1067_v2, %v294_v15  ;;  %v334_v25 = vadd.f32 %v1067_v2, %v295_v16  ;;  %v297_v26 = vmul.f32 %v1055_v1, %v258_v12 }
  0x21   : > { %v384_v28 = vpack.c.bf16 %v358_v9, %v357_v5  ;;  %v364_v29 = vmax.f32 %v332_v20, 0.0  ;;  %v335_v30 = vadd.f32 %v1067_v2, %v296_v21  ;;  %v298_v31 = vmul.f32 %v1055_v1, %v259_v17 }
  0x22   : > { %962 = vmatmul.mubr.msk.bf16.gmra.mrb[4].mxu0 %vm403_vm0, %v382_v4  ;;  %v365_v33 = vmax.f32 %v333_v24, 0.0  ;;  %v366_v34 = vmax.f32 %v334_v25, 0.0  ;;  %v336_v35 = vadd.f32 %v1067_v2, %v297_v26  ;;  %v299_v36 = vmul.f32 %v1055_v1, %v260_v22 }
  0x23   : > { %965 = vmatprep.mubr.msk.bf16.mxu0 %vm403_vm0, %v383_v8  ;;  %v387_v38 = vpack.c.bf16 %v364_v29, %v363_v23  ;;  %v367_v39 = vmax.f32 %v335_v30, 0.0  ;;  %v337_v40 = vadd.f32 %v1067_v2, %v298_v31  ;;  %v300_v41 = vmul.f32 %v1055_v1, %v261_v27  ;;  %v268_v8 = vld [vmem:[%s1062_s27 + $0xf8] sm:$0xff] }
  0x24   : > { %v388_v43 = vpack.c.bf16 %v366_v34, %v365_v33  ;;  %v368_v44 = vmax.f32 %v336_v35, 0.0  ;;  %v338_v45 = vadd.f32 %v1067_v2, %v299_v36  ;;  %v301_v46 = vmul.f32 %v1055_v1, %v262_v32 }
  0x25   : > { %v385_v49 = vpack.c.bf16 %v360_v18, %v359_v13  ;;  %973 = vmatprep.mubr.msk.bf16.mxu1 %vm403_vm0, %v387_v38  ;;  %v369_v50 = vmax.f32 %v337_v40, 0.0  ;;  %v339_v51 = vadd.f32 %v1067_v2, %v300_v41  ;;  %v302_v52 = vmul.f32 %v1055_v1, %v263_v37 }
  0x26   : > { %974 = vmatmul.mubr.msk.bf16.vlgmr.msra.gmra.mrb[0].mxu1 %vm403_vm0, %v388_v43  ;;  %v389_v53 = vpack.c.bf16 %v368_v44, %v367_v39  ;;  %v370_v54 = vmax.f32 %v338_v45, 0.0  ;;  %v340_v55 = vadd.f32 %v1067_v2, %v301_v46  ;;  %v303_v56 = vmul.f32 %v1055_v1, %v264_v42 }
  0x27   : > { %v371_v57 = vmax.f32 %v339_v51, 0.0  ;;  %v304_v58 = vmul.f32 %v1055_v1, %v265_v47  ;;  %v305_v59 = vmul.f32 %v1055_v1, %v266_v48  ;;  %v361_v61 = vmax.f32 %v1125_v10, 0.0 }
  0x28   : > { %977 = vmatprep.mubr.msk.bf16.mxu1 %vm403_vm0, %v389_v53  ;;  %v372_v60 = vmax.f32 %v340_v55, 0.0  ;;  %v362_v62 = vmax.f32 %v330_v19, 0.0  ;;  %v390_v63 = vpack.c.bf16 %v370_v54, %v369_v50  ;;  %v341_v0 = vadd.f32 %v1067_v2, %v302_v52 }
  0x29   : > { %v342_v3 = vadd.f32 %v1067_v2, %v303_v56  ;;  %v343_v5 = vadd.f32 %v1067_v2, %v304_v58  ;;  %v344_v6 = vadd.f32 %v1067_v2, %v305_v59  ;;  %v306_v12 = vmul.f32 %v1055_v1, %v267_v7 }
  0x2a   : > { %966 = vmatmul.mubr.msk.bf16.gmra.mrb[8].mxu0 %vm403_vm0, %v384_v28  ;;  %v391_v4 = vpack.c.bf16 %v372_v60, %v371_v57  ;;  %v386_v9 = vpack.c.bf16 %v362_v62, %v361_v61  ;;  %v373_v11 = vmax.f32 %v341_v0, 0.0  ;;  %v307_v13 = vmul.f32 %v1055_v1, %v268_v8 }
  0x2b   : > { %969 = vmatprep.mubr.msk.bf16.mxu0 %vm403_vm0, %v385_v49  ;;  %v374_v10 = vmax.f32 %v342_v3, 0.0  ;;  %v375_v14 = vmax.f32 %v343_v5, 0.0  ;;  %v376_v15 = vmax.f32 %v344_v6, 0.0  ;;  %v345_v17 = vadd.f32 %v1067_v2, %v306_v12 }
  0x2c   : > { %v346_v18 = vadd.f32 %v1067_v2, %v307_v13 }
  0x2d   : > { %v392_v16 = vpack.c.bf16 %v374_v10, %v373_v11  ;;  %v393_v19 = vpack.c.bf16 %v376_v15, %v375_v14  ;;  %v377_v20 = vmax.f32 %v345_v17, 0.0 }
  0x2e   : > { %978 = vmatmul.mubr.msk.bf16.gmra.mrb[4].mxu1 %vm403_vm0, %v390_v63  ;;  %v378_v21 = vmax.f32 %v346_v18, 0.0 }
  0x2f   : > { %981 = vmatprep.mubr.msk.bf16.mxu1 %vm403_vm0, %v391_v4 }
  0x30   : > { %v394_v22 = vpack.c.bf16 %v378_v21, %v377_v20 }
  0x32   : > { %970 = vmatmul.mubr.msk.bf16.gmra.mrb[12].mxu0 %vm403_vm0, %v386_v9 }
  0x36   : > { %982 = vmatmul.mubr.msk.bf16.gmra.mrb[8].mxu1 %vm403_vm0, %v392_v16 }
  0x37   : > { %985 = vmatprep.mubr.msk.bf16.mxu1 %vm403_vm0, %v393_v19 }
  0x3e   : > { %986 = vmatmul.mubr.msk.bf16.gmra.mrb[12].mxu1 %vm403_vm0, %v394_v22 }
  0xed   : > { %v959_v1 = vpop.f32.mrb[0].mxu0 }
  0xee   : > { %616 = vst.msk [vmem:[%s1189_s7 + $0x10] sm:$0xff] %vm613_vm1, %v959_v1  ;;  %v486_v2 = vpop.f32.mrb[1].mxu0  ;;  %v719_v26 = vmul.f32 %v959_v1, %v959_v1  ;;  %v649_v31 = vsel %vm613_vm1, %v959_v1, 0.0 }
  0xef   : > { %614 = vst.msk [vmem:[%s1189_s7] sm:$0xff] %vm613_vm1, %v486_v2  ;;  %v717_v23 = vmul.f32 %v486_v2, %v486_v2  ;;  %v960_v24 = vpop.f32.mrb[2].mxu0  ;;  %v646_v27 = vsel %vm613_vm1, %v486_v2, 0.0 }
  0xf0   : > { %617 = vst.msk [vmem:[%s1189_s7 + $0x18] sm:$0xff] %vm613_vm1, %v960_v24  ;;  %v489_v25 = vpop.f32.mrb[3].mxu0  ;;  %v720_v33 = vmul.f32 %v960_v24, %v960_v24  ;;  %v752_v37 = vsel %vm613_vm1, %v719_v26, 0.0  ;;  %v651_v38 = vsel %vm613_vm1, %v960_v24, 0.0 }
  0xf1   : > { %615 = vst.msk [vmem:[%s1189_s7 + $0x8] sm:$0xff] %vm613_vm1, %v489_v25  ;;  %v647_v28 = vsel %vm613_vm1, %v489_v25, 0.0  ;;  %v718_v29 = vmul.f32 %v489_v25, %v489_v25  ;;  %v749_v32 = vsel %vm613_vm1, %v717_v23, 0.0 }
  0xf2   : > { %v648_v30 = vadd.f32 %v647_v28, %v646_v27  ;;  %v754_v43 = vsel %vm613_vm1, %v720_v33, 0.0 }
  0xf3   : > { %v750_v34 = vsel %vm613_vm1, %v718_v29, 0.0 }
  0xf4   : > { %v650_v35 = vadd.f32 %v649_v31, %v648_v30  ;;  %v751_v36 = vadd.f32 %v750_v34, %v749_v32 }
  0xf5   : > { %v963_v39 = vpop.f32.mrb[4].mxu0 }
  0xf6   : > { %v753_v40 = vadd.f32 %v752_v37, %v751_v36  ;;  %620 = vst.msk [vmem:[%s1189_s7 + $0x30] sm:$0xff] %vm613_vm1, %v963_v39  ;;  %v502_v41 = vpop.f32.mrb[5].mxu0  ;;  %v652_v42 = vadd.f32 %v651_v38, %v650_v35  ;;  %v723_v50 = vmul.f32 %v963_v39, %v963_v39  ;;  %v657_v57 = vsel %vm613_vm1, %v963_v39, 0.0 }
  0xf7   : > { %618 = vst.msk [vmem:[%s1189_s7 + $0x20] sm:$0xff] %vm613_vm1, %v502_v41  ;;  %v653_v44 = vsel %vm613_vm1, %v502_v41, 0.0  ;;  %v721_v45 = vmul.f32 %v502_v41, %v502_v41  ;;  %v964_v46 = vpop.f32.mrb[6].mxu0 }
  0xf8   : > { %v654_v47 = vadd.f32 %v653_v44, %v652_v42  ;;  %v755_v48 = vadd.f32 %v754_v43, %v753_v40  ;;  %621 = vst.msk [vmem:[%s1189_s7 + $0x38] sm:$0xff] %vm613_vm1, %v964_v46  ;;  %v505_v49 = vpop.f32.mrb[7].mxu0  ;;  %v724_v58 = vmul.f32 %v964_v46, %v964_v46  ;;  %v760_v0 = vsel %vm613_vm1, %v723_v50, 0.0 }
  0xf9   : > { %v756_v51 = vsel %vm613_vm1, %v721_v45, 0.0  ;;  %619 = vst.msk [vmem:[%s1189_s7 + $0x28] sm:$0xff] %vm613_vm1, %v505_v49  ;;  %v655_v52 = vsel %vm613_vm1, %v505_v49, 0.0  ;;  %v722_v53 = vmul.f32 %v505_v49, %v505_v49  ;;  %v1218_v56 = vpop.f32.mrb[0].mxu1  ;;  %v659_v3 = vsel %vm613_vm1, %v964_v46, 0.0 }
  0xfa   : > { %v757_v54 = vadd.f32 %v756_v51, %v755_v48  ;;  %v656_v55 = vadd.f32 %v655_v52, %v654_v47  ;;  %632 = vst.msk [vmem:[%s1189_s7 + $0x90] sm:$0xff] %vm613_vm1, %v1218_v56  ;;  %v1225_v60 = vpop.f32.mrb[1].mxu1  ;;  %v762_v9 = vsel %vm613_vm1, %v724_v58, 0.0 }
  0xfb   : > { %v758_v59 = vsel %vm613_vm1, %v722_v53, 0.0  ;;  %630 = vst.msk [vmem:[%s1189_s7 + $0x80] sm:$0xff] %vm613_vm1, %v1225_v60  ;;  %v1230_v63 = vpop.f32.mrb[2].mxu1  ;;  %v733_v52 = vmul.f32 %v1225_v60, %v1225_v60 }
  0xfc   : > { %v658_v61 = vadd.f32 %v657_v57, %v656_v55  ;;  %v759_v62 = vadd.f32 %v758_v59, %v757_v54  ;;  %633 = vst.msk [vmem:[%s1189_s7 + $0x98] sm:$0xff] %vm613_vm1, %v1230_v63  ;;  %v1237_v5 = vpop.f32.mrb[3].mxu1 }
  0xfd   : > { %v967_v4 = vpop.f32.mrb[8].mxu0  ;;  %631 = vst.msk [vmem:[%s1189_s7 + $0x88] sm:$0xff] %vm613_vm1, %v1237_v5 }
  0xfe   : > { %v761_v6 = vadd.f32 %v760_v0, %v759_v62  ;;  %624 = vst.msk [vmem:[%s1189_s7 + $0x50] sm:$0xff] %vm613_vm1, %v967_v4  ;;  %v518_v7 = vpop.f32.mrb[9].mxu0  ;;  %v660_v8 = vadd.f32 %v659_v3, %v658_v61  ;;  %v727_v16 = vmul.f32 %v967_v4, %v967_v4  ;;  %v665_v1 = vsel %vm613_vm1, %v967_v4, 0.0 }
  0xff   : > { %622 = vst.msk [vmem:[%s1189_s7 + $0x40] sm:$0xff] %vm613_vm1, %v518_v7  ;;  %v661_v11 = vsel %vm613_vm1, %v518_v7, 0.0  ;;  %v725_v10 = vmul.f32 %v518_v7, %v518_v7  ;;  %v968_v12 = vpop.f32.mrb[10].mxu0  ;;  %v677_v61 = vsel %vm613_vm1, %v1225_v60, 0.0  ;;  %v734_v7 = vmul.f32 %v1237_v5, %v1237_v5 }
 0x100   : > { %v662_v13 = vadd.f32 %v661_v11, %v660_v8  ;;  %v763_v14 = vadd.f32 %v762_v9, %v761_v6  ;;  %625 = vst.msk [vmem:[%s1189_s7 + $0x58] sm:$0xff] %vm613_vm1, %v968_v12  ;;  %v521_v15 = vpop.f32.mrb[11].mxu0  ;;  %v728_v2 = vmul.f32 %v968_v12, %v968_v12  ;;  %v768_v28 = vsel %vm613_vm1, %v727_v16, 0.0 }
 0x101   : > { %v764_v17 = vsel %vm613_vm1, %v725_v10, 0.0  ;;  %623 = vst.msk [vmem:[%s1189_s7 + $0x48] sm:$0xff] %vm613_vm1, %v521_v15  ;;  %v663_v18 = vsel %vm613_vm1, %v521_v15, 0.0  ;;  %v726_v19 = vmul.f32 %v521_v15, %v521_v15  ;;  %v1254_v22 = vpop.f32.mrb[4].mxu1  ;;  %v667_v29 = vsel %vm613_vm1, %v968_v12, 0.0 }
 0x102   : > { %v765_v20 = vadd.f32 %v764_v17, %v763_v14  ;;  %v664_v21 = vadd.f32 %v663_v18, %v662_v13  ;;  %636 = vst.msk [vmem:[%s1189_s7 + $0xb0] sm:$0xff] %vm613_vm1, %v1254_v22  ;;  %v1261_v24 = vpop.f32.mrb[5].mxu1  ;;  %v770_v35 = vsel %vm613_vm1, %v728_v2, 0.0  ;;  %v780_v6 = vsel %vm613_vm1, %v733_v52, 0.0 }
 0x103   : > { %v766_v23 = vsel %vm613_vm1, %v726_v19, 0.0  ;;  %634 = vst.msk [vmem:[%s1189_s7 + $0xa0] sm:$0xff] %vm613_vm1, %v1261_v24  ;;  %v1266_v27 = vpop.f32.mrb[6].mxu1  ;;  %v735_v60 = vmul.f32 %v1218_v56, %v1218_v56  ;;  %v679_v11 = vsel %vm613_vm1, %v1237_v5, 0.0  ;;  %v681_v14 = vsel %vm613_vm1, %v1218_v56, 0.0 }
 0x104   : > { %v666_v25 = vadd.f32 %v665_v1, %v664_v21  ;;  %v767_v26 = vadd.f32 %v766_v23, %v765_v20  ;;  %637 = vst.msk [vmem:[%s1189_s7 + $0xb8] sm:$0xff] %vm613_vm1, %v1266_v27  ;;  %v1273_v31 = vpop.f32.mrb[7].mxu1  ;;  %v736_v15 = vmul.f32 %v1230_v63, %v1230_v63  ;;  %v782_v16 = vsel %vm613_vm1, %v734_v7, 0.0 }
 0x105   : > { %v971_v30 = vpop.f32.mrb[12].mxu0  ;;  %635 = vst.msk [vmem:[%s1189_s7 + $0xa8] sm:$0xff] %vm613_vm1, %v1273_v31  ;;  %v737_v17 = vmul.f32 %v1261_v24, %v1261_v24  ;;  %v784_v56 = vsel %vm613_vm1, %v735_v60, 0.0  ;;  %v683_v21 = vsel %vm613_vm1, %v1230_v63, 0.0  ;;  %v685_v1 = vsel %vm613_vm1, %v1261_v24, 0.0 }
 0x106   : > { %v769_v32 = vadd.f32 %v768_v28, %v767_v26  ;;  %628 = vst.msk [vmem:[%s1189_s7 + $0x70] sm:$0xff] %vm613_vm1, %v971_v30  ;;  %v534_v33 = vpop.f32.mrb[13].mxu0  ;;  %v668_v34 = vadd.f32 %v667_v29, %v666_v25  ;;  %v731_v42 = vmul.f32 %v971_v30, %v971_v30  ;;  %v673_v49 = vsel %vm613_vm1, %v971_v30, 0.0 }
 0x107   : > { %626 = vst.msk [vmem:[%s1189_s7 + $0x60] sm:$0xff] %vm613_vm1, %v534_v33  ;;  %v669_v36 = vsel %vm613_vm1, %v534_v33, 0.0  ;;  %v729_v37 = vmul.f32 %v534_v33, %v534_v33  ;;  %v972_v38 = vpop.f32.mrb[14].mxu0  ;;  %v786_v28 = vsel %vm613_vm1, %v736_v15, 0.0  ;;  %v788_v29 = vsel %vm613_vm1, %v737_v17, 0.0 }
 0x108   : > { %v670_v39 = vadd.f32 %v669_v36, %v668_v34  ;;  %v771_v40 = vadd.f32 %v770_v35, %v769_v32  ;;  %629 = vst.msk [vmem:[%s1189_s7 + $0x78] sm:$0xff] %vm613_vm1, %v972_v38  ;;  %v537_v41 = vpop.f32.mrb[15].mxu0  ;;  %v732_v50 = vmul.f32 %v972_v38, %v972_v38  ;;  %v776_v58 = vsel %vm613_vm1, %v731_v42, 0.0 }
 0x109   : > { %v772_v43 = vsel %vm613_vm1, %v729_v37, 0.0  ;;  %627 = vst.msk [vmem:[%s1189_s7 + $0x68] sm:$0xff] %vm613_vm1, %v537_v41  ;;  %v671_v44 = vsel %vm613_vm1, %v537_v41, 0.0  ;;  %v730_v45 = vmul.f32 %v537_v41, %v537_v41  ;;  %v1290_v48 = vpop.f32.mrb[8].mxu1  ;;  %v675_v59 = vsel %vm613_vm1, %v972_v38, 0.0 }
 0x10a   : > { %v773_v46 = vadd.f32 %v772_v43, %v771_v40  ;;  %v672_v47 = vadd.f32 %v671_v44, %v670_v39  ;;  %640 = vst.msk [vmem:[%s1189_s7 + $0xd0] sm:$0xff] %vm613_vm1, %v1290_v48  ;;  %v582_v53 = vpop.f32.mrb[9].mxu1  ;;  %v778_v4 = vsel %vm613_vm1, %v732_v50, 0.0  ;;  %v738_v63 = vmul.f32 %v1273_v31, %v1273_v31 }
 0x10b   : > { %v774_v51 = vsel %vm613_vm1, %v730_v45, 0.0  ;;  %638 = vst.msk [vmem:[%s1189_s7 + $0xc0] sm:$0xff] %vm613_vm1, %v582_v53  ;;  %v1301_v57 = vpop.f32.mrb[10].mxu1  ;;  %v739_v33 = vmul.f32 %v1254_v22, %v1254_v22  ;;  %v687_v34 = vsel %vm613_vm1, %v1273_v31, 0.0  ;;  %v689_v37 = vsel %vm613_vm1, %v1254_v22, 0.0 }
 0x10c   : > { %v674_v54 = vadd.f32 %v673_v49, %v672_v47  ;;  %v775_v55 = vadd.f32 %v774_v51, %v773_v46  ;;  %641 = vst.msk [vmem:[%s1189_s7 + $0xd8] sm:$0xff] %vm613_vm1, %v1301_v57  ;;  %v585_v62 = vpop.f32.mrb[11].mxu1  ;;  %v740_v38 = vmul.f32 %v1266_v27, %v1266_v27  ;;  %v790_v39 = vsel %vm613_vm1, %v738_v63, 0.0 }
 0x10d   : > { %639 = vst.msk [vmem:[%s1189_s7 + $0xc8] sm:$0xff] %vm613_vm1, %v585_v62  ;;  %v741_v40 = vmul.f32 %v582_v53, %v582_v53  ;;  %v792_v43 = vsel %vm613_vm1, %v739_v33, 0.0  ;;  %v691_v44 = vsel %vm613_vm1, %v1266_v27, 0.0  ;;  %v693_v31 = vsel %vm613_vm1, %v582_v53, 0.0 }
 0x10e   : > { %v777_v0 = vadd.f32 %v776_v58, %v775_v55  ;;  %v676_v3 = vadd.f32 %v675_v59, %v674_v54  ;;  %v794_v47 = vsel %vm613_vm1, %v740_v38, 0.0  ;;  %v742_v49 = vmul.f32 %v585_v62, %v585_v62 }
 0x10f   : > { %v796_v22 = vsel %vm613_vm1, %v741_v40, 0.0  ;;  %v743_v52 = vmul.f32 %v1290_v48, %v1290_v48  ;;  %v695_v54 = vsel %vm613_vm1, %v585_v62, 0.0  ;;  %v697_v27 = vsel %vm613_vm1, %v1290_v48, 0.0 }
 0x110   : > { %v678_v8 = vadd.f32 %v677_v61, %v676_v3  ;;  %v779_v9 = vadd.f32 %v778_v4, %v777_v0  ;;  %v744_v53 = vmul.f32 %v1301_v57, %v1301_v57  ;;  %v798_v59 = vsel %vm613_vm1, %v742_v49, 0.0 }
 0x111   : > { %v1320_v13 = vpop.f32.mrb[12].mxu1  ;;  %v800_v4 = vsel %vm613_vm1, %v743_v52, 0.0 }
 0x112   : > { %v781_v10 = vadd.f32 %v780_v6, %v779_v9  ;;  %v680_v12 = vadd.f32 %v679_v11, %v678_v8  ;;  %644 = vst.msk [vmem:[%s1189_s7 + $0xf0] sm:$0xff] %vm613_vm1, %v1320_v13  ;;  %v598_v5 = vpop.f32.mrb[13].mxu1  ;;  %v699_v6 = vsel %vm613_vm1, %v1301_v57, 0.0  ;;  %v802_v9 = vsel %vm613_vm1, %v744_v53, 0.0 }
 0x113   : > { %642 = vst.msk [vmem:[%s1189_s7 + $0xe0] sm:$0xff] %vm613_vm1, %v598_v5  ;;  %v1334_v20 = vpop.f32.mrb[14].mxu1  ;;  %v745_v61 = vmul.f32 %v598_v5, %v598_v5  ;;  %v701_v62 = vsel %vm613_vm1, %v598_v5, 0.0  ;;  %v705_v57 = vsel %vm613_vm1, %v1320_v13, 0.0 }
 0x114   : > { %v682_v18 = vadd.f32 %v681_v14, %v680_v12  ;;  %v783_v19 = vadd.f32 %v782_v16, %v781_v10  ;;  %645 = vst.msk [vmem:[%s1189_s7 + $0xf8] sm:$0xff] %vm613_vm1, %v1334_v20  ;;  %v748_v2 = vmul.f32 %v1334_v20, %v1334_v20  ;;  %v601_v23 = vpop.f32.mrb[15].mxu1  ;;  %v747_v12 = vmul.f32 %v1320_v13, %v1320_v13 }
 0x115   : > { %643 = vst.msk [vmem:[%s1189_s7 + $0xe8] sm:$0xff] %vm613_vm1, %v601_v23  ;;  %v804_v48 = vsel %vm613_vm1, %v745_v61, 0.0  ;;  %v746_v60 = vmul.f32 %v601_v23, %v601_v23  ;;  %v703_v14 = vsel %vm613_vm1, %v601_v23, 0.0 }
 0x116   : > { %v785_v25 = vadd.f32 %v784_v56, %v783_v19  ;;  %v684_v26 = vadd.f32 %v683_v21, %v682_v18  ;;  %v810_v24 = vsel %vm613_vm1, %v748_v2, 0.0  ;;  %v808_v19 = vsel %vm613_vm1, %v747_v12, 0.0 }
 0x117   : > { %v806_v17 = vsel %vm613_vm1, %v746_v60, 0.0  ;;  %v707_v56 = vsel %vm613_vm1, %v1334_v20, 0.0 }
 0x118   : > { %v686_v30 = vadd.f32 %v685_v1, %v684_v26  ;;  %v787_v32 = vadd.f32 %v786_v28, %v785_v25 }
 0x11a   : > { %v789_v35 = vadd.f32 %v788_v29, %v787_v32  ;;  %v688_v36 = vadd.f32 %v687_v34, %v686_v30 }
 0x11c   : > { %v690_v41 = vadd.f32 %v689_v37, %v688_v36  ;;  %v791_v42 = vadd.f32 %v790_v39, %v789_v35 }
 0x11e   : > { %v793_v45 = vadd.f32 %v792_v43, %v791_v42  ;;  %v692_v46 = vadd.f32 %v691_v44, %v690_v41 }
 0x120   : > { %v694_v50 = vadd.f32 %v693_v31, %v692_v46  ;;  %v795_v51 = vadd.f32 %v794_v47, %v793_v45 }
 0x122   : > { %v797_v55 = vadd.f32 %v796_v22, %v795_v51  ;;  %v696_v58 = vadd.f32 %v695_v54, %v694_v50 }
 0x124   : > { %v698_v0 = vadd.f32 %v697_v27, %v696_v58  ;;  %v799_v3 = vadd.f32 %v798_v59, %v797_v55 }
 0x126   : > { %v801_v7 = vadd.f32 %v800_v4, %v799_v3  ;;  %v700_v8 = vadd.f32 %v699_v6, %v698_v0 }
 0x128   : > { %v702_v11 = vadd.f32 %v701_v62, %v700_v8  ;;  %v803_v10 = vadd.f32 %v802_v9, %v801_v7 }
 0x12a   : > { %v805_v15 = vadd.f32 %v804_v48, %v803_v10  ;;  %v704_v16 = vadd.f32 %v703_v14, %v702_v11 }
 0x12c   : > { %v706_v5 = vadd.f32 %v705_v57, %v704_v16  ;;  %v807_v18 = vadd.f32 %v806_v17, %v805_v15 }
 0x12e   : > { %v708_v21 = vadd.f32 %v707_v56, %v706_v5  ;;  %v809_v1 = vadd.f32 %v808_v19, %v807_v18 }
 0x130   : > { %v709_v2 = vrot.slane %v708_v21, 4  ;;  %v811_v25 = vadd.f32 %v810_v24, %v809_v1 }
 0x132   : > { %v710_v23 = vadd.f32 %v709_v2, %v708_v21  ;;  %v812_v26 = vrot.slane %v811_v25, 4 }
 0x134   : > { %v711_v28 = vrot.slane %v710_v23, 2  ;;  %v813_v29 = vadd.f32 %v812_v26, %v811_v25 }
 0x136   : > { %v712_v63 = vadd.f32 %v711_v28, %v710_v23  ;;  %v814_v13 = vrot.slane %v813_v29, 2 }
 0x138   : > { %v713_v30 = vrot.slane %v712_v63, 1  ;;  %v815_v32 = vadd.f32 %v814_v13, %v813_v29 }
 0x13a   : > { %v714_v33 = vadd.f32 %v713_v30, %v712_v63  ;;  %v816_v20 = vrot.slane %v815_v32, 1 }
 0x13c   : > { %716 = vst.msk [vmem:[%s235_s11] sm:$0x1] %vm715_vm2, %v714_v33  ;;  %v817_v34 = vadd.f32 %v816_v20, %v815_v32 }
 0x13e   : > { %818 = vst.msk [vmem:[%s235_s11 + $0x1] sm:$0x1] %vm715_vm2, %v817_v34 }
 0x13f PF: > { %s16_s18 = sadd.s32 1, %s1006_s18  }
 0x140   : > { %p13_p4 = scmp.ge.s32.totalorder %s16_s18, 4  }
 0x142   :  { %15 = sbr.rel (!%p13_p4) target bundleno = 1 (0x1), region = 78 }

// kernel: bottleneck_forward.3
= control target key start
LH: loop header
LB: loop body
LE: loop exit
PB: predicated region body
PF: predicated region fallthrough
CT: control target
= control target key end

     0   :  { %s4923_s15 = smov 0   ;;  %s7297_s0 = inlined_call_operand.vmem [shape: f32[2,16,16,32], index: 0, kind: input, shape index: {}]   ;;  %s7298_s1 = inlined_call_operand.vmem [shape: f32[1,32], index: 1, kind: input, shape index: {}]   ;;  %s7299_s2 = inlined_call_operand.vmem [shape: f32[1,32], index: 2, kind: input, shape index: {}]   ;;  %s7300_s3 = inlined_call_operand.vmem [shape: bf16[288,8], index: 3, kind: input, shape index: {}]   ;;  %s7301_s4 = inlined_call_operand.vmem [shape: f32[2,16,16,8], index: 4, kind: output, shape index: {}]  }
   0x1 LB: > { %s4298_s16 = sadd.s32 4294967295, %s4892_s15   ;;  %p4302_p0 = scmp.ge.s32.totalorder %s4892_s15, 1  ;;  %s4892_s15 = sphi %s4923_s15, %s14_s15  }
   0x2   : > { %p162_p1 = scmp.lt.s32.totalorder %s4892_s15, 3 }
   0x4   : > { %p163_p2 = pnand %p4302_p0, %p162_p1 }
   0x6   : > { %166 = sbr.rel (%p163_p2) target bundleno = 719 (0x2cf), region = 36 }
   0xd   : > { %vm341_vm0 = vcmask 257024   ;;  %vm344_vm1 = vcmask 253952   ;;  %v4894_v0 = vmov 0   ;;  %p188_p3 = scmp.lt.s32.totalorder %s4298_s16, 1  ;;  %vm1433_vm2 = vcmask 1042432   ;;  %s4895_s25 = smov 64  }
   0xe   : > { %342 = vst.msk [vmem:[#allocation2] sm:$0xf] %vm341_vm0, %v4894_v0  ;;  %343 = vst.msk [vmem:[#allocation2 + $0x4] sm:$0xf] %vm341_vm0, %v4894_v0  ;;  %vm1434_vm3 = vcmask 1046532   ;;  %s4896_s26 = smov 32  }
   0xf   : > { %345 = vst.msk [vmem:[#allocation2 + $0x8] sm:$0x1] %vm344_vm1, %v4894_v0  ;;  %348 = vst.msk [vmem:[#allocation2 + $0x14] sm:$0x1] %vm344_vm1, %v4894_v0  ;;  %s7583_s16 = smov (!%p188_p3, %s4298_s16), 1  ;;  %s4897_s27 = smov 96  }
  0x10   : > { %346 = vst.msk [vmem:[#allocation2 + $0xc] sm:$0xf] %vm341_vm0, %v4894_v0  ;;  %347 = vst.msk [vmem:[#allocation2 + $0x10] sm:$0xf] %vm341_vm0, %v4894_v0  ;;  %vm982_vm4 = vsmask.f32 3328 }
  0x11   : > { %349 = vst.msk [vmem:[#allocation2 + $0x18] sm:$0xf] %vm341_vm0, %v4894_v0  ;;  %350 = vst.msk [vmem:[#allocation2 + $0x1c] sm:$0xf] %vm341_vm0, %v4894_v0  ;;  %v4994_v1 = vld [vmem:[%s7298_s1] ss:$0 sm:$0xff] }
  0x12   : > { %351 = vst.msk [vmem:[#allocation2 + $0x20] sm:$0x1] %vm344_vm1, %v4894_v0  ;;  %354 = vst.msk [vmem:[#allocation2 + $0x2c] sm:$0x1] %vm344_vm1, %v4894_v0  ;;  %s4569_s19 = sshll.u32 %s7583_s16, 8  ;;  %vm3437_vm14 = vcmask 261120  }
  0x13   : > { %352 = vst.msk [vmem:[#allocation2 + $0x24] sm:$0xf] %vm341_vm0, %v4894_v0  ;;  %353 = vst.msk [vmem:[#allocation2 + $0x28] sm:$0xf] %vm341_vm0, %v4894_v0  ;;  %s5006_s22 = scalar_lea.vmem %s7297_s0, %s4569_s19  ;;  %v5011_v3 = vld [vmem:[%s7299_s2] ss:$0 sm:$0xff] }
  0x14   : > { %355 = vst.msk [vmem:[#allocation2 + $0x30] sm:$0xf] %vm341_vm0, %v4894_v0  ;;  %356 = vst.msk [vmem:[#allocation2 + $0x34] sm:$0xf] %vm341_vm0, %v4894_v0  ;;  %vm983_vm6 = vsmask.f32 7440 }
  0x15   : > { %357 = vst.msk [vmem:[#allocation2 + $0x38] sm:$0x1] %vm344_vm1, %v4894_v0  ;;  %360 = vst.msk [vmem:[#allocation2 + $0x44] sm:$0x1] %vm344_vm1, %v4894_v0  ;;  %v225_v4 = vld [vmem:[%s5006_s22 + $0xd0] sm:$0xff]  ;;  %v226_v5 = vld [vmem:[%s5006_s22 + $0xd8] sm:$0xff] }
  0x16   : > { %358 = vst.msk [vmem:[#allocation2 + $0x3c] sm:$0xf] %vm341_vm0, %v4894_v0  ;;  %359 = vst.msk [vmem:[#allocation2 + $0x40] sm:$0xf] %vm341_vm0, %v4894_v0  ;;  %v201_v6 = vld [vmem:[%s5006_s22 + $0x10] sm:$0xff]  ;;  %v264_v10 = vmul.f32 %v4994_v1, %v225_v4  ;;  %v265_v11 = vmul.f32 %v4994_v1, %v226_v5  ;;  %v202_v26 = vld [vmem:[%s5006_s22 + $0x18] sm:$0xff] }
  0x17   : > { %361 = vst.msk [vmem:[#allocation2 + $0x48] sm:$0xf] %vm341_vm0, %v4894_v0  ;;  %362 = vst.msk [vmem:[#allocation2 + $0x4c] sm:$0xf] %vm341_vm0, %v4894_v0  ;;  %v935_v7 = vld [vmem:[#allocation2 + $0x4] sm:$0xf]  ;;  %v240_v12 = vmul.f32 %v4994_v1, %v201_v6  ;;  %v241_v35 = vmul.f32 %v4994_v1, %v202_v26 }
  0x18   : > { %363 = vst.msk [vmem:[#allocation2 + $0x50] sm:$0x1] %vm344_vm1, %v4894_v0  ;;  %366 = vst.msk [vmem:[#allocation2 + $0x5c] sm:$0x1] %vm344_vm1, %v4894_v0  ;;  %v966_v8 = vld [vmem:[#allocation2 + $0x8] sm:$0x1]  ;;  %v303_v25 = vadd.f32 %v5011_v3, %v264_v10  ;;  %v304_v33 = vadd.f32 %v5011_v3, %v265_v11 }
  0x19   : > { %364 = vst.msk [vmem:[#allocation2 + $0x54] sm:$0xf] %vm341_vm0, %v4894_v0  ;;  %365 = vst.msk [vmem:[#allocation2 + $0x58] sm:$0xf] %vm341_vm0, %v4894_v0  ;;  %v1369_v9 = vld [vmem:[#allocation2] sm:$0xe]  ;;  %v279_v40 = vadd.f32 %v5011_v3, %v240_v12  ;;  %v280_v44 = vadd.f32 %v5011_v3, %v241_v35 }
  0x1a   : > { %367 = vst.msk [vmem:[#allocation2 + $0x60] sm:$0xf] %vm341_vm0, %v4894_v0  ;;  %368 = vst.msk [vmem:[#allocation2 + $0x64] sm:$0xf] %vm341_vm0, %v4894_v0  ;;  %v4341_v13 = vrot.slane %v1369_v9, 9  ;;  %v1438_v14 = vrot.slane %v935_v7, 5 }
  0x1b   : > { %369 = vst.msk [vmem:[#allocation2 + $0x68] sm:$0x1] %vm344_vm1, %v4894_v0  ;;  %372 = vst.msk [vmem:[#allocation2 + $0x74] sm:$0x1] %vm344_vm1, %v4894_v0  ;;  %v1441_v15 = vrot.slane %v966_v8, 5  ;;  %v995_v17 = vshll.u32 %v935_v7, 16 }
  0x1c   : > { %370 = vst.msk [vmem:[#allocation2 + $0x6c] sm:$0xf] %vm341_vm0, %v4894_v0  ;;  %371 = vst.msk [vmem:[#allocation2 + $0x70] sm:$0xf] %vm341_vm0, %v4894_v0  ;;  %v934_v16 = vld [vmem:[#allocation2] sm:$0xf] }
  0x1d   : > { %373 = vst.msk [vmem:[#allocation2 + $0x78] sm:$0xf] %vm341_vm0, %v4894_v0  ;;  %374 = vst.msk [vmem:[#allocation2 + $0x7c] sm:$0xf] %vm341_vm0, %v4894_v0  ;;  %vm818_vm7 = vsmask.f32 7938 }
  0x1e   : > { %375 = vst.msk [vmem:[#allocation2 + $0x80] sm:$0x1] %vm344_vm1, %v4894_v0  ;;  %378 = vst.msk [vmem:[#allocation2 + $0x8c] sm:$0x1] %vm344_vm1, %v4894_v0  ;;  %v986_v18 = vshrl.u32 %v934_v16, 16  ;;  %v989_v19 = vshll.u32 %v934_v16, 16 }
  0x1f   : > { %376 = vst.msk [vmem:[#allocation2 + $0x84] sm:$0xf] %vm341_vm0, %v4894_v0  ;;  %377 = vst.msk [vmem:[#allocation2 + $0x88] sm:$0xf] %vm341_vm0, %v4894_v0  ;;  %v999_v20 = vshrl.u32 %v935_v7, 16  ;;  %v1005_v21 = vshll.u32 %v966_v8, 16 }
  0x20   : > { %379 = vst.msk [vmem:[#allocation2 + $0x90] sm:$0xf] %vm341_vm0, %v4894_v0  ;;  %380 = vst.msk [vmem:[#allocation2 + $0x94] sm:$0xf] %vm341_vm0, %v4894_v0  ;;  %v1440_v23 = vrot.slane %v1438_v14, 4  ;;  %v997_v24 = vrot.slane %v995_v17, 5 }
  0x21   : > { %381 = vst.msk [vmem:[#allocation2 + $0x98] sm:$0x1] %vm344_vm1, %v4894_v0  ;;  %384 = vst.msk [vmem:[#allocation2 + $0xa4] sm:$0x1] %vm344_vm1, %v4894_v0  ;;  %vm493_vm8 = vsmask.f32 256 }
  0x22   : > { %382 = vst.msk [vmem:[#allocation2 + $0x9c] sm:$0xf] %vm341_vm0, %v4894_v0  ;;  %383 = vst.msk [vmem:[#allocation2 + $0xa0] sm:$0xf] %vm341_vm0, %v4894_v0  ;;  %vm494_vm9 = vsmask.f32 4368 }
  0x23   : > { %385 = vst.msk [vmem:[#allocation2 + $0xa8] sm:$0xf] %vm341_vm0, %v4894_v0  ;;  %386 = vst.msk [vmem:[#allocation2 + $0xac] sm:$0xf] %vm341_vm0, %v4894_v0  ;;  %v988_v27 = vrot.slane %v986_v18, 4  ;;  %v991_v28 = vrot.slane %v989_v19, 5 }
  0x24   : > { %387 = vst.msk [vmem:[#allocation2 + $0xb0] sm:$0x1] %vm344_vm1, %v4894_v0  ;;  %390 = vst.msk [vmem:[#allocation2 + $0xbc] sm:$0x1] %vm344_vm1, %v4894_v0  ;;  %v1001_v29 = vrot.slane %v999_v20, 4  ;;  %v1007_v30 = vrot.slane %v1005_v21, 5 }
  0x25   : > { %388 = vst.msk [vmem:[#allocation2 + $0xb4] sm:$0xf] %vm341_vm0, %v4894_v0  ;;  %389 = vst.msk [vmem:[#allocation2 + $0xb8] sm:$0xf] %vm341_vm0, %v4894_v0  ;;  %v203_v31 = vld [vmem:[%s5006_s22 + $0x20] sm:$0xff]  ;;  %v335_v34 = vmax.f32 %v303_v25, 0.0  ;;  %v992_v38 = vor.u32 %v991_v28, %v988_v27 }
  0x26   : > { %391 = vst.msk [vmem:[#allocation2 + $0xc0] sm:$0xf] %vm341_vm0, %v4894_v0  ;;  %392 = vst.msk [vmem:[#allocation2 + $0xc4] sm:$0xf] %vm341_vm0, %v4894_v0  ;;  %v204_v36 = vld [vmem:[%s5006_s22 + $0x28] sm:$0xff]  ;;  %v1002_v39 = vor.u32 %v1001_v29, %v997_v24  ;;  %v336_v42 = vmax.f32 %v304_v33, 0.0  ;;  %v242_v45 = vmul.f32 %v4994_v1, %v203_v31 }
  0x27   : > { %393 = vst.msk [vmem:[#allocation2 + $0xc8] sm:$0x1] %vm344_vm1, %v4894_v0  ;;  %396 = vst.msk [vmem:[#allocation2 + $0xd4] sm:$0x1] %vm344_vm1, %v4894_v0  ;;  %v4597_v43 = vpack.c.bf16 %v335_v34, %v335_v34  ;;  %v993_v46 = vrot.slane %v992_v38, 4  ;;  %v311_v48 = vmax.f32 %v279_v40, 0.0  ;;  %v243_v49 = vmul.f32 %v4994_v1, %v204_v36 }
  0x28   : > { %394 = vst.msk [vmem:[#allocation2 + $0xcc] sm:$0xf] %vm341_vm0, %v4894_v0  ;;  %395 = vst.msk [vmem:[#allocation2 + $0xd0] sm:$0xf] %vm341_vm0, %v4894_v0  ;;  %v1003_v47 = vrot.slane %v1002_v39, 4  ;;  %v4598_v50 = vpack.c.bf16 %v336_v42, %v336_v42  ;;  %v312_v53 = vmax.f32 %v280_v44, 0.0  ;;  %v281_v57 = vadd.f32 %v5011_v3, %v242_v45 }
  0x29   : > { %vm4996_vm5 = vmor %vm1433_vm2, %vm1434_vm3  ;;  %v718_v51 = vshrl.u32 %v4597_v43, 16  ;;  %v721_v52 = vshll.u32 %v4597_v43, 16  ;;  %v4573_v56 = vpack.c.bf16 %v311_v48, %v311_v48  ;;  %v282_v6 = vadd.f32 %v5011_v3, %v243_v49  ;;  %v199_v7 = vld [vmem:[%s5006_s22] sm:$0xff]  ;;  %v200_v17 = vld [vmem:[%s5006_s22 + $0x8] sm:$0xff] }
  0x2a   : > { %v1439_v22 = vsel %vm4996_vm5, %v4341_v13, %v1438_v14  ;;  %v1442_v32 = vsel %vm4996_vm5, %v1440_v23, %v1441_v15  ;;  %vm5032_vm10 = vmor %vm982_vm4, %vm983_vm6  ;;  %v726_v60 = vshrl.u32 %v4598_v50, 16  ;;  %v729_v61 = vshll.u32 %v4598_v50, 16  ;;  %v913_v63 = vld [vmem:[#allocation2 + $0xa8] sm:$0xf]  ;;  %v829_v20 = vld [vmem:[#allocation2 + $0x18] sm:$0xf] }
  0x2b   : > { %v4421_v37 = vcombine.low %v1439_v22, %v1442_v32  ;;  %v998_v54 = vsel %vm5032_vm10, %v993_v46, %v997_v24  ;;  %v1008_v55 = vsel %vm5032_vm10, %v1003_v47, %v1007_v30  ;;  %v720_v59 = vrot.slane %v718_v51, 7  ;;  %vm5047_vm11 = vmand %vm341_vm0, %vm818_vm7  ;;  %v227_v27 = vld [vmem:[%s5006_s22 + $0xe0] sm:$0xff]  ;;  %v228_v28 = vld [vmem:[%s5006_s22 + $0xe8] sm:$0xff] }
  0x2c   : > { %v4405_v58 = vcombine.low %v998_v54, %v1008_v55  ;;  %v4574_v0 = vpack.c.bf16 %v312_v53, %v312_v53  ;;  %v514_v4 = vshrl.u32 %v4573_v56, 16  ;;  %v517_v5 = vshll.u32 %v4573_v56, 16  ;;  %vm5058_vm12 = vmor %vm493_vm8, %vm494_vm9  ;;  %v223_v50 = vld [vmem:[%s5006_s22 + $0xc0] sm:$0xff] }
  0x2d   : > { %2957 = vrot.lane.b32.xlu1 %v4421_v37, %s4895_s25  ;;  %v723_v8 = vor.u32 %v721_v52, %v720_v59  ;;  %v724_v9 = vrot.slane %v720_v59, 4  ;;  %v5054_v10 = vrot.slane %v726_v60, 7  ;;  %v313_v11 = vmax.f32 %v281_v57, 0.0  ;;  %v836_v37 = vld [vmem:[#allocation2 + $0x24] sm:$0xf]  ;;  %vm5137_vm13 = vmand %vm344_vm1, %vm493_vm8 }
  0x2e   : > { %2877 = vrot.lane.b32.xlu0 %v4405_v58, %s4896_s26  ;;  %v516_v13 = vrot.slane %v514_v4, 7  ;;  %v522_v14 = vshrl.u32 %v4574_v0, 16  ;;  %v525_v15 = vshll.u32 %v4574_v0, 16  ;;  %v314_v16 = vmax.f32 %v282_v6, 0.0  ;;  %v224_v0 = vld [vmem:[%s5006_s22 + $0xc8] sm:$0xff] }
  0x2f   : > { %v731_v18 = vor.u32 %v729_v61, %v5054_v10  ;;  %v914_v19 = vsel %vm5047_vm11, %v723_v8, %v913_v63  ;;  %v4575_v21 = vpack.c.bf16 %v313_v11, %v313_v11  ;;  %v238_v22 = vmul.f32 %v4994_v1, %v199_v7 }
  0x30   : > { %915 = vst [vmem:[#allocation2 + $0xa8] sm:$0xf] %v914_v19  ;;  %v519_v23 = vor.u32 %v517_v5, %v516_v13  ;;  %v520_v24 = vrot.slane %v516_v13, 4  ;;  %v5067_v25 = vrot.slane %v522_v14, 7  ;;  %v4576_v26 = vpack.c.bf16 %v314_v16, %v314_v16 }
  0x31   : > { %v732_v29 = vsel %vm5058_vm12, %v724_v9, %v731_v18  ;;  %v531_v30 = vshrl.u32 %v4575_v21, 16  ;;  %v534_v31 = vshll.u32 %v4575_v21, 16  ;;  %v239_v32 = vmul.f32 %v4994_v1, %v200_v17 }
  0x32   : > { %916 = vst.msk [vmem:[#allocation2 + $0xac] sm:$0xf] %vm341_vm0, %v732_v29  ;;  %v527_v33 = vor.u32 %v525_v15, %v5067_v25  ;;  %v830_v34 = vsel %vm5047_vm11, %v519_v23, %v829_v20  ;;  %v539_v35 = vshrl.u32 %v4576_v26, 16  ;;  %v542_v36 = vshll.u32 %v4576_v26, 16  ;;  %v820_v26 = vld [vmem:[#allocation2 + $0xc] sm:$0xf] }
  0x33   : > { %831 = vst [vmem:[#allocation2 + $0x18] sm:$0xf] %v830_v34  ;;  %v533_v38 = vrot.slane %v531_v30, 7  ;;  %v277_v39 = vadd.f32 %v5011_v3, %v238_v22  ;;  %v278_v40 = vadd.f32 %v5011_v3, %v239_v32  ;;  %v266_v42 = vmul.f32 %v4994_v1, %v227_v27 }
  0x34   : > { %v528_v43 = vsel %vm5058_vm12, %v520_v24, %v527_v33  ;;  %v5083_v44 = vrot.slane %v539_v35, 7  ;;  %v267_v45 = vmul.f32 %v4994_v1, %v228_v28  ;;  %v262_v4 = vmul.f32 %v4994_v1, %v223_v50 }
  0x35   : > { %832 = vst.msk [vmem:[#allocation2 + $0x1c] sm:$0xf] %vm341_vm0, %v528_v43  ;;  %v536_v46 = vor.u32 %v534_v31, %v533_v38  ;;  %v537_v47 = vrot.slane %v533_v38, 4  ;;  %v309_v48 = vmax.f32 %v277_v39, 0.0  ;;  %v310_v49 = vmax.f32 %v278_v40, 0.0 }
  0x36   : > { %v544_v51 = vor.u32 %v542_v36, %v5083_v44  ;;  %v305_v52 = vadd.f32 %v5011_v3, %v266_v42  ;;  %v306_v58 = vadd.f32 %v5011_v3, %v267_v45  ;;  %v263_v16 = vmul.f32 %v4994_v1, %v224_v0  ;;  %v899_v43 = vld [vmem:[#allocation2 + $0x90] sm:$0xf] }
  0x37   : > { %v2181_v53 = vld [vmem:[#allocation2 + $0xa8] sm:$0xf]  ;;  %v837_v54 = vsel %vm5047_vm11, %v536_v46, %v836_v37  ;;  %v4571_v55 = vpack.c.bf16 %v309_v48, %v309_v48  ;;  %v4572_v56 = vpack.c.bf16 %v310_v49, %v310_v49  ;;  %v301_v20 = vadd.f32 %v5011_v3, %v262_v4 }
  0x38   : > { %v545_v57 = vsel %vm5058_vm12, %v537_v47, %v544_v51  ;;  %838 = vst [vmem:[#allocation2 + $0x24] sm:$0xf] %v837_v54  ;;  %v337_v59 = vmax.f32 %v305_v52, 0.0  ;;  %v338_v14 = vmax.f32 %v306_v58, 0.0  ;;  %v2494_v17 = vshrl.u32 %v2181_v53, 16 }
  0x39   : > { %v5095_v60 = vld [vmem:[#allocation2 + $0xac] sm:$0xf]  ;;  %839 = vst.msk [vmem:[#allocation2 + $0x28] sm:$0xf] %vm341_vm0, %v545_v57  ;;  %v497_v61 = vshrl.u32 %v4571_v55, 16  ;;  %v505_v63 = vshrl.u32 %v4572_v56, 16  ;;  %v302_v36 = vadd.f32 %v5011_v3, %v263_v16 }
  0x3a   : > { %7365 = vst [vmem:[#allocation3_spill] sm:$0xff] %v5095_v60  ;;  %v4497_v5 = vcombine.low %v2181_v53, %v5095_v60  ;;  %v2157_v6 = vld [vmem:[#allocation2 + $0x18] sm:$0xf]  ;;  %v500_v7 = vshll.u32 %v4571_v55, 16  ;;  %v508_v8 = vshll.u32 %v4572_v56, 16  ;;  %v4599_v15 = vpack.c.bf16 %v337_v59, %v337_v59 }
  0x3b   : > { %v499_v9 = vrot.slane %v497_v61, 7  ;;  %v507_v13 = vrot.slane %v505_v63, 7  ;;  %v2497_v18 = vshll.u32 %v2181_v53, 16  ;;  %v2206_v27 = vshrl.u32 %v2157_v6, 16  ;;  %v920_v51 = vld [vmem:[#allocation2 + $0xb4] sm:$0xf] }
  0x3c   : > { %3301 = vrot.lane.b32.xlu0 %v4497_v5, %s4895_s25  ;;  %v5102_v11 = vld [vmem:[#allocation2 + $0x1c] sm:$0xf]  ;;  %v2209_v28 = vshll.u32 %v2157_v6, 16  ;;  %v4600_v30 = vpack.c.bf16 %v338_v14, %v338_v14  ;;  %v735_v31 = vshrl.u32 %v4599_v15, 16  ;;  %v738_v35 = vshll.u32 %v4599_v15, 16 }
  0x3d   : > { %7366 = vst [vmem:[#allocation4_spill] sm:$0xff] %v5102_v11  ;;  %v4485_v19 = vcombine.low %v2157_v6, %v5102_v11  ;;  %v502_v22 = vor.u32 %v500_v7, %v499_v9  ;;  %v503_v23 = vrot.slane %v499_v9, 4  ;;  %v510_v24 = vor.u32 %v508_v8, %v507_v13  ;;  %v826_v58 = vld [vmem:[#allocation2 + $0x14] sm:$0x1]  ;;  %v5145_v4 = vld [vmem:[#allocation2 + $0x18] sm:$0xf] }
  0x3e   : > { %v5117_v37 = vrot.slane %v2494_v17, 4  ;;  %v5119_v38 = vrot.slane %v2497_v18, 5  ;;  %v2219_v42 = vshrl.u32 %v5102_v11, 16  ;;  %v737_v46 = vrot.slane %v735_v31, 7  ;;  %v903_v59 = vld [vmem:[#allocation2 + $0x98] sm:$0x1] }
  0x3f   : > { %3277 = vrot.lane.b32.xlu1 %v4485_v19, %s4895_s25  ;;  %v5109_v29 = vld [vmem:[#allocation2 + $0x24] sm:$0xf]  ;;  %v511_v34 = vsel %vm5058_vm12, %v503_v23, %v510_v24  ;;  %v821_v40 = vsel %vm5047_vm11, %v502_v22, %v820_v26  ;;  %v743_v47 = vshrl.u32 %v4600_v30, 16  ;;  %v5130_v48 = vrot.slane %v2206_v27, 4  ;;  %v906_v22 = vld [vmem:[#allocation2 + $0x9c] sm:$0xf] }
  0x40   : > { %v5112_v33 = vld [vmem:[#allocation2 + $0x28] sm:$0xf]  ;;  %823 = vst.msk [vmem:[#allocation2 + $0x10] sm:$0xf] %vm341_vm0, %v511_v34  ;;  %v5128_v45 = vld [vmem:[#allocation2 + $0x24] sm:$0xe]  ;;  %v740_v54 = vor.u32 %v738_v35, %v737_v46 }
  0x41   : > { %v4486_v39 = vcombine.low %v5109_v29, %v5112_v33  ;;  %822 = vst [vmem:[#allocation2 + $0xc] sm:$0xf] %v821_v40  ;;  %v5132_v49 = vrot.slane %v2209_v28, 5  ;;  %v746_v50 = vshll.u32 %v4600_v30, 16  ;;  %v333_v52 = vmax.f32 %v301_v20, 0.0 }
  0x42   : > { %v741_v55 = vrot.slane %v737_v46, 4  ;;  %v5141_v56 = vrot.slane %v743_v47, 7  ;;  %v334_v57 = vmax.f32 %v302_v36, 0.0  ;;  %v2230_v61 = vshrl.u32 %v5109_v29, 16  ;;  %v221_v47 = vld [vmem:[%s5006_s22 + $0xb0] sm:$0xff] }
  0x43   : > { %3279 = vrot.lane.b32.xlu0 %v4486_v39, %s4895_s25  ;;  %v4595_v63 = vpack.c.bf16 %v333_v52, %v333_v52  ;;  %v512_v0 = vrot.slane %v507_v13, 4  ;;  %v921_v6 = vsel %vm5047_vm11, %v740_v54, %v920_v51  ;;  %v1621_v8 = vshrl.u32 %v5145_v4, 16 }
  0x44   : > { %v748_v5 = vor.u32 %v746_v50, %v5141_v56  ;;  %v4596_v7 = vpack.c.bf16 %v334_v57, %v334_v57  ;;  %922 = vst [vmem:[#allocation2 + $0xb4] sm:$0xf] %v921_v6  ;;  %v1624_v16 = vshll.u32 %v5145_v4, 16  ;;  %v2233_v13 = vshll.u32 %v5109_v29, 16  ;;  %v5178_v6 = vld [vmem:[#allocation2 + $0x1c] sm:$0xf] }
  0x45   : > { %v701_v9 = vshrl.u32 %v4595_v63, 16  ;;  %v704_v14 = vshll.u32 %v4595_v63, 16  ;;  %v827_v15 = vsel %vm5137_vm13, %v512_v0, %v826_v58  ;;  %v7302_v24 = vrot.slane %v5112_v33, 5  ;;  %v910_v0 = vld [vmem:[#allocation2 + $0xa4] sm:$0x1]  ;;  %7370 = vst [vmem:[#allocation6_spill] sm:$0xff] %v5178_v6 }
  0x46   : > { %v749_v18 = vsel %vm5058_vm12, %v741_v55, %v748_v5  ;;  %v709_v19 = vshrl.u32 %v4596_v7, 16  ;;  %v712_v20 = vshll.u32 %v4596_v7, 16  ;;  %828 = vst [vmem:[#allocation2 + $0x14] sm:$0x1] %v827_v15  ;;  %v1623_v40 = vrot.slane %v1621_v8, 4  ;;  %v222_v8 = vld [vmem:[%s5006_s22 + $0xb8] sm:$0xff] }
  0x47   : > { %v5155_v17 = vld [vmem:[#allocation2 + $0x10] sm:$0xf]  ;;  %923 = vst.msk [vmem:[#allocation2 + $0xb8] sm:$0xf] %vm341_vm0, %v749_v18  ;;  %v703_v27 = vrot.slane %v701_v9, 7  ;;  %v1626_v46 = vrot.slane %v1624_v16, 5  ;;  %v260_v9 = vmul.f32 %v4994_v1, %v221_v47 }
  0x48   : > { %7369 = vst [vmem:[#allocation5_spill] sm:$0xff] %v5155_v17  ;;  %v1548_v26 = vld [vmem:[#allocation2 + $0xc] sm:$0xf]  ;;  %v2046_v28 = vrot.slane %v5155_v17, 5  ;;  %v711_v34 = vrot.slane %v709_v19, 7  ;;  %v5165_v50 = vrot.slane %v2230_v61, 4 }
  0x49   : > { %v4437_v29 = vcombine.low %v1548_v26, %v5155_v17  ;;  %v1597_v30 = vshrl.u32 %v1548_v26, 16  ;;  %v1600_v31 = vshll.u32 %v1548_v26, 16  ;;  %v1980_v35 = vld [vmem:[#allocation2 + $0xc] sm:$0xe]  ;;  %v706_v36 = vor.u32 %v704_v14, %v703_v27 }
  0x4a   : > { %v707_v39 = vrot.slane %v703_v27, 4  ;;  %v714_v54 = vor.u32 %v712_v20, %v711_v34  ;;  %v5170_v55 = vrot.slane %v7302_v24, 4  ;;  %v5172_v57 = vrot.slane %v2233_v13, 5 }
  0x4b   : > { %3053 = vrot.lane.b32.xlu1 %v4437_v29, %s4897_s27  ;;  %v1599_v51 = vrot.slane %v1597_v30, 4  ;;  %v1602_v52 = vrot.slane %v1600_v31, 5  ;;  %v907_v58 = vsel %vm5047_vm11, %v706_v36, %v906_v22  ;;  %v4357_v63 = vrot.slane %v1980_v35, 9  ;;  %v2183_v15 = vld [vmem:[#allocation2 + $0xb4] sm:$0xf] }
  0x4c   : > { %v715_v61 = vsel %vm5058_vm12, %v707_v39, %v714_v54  ;;  %908 = vst [vmem:[#allocation2 + $0x9c] sm:$0xf] %v907_v58  ;;  %v2048_v5 = vrot.slane %v2046_v28, 4  ;;  %v716_v7 = vrot.slane %v711_v34, 4  ;;  %v1610_v14 = vshrl.u32 %v5155_v17, 16 }
  0x4d   : > { %909 = vst.msk [vmem:[#allocation2 + $0xa0] sm:$0xf] %vm341_vm0, %v715_v61  ;;  %v5184_v16 = vld [vmem:[#allocation2 + $0x14] sm:$0x1]  ;;  %v1627_v13 = vor.u32 %v1626_v46, %v1623_v40  ;;  %v1634_v18 = vshrl.u32 %v5178_v6, 16  ;;  %v1603_v19 = vor.u32 %v1602_v52, %v1599_v51  ;;  %v2518_v30 = vshrl.u32 %v2183_v15, 16 }
  0x4e   : > { %7371 = vst [vmem:[#allocation7_spill] sm:$0xff] %v5184_v16  ;;  %v5187_v20 = vld [vmem:[#allocation2 + $0xb8] sm:$0xf]  ;;  %v2049_v22 = vrot.slane %v5184_v16, 5  ;;  %v911_v27 = vsel %vm5137_vm13, %v716_v7, %v910_v0  ;;  %v2521_v31 = vshll.u32 %v2183_v15, 16  ;;  %v2047_v34 = vsel %vm4996_vm5, %v4357_v63, %v2046_v28 }
  0x4f   : > { %7372 = vst [vmem:[#allocation8_spill] sm:$0xff] %v5187_v20  ;;  %912 = vst [vmem:[#allocation2 + $0xa4] sm:$0x1] %v911_v27  ;;  %v4498_v35 = vcombine.low %v2183_v15, %v5187_v20  ;;  %v261_v39 = vmul.f32 %v4994_v1, %v222_v8  ;;  %v299_v40 = vadd.f32 %v5011_v3, %v260_v9  ;;  %v833_v46 = vld [vmem:[#allocation2 + $0x20] sm:$0x1]  ;;  %v5201_v47 = vrot.slane %v1610_v14, 4 }
  0x50   : > { %v2050_v36 = vsel %vm4996_vm5, %v2048_v5, %v2049_v22  ;;  %v5203_v51 = vrot.slane %v1627_v13, 4  ;;  %v5205_v52 = vrot.slane %v1634_v18, 4  ;;  %v529_v54 = vrot.slane %v5067_v25, 4  ;;  %v1981_v28 = vld [vmem:[#allocation2 + $0x18] sm:$0xe] }
  0x51   : > { %7373 = vst [vmem:[#allocation9_spill] sm:$0xff] %v5201_v47  ;;  %v5208_v58 = vrot.slane %v1603_v19, 4  ;;  %3303 = vrot.lane.b32.xlu0 %v4498_v35, %s4895_s25  ;;  %v4469_v63 = vcombine.low %v2047_v34, %v2050_v36  ;;  %v300_v0 = vadd.f32 %v5011_v3, %v261_v39  ;;  %v331_v1 = vmax.f32 %v299_v40, 0.0  ;;  %v5212_v61 = vld [vmem:[#allocation2 + $0x10] sm:$0xf] }
  0x52   : > { %7374 = vst [vmem:[#allocation10_spill] sm:$0xff] %v5203_v51  ;;  %7375 = vst [vmem:[#allocation11_spill] sm:$0xff] %v5205_v52  ;;  %v5214_v5 = vld [vmem:[#allocation2 + $0xc] sm:$0xe]  ;;  %v5216_v7 = vrot.slane %v2518_v30, 4  ;;  %v4438_v25 = vcombine.low %v5145_v4, %v5178_v6  ;;  %v834_v15 = vsel %vm5137_vm13, %v529_v54, %v833_v46  ;;  %v5223_v13 = vrot.slane %v2521_v31, 5 }
  0x53   : > { %7376 = vst [vmem:[#allocation12_spill] sm:$0xff] %v5208_v58  ;;  %v1572_v8 = vld [vmem:[#allocation2 + $0x9c] sm:$0xf]  ;;  %v332_v22 = vmax.f32 %v300_v0, 0.0  ;;  %835 = vst [vmem:[#allocation2 + $0x20] sm:$0x1] %v834_v15  ;;  %v4593_v31 = vpack.c.bf16 %v331_v1, %v331_v1 }
  0x54   : > { %v1992_v14 = vld [vmem:[#allocation2 + $0x9c] sm:$0xe]  ;;  %v5226_v18 = vld [vmem:[#allocation2 + $0xa0] sm:$0xf]  ;;  %v2053_v4 = vrot.slane %v5178_v6, 5  ;;  %v4358_v39 = vrot.slane %v1981_v28, 9 }
  0x55   : > { %v4369_v19 = vrot.slane %v1992_v14, 9  ;;  %v4449_v30 = vcombine.low %v1572_v8, %v5226_v18  ;;  %v2130_v34 = vrot.slane %v5226_v18, 5  ;;  %3181 = vrot.lane.b32.xlu0 %v4469_v63, %s4896_s26  ;;  %v4594_v36 = vpack.c.bf16 %v332_v22, %v332_v22  ;;  %v5235_v40 = vld [vmem:[#allocation2 + $0x14] sm:$0x1]  ;;  %v917_v9 = vld [vmem:[#allocation2 + $0xb0] sm:$0x1] }
  0x56   : > { %v5233_v35 = vld [vmem:[#allocation2 + $0xa4] sm:$0x1]  ;;  %v4342_v46 = vrot.slane %v5214_v5, 9  ;;  %v1885_v54 = vshrl.u32 %v1572_v8, 16  ;;  %v1888_v0 = vshll.u32 %v1572_v8, 16  ;;  %v1445_v15 = vrot.slane %v5212_v61, 5 }
  0x57   : > { %3077 = vrot.lane.b32.xlu1 %v4449_v30, %s4897_s27  ;;  %v2132_v14 = vrot.slane %v2130_v34, 4  ;;  %v2131_v27 = vsel %vm4996_vm5, %v4369_v19, %v2130_v34  ;;  %v2133_v63 = vrot.slane %v5233_v35, 5  ;;  %v684_v32 = vshrl.u32 %v4593_v31, 16  ;;  %v1993_v34 = vld [vmem:[#allocation2 + $0xa8] sm:$0xe] }
  0x58   : > { %v687_v1 = vshll.u32 %v4593_v31, 16  ;;  %v692_v22 = vshrl.u32 %v4594_v36, 16  ;;  %v695_v28 = vshll.u32 %v4594_v36, 16  ;;  %v2055_v26 = vrot.slane %v2053_v4, 4  ;;  %v1382_v8 = vld [vmem:[#allocation2 + $0x9c] sm:$0xe] }
  0x59   : > { %v1448_v5 = vrot.slane %v5235_v40, 5  ;;  %v2134_v30 = vsel %vm4996_vm5, %v2132_v14, %v2133_v63  ;;  %v686_v29 = vrot.slane %v684_v32, 7  ;;  %v733_v19 = vrot.slane %v5054_v10, 4  ;;  %v5258_v10 = vld [vmem:[#allocation2 + $0xa0] sm:$0xf] }
  0x5a   : > { %v5248_v24 = vrot.slane %v1885_v54, 4  ;;  %v4481_v31 = vcombine.low %v2131_v27, %v2134_v30  ;;  %v694_v36 = vrot.slane %v692_v22, 7  ;;  %v5251_v3 = vld [vmem:[#allocation2 + $0x20] sm:$0x1]  ;;  %v2054_v23 = vsel %vm4996_vm5, %v4358_v39, %v2053_v4  ;;  %v5263_v30 = vld [vmem:[#allocation2 + $0xac] sm:$0xf] }
  0x5b   : > { %3055 = vrot.lane.b32.xlu1 %v4438_v25, %s4897_s27  ;;  %v5255_v21 = vrot.slane %v1888_v0, 5  ;;  %v689_v14 = vor.u32 %v687_v1, %v686_v29  ;;  %v690_v32 = vrot.slane %v686_v29, 4  ;;  %v2056_v63 = vrot.slane %v5251_v3, 5  ;;  %v5265_v4 = vld [vmem:[#allocation2 + $0xa4] sm:$0x1] }
  0x5c   : > { %3205 = vrot.lane.b32.xlu0 %v4481_v31, %s4896_s26  ;;  %v697_v54 = vor.u32 %v695_v28, %v694_v36  ;;  %v699_v25 = vrot.slane %v694_v36, 4  ;;  %v1447_v27 = vrot.slane %v1445_v15, 4  ;;  %v918_v22 = vsel %vm5137_vm13, %v733_v19, %v917_v9  ;;  %v5271_v31 = vld [vmem:[#allocation2 + $0x20] sm:$0x1] }
  0x5d   : > { %v900_v39 = vsel %vm5047_vm11, %v689_v14, %v899_v43  ;;  %v2057_v29 = vsel %vm4996_vm5, %v2055_v26, %v2056_v63  ;;  %919 = vst [vmem:[#allocation2 + $0xb0] sm:$0x1] %v918_v22  ;;  %v4370_v0 = vrot.slane %v1993_v34, 9  ;;  %v4354_v1 = vrot.slane %v1382_v8, 9  ;;  %7377 = vst [vmem:[#allocation13_spill] sm:$0xff] %v5271_v31 }
  0x5e   : > { %v698_v28 = vsel %vm5058_vm12, %v690_v32, %v697_v54  ;;  %901 = vst [vmem:[#allocation2 + $0x90] sm:$0xf] %v900_v39  ;;  %v904_v9 = vsel %vm5137_vm13, %v699_v25, %v903_v59  ;;  %v4470_v19 = vcombine.low %v2054_v23, %v2057_v29  ;;  %v1529_v36 = vrot.slane %v5258_v10, 5 }
  0x5f   : > { %902 = vst.msk [vmem:[#allocation2 + $0x94] sm:$0xf] %vm341_vm0, %v698_v28  ;;  %905 = vst [vmem:[#allocation2 + $0x98] sm:$0x1] %v904_v9  ;;  %v5281_v43 = vsel %vm4996_vm5, %v4342_v46, %v1445_v15  ;;  %v2137_v26 = vrot.slane %v5263_v30, 5  ;;  %v1532_v8 = vrot.slane %v5265_v4, 5  ;;  %v2212_v34 = vor.u32 %v5132_v49, %v5130_v48 }
  0x60   : > { %3183 = vrot.lane.b32.xlu0 %v4470_v19, %s4896_s26  ;;  %v5290_v59 = vsel %vm4996_vm5, %v1447_v27, %v1448_v5  ;;  %v5294_v23 = vsel %vm4996_vm5, %v4354_v1, %v1529_v36  ;;  %v1531_v14 = vrot.slane %v1529_v36, 4  ;;  %v2215_v46 = vshll.u32 %v5102_v11, 16  ;;  %v5297_v15 = vld [vmem:[#allocation2 + $0xc] sm:$0xf] }
  0x61   : > { %v5299_v32 = vrot.slane %v2212_v34, 4  ;;  %v2221_v48 = vrot.slane %v2219_v42, 4  ;;  %v2225_v49 = vshll.u32 %v5271_v31, 16  ;;  %v2500_v5 = vor.u32 %v5119_v38, %v5117_v37 }
  0x62   : > { %v5308_v63 = vsel %vm4996_vm5, %v1531_v14, %v1532_v8  ;;  %v5310_v54 = vrot.slane %v2215_v46, 5  ;;  %v2503_v25 = vshll.u32 %v5095_v60, 16  ;;  %v7378_v27 = vshrl.u32 %v5095_v60, 16 }
  0x63   : > { %v2138_v37 = vsel %vm4996_vm5, %v4370_v0, %v2137_v26  ;;  %v2139_v38 = vrot.slane %v2137_v26, 4  ;;  %v5323_v1 = vrot.slane %v2225_v49, 5  ;;  %v2501_v28 = vrot.slane %v2500_v5, 4 }
  0x64   : > { %v2509_v22 = vrot.slane %v7378_v27, 4  ;;  %v5321_v29 = vld [vmem:[#allocation2 + $0xb0] sm:$0x1]  ;;  %v2505_v9 = vrot.slane %v2503_v25, 5  ;;  %v1010_v19 = vshrl.u32 %v5297_v15, 16  ;;  %v1013_v26 = vshll.u32 %v5297_v15, 16 }
  0x65   : > { %v1381_v36 = vld [vmem:[#allocation2 + $0x90] sm:$0xe]  ;;  %v2140_v8 = vrot.slane %v5321_v29, 5  ;;  %v2222_v27 = vor.u32 %v2221_v48, %v5310_v54  ;;  %v5337_v52 = vld [vmem:[#allocation2 + $0xb0] sm:$0x1]  ;;  %vm3486_vm15 = vcmask 523264  }
  0x66   : > { %v958_v14 = vld [vmem:[#allocation2 + $0x90] sm:$0xf]  ;;  %v959_v46 = vld [vmem:[#allocation2 + $0x94] sm:$0xf]  ;;  %v978_v49 = vld [vmem:[#allocation2 + $0x98] sm:$0x1]  ;;  %v2510_v39 = vor.u32 %v2509_v22, %v2505_v9 }
  0x67   : > { %v4353_v5 = vrot.slane %v1381_v36, 9  ;;  %v1274_v25 = vshrl.u32 %v958_v14, 16  ;;  %v1522_v42 = vrot.slane %v959_v46, 5  ;;  %v1525_v60 = vrot.slane %v978_v49, 5  ;;  %7379 = vst [vmem:[#allocation14_spill] sm:$0xff] %v5337_v52 }
  0x68   : > { %v2141_v34 = vsel %vm4996_vm5, %v2139_v38, %v2140_v8  ;;  %v1277_v11 = vshll.u32 %v958_v14, 16  ;;  %v1283_v0 = vshll.u32 %v959_v46, 16  ;;  %v1287_v58 = vshrl.u32 %v959_v46, 16 }
  0x69   : > { %v4482_v51 = vcombine.low %v2138_v37, %v2141_v34  ;;  %v1276_v6 = vrot.slane %v1274_v25, 4  ;;  %v1523_v15 = vsel %vm4996_vm5, %v4353_v5, %v1522_v42  ;;  %v1524_v36 = vrot.slane %v1522_v42, 4 }
  0x6a   : > { %v1279_v47 = vrot.slane %v1277_v11, 5  ;;  %v1293_v16 = vshll.u32 %v978_v49, 16  ;;  %v1285_v48 = vrot.slane %v1283_v0, 5  ;;  %v1289_v22 = vrot.slane %v1287_v58, 4 }
  0x6b   : > { %3207 = vrot.lane.b32.xlu0 %v4482_v51, %s4896_s26  ;;  %v1526_v37 = vsel %vm4996_vm5, %v1524_v36, %v1525_v60  ;;  %v2511_v14 = vrot.slane %v2510_v39, 4  ;;  %v2513_v46 = vshll.u32 %v5337_v52, 16  ;;  %v2223_v5 = vrot.slane %v2222_v27, 4  ;;  %v960_v51 = vld [vmem:[#allocation2 + $0x9c] sm:$0xf] }
  0x6c   : > { %v1280_v34 = vor.u32 %v1279_v47, %v1276_v6  ;;  %v4433_v42 = vcombine.low %v1523_v15, %v1526_v37  ;;  %v1290_v11 = vor.u32 %v1289_v22, %v1285_v48  ;;  %v1295_v49 = vrot.slane %v1293_v16, 5 }
  0x6d   : > { %v2506_v58 = vsel %vm5032_vm10, %v2501_v28, %v2505_v9  ;;  %v2515_v25 = vrot.slane %v2513_v46, 5  ;;  %v1012_v38 = vrot.slane %v1010_v19, 4  ;;  %v1015_v17 = vrot.slane %v1013_v26, 5 }
  0x6e   : > { %v1281_v0 = vrot.slane %v1280_v34, 4  ;;  %2981 = vrot.lane.b32.xlu1 %v4433_v42, %s4895_s25  ;;  %v1291_v8 = vrot.slane %v1290_v11, 4  ;;  %v1019_v60 = vshll.u32 %v5212_v61, 16  ;;  %v1023_v6 = vshrl.u32 %v5212_v61, 16 }
  0x6f   : > { %v2516_v16 = vsel %vm5032_vm10, %v2511_v14, %v2515_v25  ;;  %v1029_v39 = vshll.u32 %v5235_v40, 16  ;;  %v1298_v27 = vshrl.u32 %v960_v51, 16  ;;  %v2228_v9 = vsel %vm5032_vm10, %v2223_v5, %v5323_v1  ;;  %v840_v14 = vld [vmem:[#allocation2 + $0x2c] sm:$0x1] }
  0x70   : > { %v1286_v47 = vsel %vm5032_vm10, %v1281_v0, %v1285_v48  ;;  %v1296_v28 = vsel %vm5032_vm10, %v1291_v8, %v1295_v49  ;;  %v1016_v19 = vor.u32 %v1015_v17, %v1012_v38  ;;  %v1021_v26 = vrot.slane %v1019_v60, 5 }
  0x71   : > { %v4417_v15 = vcombine.low %v1286_v47, %v1296_v28  ;;  %v4513_v61 = vcombine.low %v2506_v58, %v2516_v16  ;;  %v1025_v36 = vrot.slane %v1023_v6, 4  ;;  %v1031_v22 = vrot.slane %v1029_v39, 5  ;;  %v924_v58 = vld [vmem:[#allocation2 + $0xbc] sm:$0x1] }
  0x72   : > { %v7380_v48 = vcombine.low %v5281_v43, %v5290_v59  ;;  %v1300_v40 = vrot.slane %v1298_v27, 4  ;;  %v1301_v37 = vshll.u32 %v960_v51, 16  ;;  %v1307_v34 = vshll.u32 %v5258_v10, 16 }
  0x73   : > { %v1311_v8 = vshrl.u32 %v5258_v10, 16  ;;  %2901 = vrot.lane.b32.xlu0 %v4417_v15, %s4896_s26  ;;  %v1017_v17 = vrot.slane %v1016_v19, 4  ;;  %v1026_v1 = vor.u32 %v1025_v36, %v1021_v26  ;;  %v1317_v38 = vshll.u32 %v5265_v4, 16 }
  0x74   : > { %2959 = vrot.lane.b32.xlu1 %v7380_v48, %s4895_s25  ;;  %v546_v46 = vrot.slane %v5083_v44, 4  ;;  %v7381_v43 = vsel %vm5032_vm10, %v5299_v32, %v5310_v54  ;;  %v1303_v42 = vrot.slane %v1301_v37, 5  ;;  %v1309_v11 = vrot.slane %v1307_v34, 5  ;;  %v205_v37 = vld [vmem:[%s5006_s22 + $0x30] sm:$0xff] }
  0x75   : > { %v4501_v59 = vcombine.low %v7381_v43, %v2228_v9  ;;  %v1313_v49 = vrot.slane %v1311_v8, 4  ;;  %v1027_v5 = vrot.slane %v1026_v1, 4  ;;  %v1319_v10 = vrot.slane %v1317_v38, 5  ;;  %v5426_v38 = vld [vmem:[#allocation2 + $0xa8] sm:$0xf] }
  0x76   : > { %v841_v51 = vsel %vm5137_vm13, %v546_v46, %v840_v14  ;;  %v2239_v0 = vshll.u32 %v5112_v33, 16  ;;  %v7382_v44 = vcombine.low %v5294_v23, %v5308_v63  ;;  %v1304_v4 = vor.u32 %v1303_v42, %v1300_v40  ;;  %v5417_v40 = vld [vmem:[#allocation2 + $0x28] sm:$0xf]  ;;  %v1982_v46 = vld [vmem:[#allocation2 + $0x24] sm:$0xe] }
  0x77   : > { %v1314_v25 = vor.u32 %v1313_v49, %v1309_v11  ;;  %842 = vst [vmem:[#allocation2 + $0x2c] sm:$0x1] %v841_v51  ;;  %v7383_v32 = vshrl.u32 %v5112_v33, 16  ;;  %v750_v60 = vrot.slane %v5141_v56, 4  ;;  %3381 = vrot.lane.b32.xlu0 %v4513_v61, %s4897_s27  ;;  %v1022_v6 = vsel %vm5032_vm10, %v1017_v17, %v1021_v26  ;;  %v206_v49 = vld [vmem:[%s5006_s22 + $0x38] sm:$0xff]  ;;  %v4824_v14 = vld [vmem:[%s7300_s3 + $0x68] sm:$0xff]  }
  0x78   : > { %2983 = vrot.lane.b32.xlu1 %v7382_v44, %s4895_s25  ;;  %v1032_v47 = vsel %vm5032_vm10, %v1027_v5, %v1031_v22  ;;  %v5393_v16 = vrot.slane %v2239_v0, 5  ;;  %v2527_v23 = vshll.u32 %v5187_v20, 16  ;;  %v1305_v63 = vrot.slane %v1304_v4, 4 }
  0x79   : > { %v2245_v54 = vrot.slane %v7383_v32, 4  ;;  %v1315_v39 = vrot.slane %v1314_v25, 4  ;;  %v7384_v27 = vor.u32 %v5172_v57, %v5165_v50  ;;  %v925_v56 = vsel %vm5137_vm13, %v750_v60, %v924_v58  ;;  %v939_v60 = vld [vmem:[#allocation2 + $0x1c] sm:$0xf] }
  0x7a   : > { %926 = vst [vmem:[#allocation2 + $0xbc] sm:$0x1] %v925_v56  ;;  %v5403_v26 = vrot.slane %v2527_v23, 5  ;;  %v7385_v15 = vshrl.u32 %v5187_v20, 16  ;;  %v4406_v36 = vcombine.low %v1022_v6, %v1032_v47  ;;  %v1310_v50 = vsel %vm5032_vm10, %v1305_v63, %v1309_v11  ;;  %v938_v11 = vld [vmem:[#allocation2 + $0x18] sm:$0xf] }
  0x7b   : > { %v2237_v28 = vrot.slane %v7384_v27, 4  ;;  %v2246_v19 = vor.u32 %v2245_v54, %v5393_v16  ;;  %v1320_v57 = vsel %vm5032_vm10, %v1315_v39, %v1319_v10  ;;  %v7386_v22 = vor.u32 %v5223_v13, %v5216_v7  ;;  %v5455_v47 = vld [vmem:[%s7298_s1] ss:$0 sm:$0xff]  ;;  %v964_v20 = vld [vmem:[#allocation2 + $0xb4] sm:$0xf] }
  0x7c   : > { %v2533_v61 = vrot.slane %v7385_v15, 4  ;;  %3357 = vrot.lane.b32.xlu1 %v4501_v59, %s4897_s27  ;;  %v7387_v34 = vshrl.u32 %v5226_v18, 16  ;;  %v4418_v17 = vcombine.low %v1310_v50, %v1320_v57  ;;  %v7388_v7 = vor.u32 %v5255_v21, %v5248_v24  ;;  %v5465_v27 = vld [vmem:[#allocation2 + $0x20] sm:$0x1]  ;;  %v1371_v57 = vld [vmem:[#allocation2 + $0x18] sm:$0xe] }
  0x7d   : > { %v5415_v48 = vrot.slane %v7386_v22, 4  ;;  %v2242_v42 = vsel %vm5032_vm10, %v2237_v28, %v5393_v16  ;;  %v2247_v10 = vrot.slane %v2246_v19, 4  ;;  %v1909_v51 = vshrl.u32 %v5426_v38, 16  ;;  %v4812_v22 = vld [vmem:[%s7300_s3 + $0x40] sm:$0xff]  }
  0x7e   : > { %v5422_v8 = vrot.slane %v7387_v34, 4  ;;  %v2534_v1 = vor.u32 %v2533_v61, %v5403_v26  ;;  %v5431_v13 = vrot.slane %v7388_v7, 4  ;;  %2903 = vrot.lane.b32.xlu0 %v4418_v17, %s4896_s26  ;;  %v2190_v5 = vld [vmem:[#allocation2 + $0x2c] sm:$0x1]  ;;  %v1912_v21 = vshll.u32 %v5426_v38, 16  ;;  %4603 = vmatprep.subr.bf16.mxu0 %v4812_v22 }
  0x7f   : > { %v2060_v24 = vrot.slane %v5417_v40, 5  ;;  %v2249_v0 = vshll.u32 %v2190_v5, 16  ;;  %v2665_v58 = vrot.slane %v2190_v5, 5  ;;  %v2530_v44 = vsel %vm5032_vm10, %v5415_v48, %v5403_v26  ;;  %v5448_v4 = vld [vmem:[#allocation2 + $0x2c] sm:$0x1]  ;;  %4769 = vmatprep.subr.bf16.mxu1 %v4812_v22 }
  0x80   : > { %2879 = vrot.lane.b32.xlu1 %v4406_v36, %s4896_s26  ;;  %7389 = vst [vmem:[#allocation15_spill] sm:$0xff] %v5448_v4  ;;  %v4359_v25 = vrot.slane %v1982_v46, 9  ;;  %v2535_v32 = vrot.slane %v2534_v1, 4  ;;  %v4450_v54 = vcombine.low %v5426_v38, %v5263_v30  ;;  %v1034_v6 = vshrl.u32 %v938_v11, 16  ;;  %v4813_v1 = vld [vmem:[%s7300_s3] sm:$0xff]   ;;  %v4817_v38 = vld [vmem:[%s7300_s3 + $0x50] sm:$0xff]  }
  0x81   : > { %v244_v16 = vmul.f32 %v5455_v47, %v205_v37  ;;  %v2251_v23 = vrot.slane %v2249_v0, 5  ;;  %v5461_v63 = vsel %vm4996_vm5, %v5170_v55, %v2665_v58  ;;  %v5463_v39 = vld [vmem:[#allocation2 + $0xbc] sm:$0x1]  ;;  %v1037_v30 = vshll.u32 %v938_v11, 16  ;;  %v5484_v11 = vld [vmem:[%s7299_s2] ss:$0 sm:$0xff]  ;;  %4604 = vmatpush3.bf16.msra.mxu0 %v4813_v1  ;;  %4777 = vmatpush3.bf16.msra.mxu1 %v4813_v1 }
  0x82   : > { %7390 = vst [vmem:[#allocation16_spill] sm:$0xff] %v5461_v63  ;;  %7391 = vst [vmem:[#allocation17_spill] sm:$0xff] %v5463_v39  ;;  %v245_v28 = vmul.f32 %v5455_v47, %v206_v49  ;;  %v2537_v56 = vshll.u32 %v5463_v39, 16  ;;  %v2062_v19 = vrot.slane %v2060_v24, 4  ;;  %v2063_v26 = vrot.slane %v5448_v4, 5 }
  0x83   : > { %v1036_v15 = vrot.slane %v1034_v6, 4  ;;  %v2252_v61 = vsel %vm5032_vm10, %v2247_v10, %v2251_v23  ;;  %v2061_v55 = vsel %vm4996_vm5, %v4359_v25, %v2060_v24  ;;  %v1039_v36 = vrot.slane %v1037_v30, 5  ;;  %v962_v22 = vld [vmem:[#allocation2 + $0xa8] sm:$0xf] }
  0x84   : > { %v1043_v50 = vshll.u32 %v939_v60, 16  ;;  %v4502_v48 = vcombine.low %v2242_v42, %v2252_v61  ;;  %v2539_v37 = vrot.slane %v2537_v56, 5  ;;  %v1047_v34 = vshrl.u32 %v939_v60, 16 }
  0x85   : > { %v1053_v17 = vshll.u32 %v5465_v27, 16  ;;  %v1040_v46 = vor.u32 %v1039_v36, %v1036_v15  ;;  %v283_v49 = vadd.f32 %v5484_v11, %v244_v16  ;;  %v284_v5 = vadd.f32 %v5484_v11, %v245_v28  ;;  %v4814_v16 = vld [vmem:[%s7300_s3 + $0x48] sm:$0xff]  }
  0x86   : > { %v1045_v7 = vrot.slane %v1043_v50, 5  ;;  %3359 = vrot.lane.b32.xlu1 %v4502_v48, %s4897_s27  ;;  %v2540_v42 = vsel %vm5032_vm10, %v2535_v32, %v2539_v37  ;;  %v2064_v10 = vsel %vm4996_vm5, %v2062_v19, %v2063_v26  ;;  %v1049_v24 = vrot.slane %v1047_v34, 4  ;;  %v4815_v19 = vld [vmem:[%s7300_s3 + $0x8] sm:$0xff]   ;;  %4605 = vmatprep.subr.bf16.mxu0 %v4814_v16  ;;  %v927_v26 = vld [vmem:[#allocation2 + $0xc0] sm:$0xf] }
  0x87   : > { %v4343_v0 = vrot.slane %v1371_v57, 9  ;;  %v4514_v58 = vcombine.low %v2530_v44, %v2540_v42  ;;  %v1041_v25 = vrot.slane %v1040_v46, 4  ;;  %v315_v6 = vmax.f32 %v283_v49, 0.0  ;;  %v5507_v57 = vld [vmem:[#allocation2 + $0xb8] sm:$0xf]  ;;  %4606 = vmatpush3.bf16.msra.mxu0 %v4815_v19  ;;  %4770 = vmatprep.subr.bf16.mxu1 %v4814_v16 }
  0x88   : > { %v316_v23 = vmax.f32 %v284_v5, 0.0  ;;  %v1050_v30 = vor.u32 %v1049_v24, %v1045_v7  ;;  %v1055_v28 = vrot.slane %v1053_v17, 5  ;;  %v1452_v56 = vrot.slane %v939_v60, 5  ;;  %v5509_v17 = vld [vmem:[#allocation2 + $0xac] sm:$0xf]  ;;  %4778 = vmatpush3.bf16.msra.mxu1 %v4815_v19  ;;  %v229_v19 = vld [vmem:[%s5006_s22 + $0xf0] sm:$0xff]  ;;  %4607 = vmatprep.subr.bf16.mxu0 %v4817_v38 }
  0x89   : > { %v1455_v32 = vrot.slane %v5465_v27, 5  ;;  %3383 = vrot.lane.b32.xlu0 %v4514_v58, %s4897_s27  ;;  %v4471_v44 = vcombine.low %v2061_v55, %v2064_v10  ;;  %v4577_v15 = vpack.c.bf16 %v315_v6, %v315_v6  ;;  %v1046_v36 = vsel %vm5032_vm10, %v1041_v25, %v1045_v7  ;;  %v843_v7 = vld [vmem:[#allocation2 + $0x30] sm:$0xf]  ;;  %v847_v5 = vld [vmem:[#allocation2 + $0x38] sm:$0x1]  ;;  %4771 = vmatprep.subr.bf16.mxu1 %v4817_v38 }
  0x8a   : > { %v4578_v61 = vpack.c.bf16 %v316_v23, %v316_v23  ;;  %3079 = vrot.lane.b32.xlu1 %v4450_v54, %s4897_s27  ;;  %v1051_v60 = vrot.slane %v1050_v30, 4  ;;  %v1453_v27 = vsel %vm4996_vm5, %v4343_v0, %v1452_v56  ;;  %v1454_v50 = vrot.slane %v1452_v56, 4  ;;  %v1994_v58 = vld [vmem:[#allocation2 + $0xb4] sm:$0xe]  ;;  %v5529_v56 = vld [vmem:[#allocation2 + $0xbc] sm:$0x1] }
  0x8b   : > { %v548_v48 = vshrl.u32 %v4577_v15, 16  ;;  %v551_v37 = vshll.u32 %v4577_v15, 16  ;;  %v1911_v54 = vrot.slane %v1909_v51, 4  ;;  %v1914_v1 = vrot.slane %v1912_v21, 5  ;;  %v4818_v21 = vld [vmem:[%s7300_s3 + $0x10] sm:$0xff]   ;;  %7392 = vst [vmem:[#allocation18_spill] sm:$0xff] %v5529_v56 }
  0x8c   : > { %v556_v55 = vshrl.u32 %v4578_v61, 16  ;;  %v559_v34 = vshll.u32 %v4578_v61, 16  ;;  %v1056_v46 = vsel %vm5032_vm10, %v1051_v60, %v1055_v28  ;;  %v1456_v49 = vsel %vm4996_vm5, %v1454_v50, %v1455_v32  ;;  %v5533_v61 = vld [vmem:[#allocation2 + $0xb0] sm:$0x1]  ;;  %4608 = vmatpush3.bf16.msra.mxu0 %v4818_v21  ;;  %4779 = vmatpush3.bf16.msra.mxu1 %v4818_v21 }
  0x8d   : > { %3185 = vrot.lane.b32.xlu0 %v4471_v44, %s4896_s26  ;;  %v4407_v42 = vcombine.low %v1046_v36, %v1056_v46  ;;  %v550_v10 = vrot.slane %v548_v48, 7  ;;  %v2144_v51 = vrot.slane %v5507_v57, 5  ;;  %v4423_v0 = vcombine.low %v1453_v27, %v1456_v49  ;;  %v230_v27 = vld [vmem:[%s5006_s22 + $0xf8] sm:$0xff]  ;;  %v5549_v49 = vld [vmem:[#allocation2 + $0x24] sm:$0xf] }
  0x8e   : > { %v558_v24 = vrot.slane %v556_v55, 7  ;;  %v1322_v25 = vshrl.u32 %v962_v22, 16  ;;  %v1325_v6 = vshll.u32 %v962_v22, 16  ;;  %v1331_v23 = vshll.u32 %v5509_v17, 16  ;;  %v5603_v44 = vld [vmem:[#allocation2 + $0xb4] sm:$0xf] }
  0x8f   : > { %2881 = vrot.lane.b32.xlu1 %v4407_v42, %s4896_s26  ;;  %v553_v16 = vor.u32 %v551_v37, %v550_v10  ;;  %v554_v30 = vrot.slane %v550_v10, 4  ;;  %v1915_v15 = vor.u32 %v1914_v1, %v1911_v54  ;;  %v4371_v48 = vrot.slane %v1994_v58, 9 }
  0x90   : > { %v561_v28 = vor.u32 %v559_v34, %v558_v24  ;;  %v563_v32 = vrot.slane %v558_v24, 4  ;;  %v1324_v36 = vrot.slane %v1322_v25, 4  ;;  %v1327_v60 = vrot.slane %v1325_v6, 5 }
  0x91   : > { %v844_v22 = vsel %vm5047_vm11, %v553_v16, %v843_v7  ;;  %v2146_v55 = vrot.slane %v2144_v51, 4  ;;  %v2147_v34 = vrot.slane %v5529_v56, 5  ;;  %v5544_v54 = vrot.slane %v1331_v23, 5  ;;  %v1383_v23 = vld [vmem:[#allocation2 + $0xa8] sm:$0xe]  ;;  %v4819_v16 = vld [vmem:[%s7300_s3 + $0x58] sm:$0xff]  }
  0x92   : > { %v562_v50 = vsel %vm5058_vm12, %v554_v30, %v561_v28  ;;  %v848_v37 = vsel %vm5137_vm13, %v563_v32, %v847_v5  ;;  %845 = vst [vmem:[#allocation2 + $0x30] sm:$0xf] %v844_v22  ;;  %v1335_v1 = vshrl.u32 %v5509_v17, 16  ;;  %v1328_v46 = vor.u32 %v1327_v60, %v1324_v36  ;;  %4609 = vmatprep.subr.bf16.mxu0 %v4819_v16 }
  0x93   : > { %846 = vst.msk [vmem:[#allocation2 + $0x34] sm:$0xf] %vm341_vm0, %v562_v50  ;;  %849 = vst [vmem:[#allocation2 + $0x38] sm:$0x1] %v848_v37  ;;  %2961 = vrot.lane.b32.xlu1 %v4423_v0, %s4895_s25  ;;  %v1341_v7 = vshll.u32 %v5533_v61, 16  ;;  %v268_v5 = vmul.f32 %v5455_v47, %v229_v19  ;;  %v269_v42 = vmul.f32 %v5455_v47, %v230_v27  ;;  %v1645_v38 = vshrl.u32 %v5549_v49, 16 }
  0x94   : > { %v1337_v24 = vrot.slane %v1335_v1, 4  ;;  %v1648_v21 = vshll.u32 %v5549_v49, 16  ;;  %v5557_v25 = vrot.slane %v1915_v15, 4  ;;  %v2145_v28 = vsel %vm4996_vm5, %v4371_v48, %v2144_v51  ;;  %v4820_v15 = vld [vmem:[%s7300_s3 + $0x18] sm:$0xff]   ;;  %4772 = vmatprep.subr.bf16.mxu1 %v4819_v16 }
  0x95   : > { %v307_v0 = vadd.f32 %v5484_v11, %v268_v5  ;;  %v308_v6 = vadd.f32 %v5484_v11, %v269_v42  ;;  %v2148_v32 = vsel %vm4996_vm5, %v2146_v55, %v2147_v34  ;;  %v1329_v36 = vrot.slane %v1328_v46, 4  ;;  %4610 = vmatpush3.bf16.msra.mxu0 %v4820_v15  ;;  %4780 = vmatpush3.bf16.msra.mxu1 %v4820_v15 }
  0x96   : > { %v1338_v19 = vor.u32 %v1337_v24, %v5544_v54  ;;  %v1343_v60 = vrot.slane %v1341_v7, 5  ;;  %v5573_v37 = vrot.slane %v1645_v38, 4  ;;  %v5575_v1 = vrot.slane %v1648_v21, 5 }
  0x97   : > { %v339_v27 = vmax.f32 %v307_v0, 0.0  ;;  %v340_v50 = vmax.f32 %v308_v6, 0.0  ;;  %v4355_v51 = vrot.slane %v1383_v23, 9  ;;  %v4483_v34 = vcombine.low %v2145_v28, %v2148_v32  ;;  %v4821_v28 = vld [vmem:[%s7300_s3 + $0x60] sm:$0xff]  }
  0x98   : > { %v1339_v22 = vrot.slane %v1338_v19, 4  ;;  %v4439_v46 = vcombine.low %v5549_v49, %v5417_v40  ;;  %v1334_v16 = vsel %vm5032_vm10, %v1329_v36, %v5544_v54  ;;  %v1539_v36 = vrot.slane %v5533_v61, 5  ;;  %4611 = vmatprep.subr.bf16.mxu0 %v4821_v28  ;;  %4773 = vmatprep.subr.bf16.mxu1 %v4821_v28 }
  0x99   : > { %v2161_v48 = vld [vmem:[#allocation2 + $0x30] sm:$0xf]  ;;  %v4601_v7 = vpack.c.bf16 %v339_v27, %v339_v27  ;;  %v4602_v0 = vpack.c.bf16 %v340_v50, %v340_v50  ;;  %v1536_v27 = vrot.slane %v5509_v17, 5  ;;  %v4822_v50 = vld [vmem:[%s7300_s3 + $0x20] sm:$0xff]   ;;  %vm3519_vm1 = vcmask 785408  }
  0x9a   : > { %v5577_v55 = vld [vmem:[#allocation2 + $0x34] sm:$0xf]  ;;  %v5579_v5 = vld [vmem:[#allocation2 + $0x38] sm:$0x1]  ;;  %v2254_v42 = vshrl.u32 %v2161_v48, 16  ;;  %v2257_v24 = vshll.u32 %v2161_v48, 16  ;;  %v1344_v58 = vsel %vm5032_vm10, %v1339_v22, %v1343_v60  ;;  %4612 = vmatpush3.bf16.msra.mxu0 %v4822_v50  ;;  %4781 = vmatpush3.bf16.msra.mxu1 %v4822_v50 }
  0x9b   : > { %7393 = vst [vmem:[#allocation19_spill] sm:$0xff] %v5577_v55  ;;  %7394 = vst [vmem:[#allocation20_spill] sm:$0xff] %v5579_v5  ;;  %v2267_v38 = vshrl.u32 %v5577_v55, 16  ;;  %v4487_v21 = vcombine.low %v2161_v48, %v5577_v55  ;;  %v2263_v6 = vshll.u32 %v5577_v55, 16  ;;  %v2273_v23 = vshll.u32 %v5579_v5, 16  ;;  %4613 = vmatprep.subr.bf16.mxu0 %v4824_v14  ;;  %4774 = vmatprep.subr.bf16.mxu1 %v4824_v14 }
  0x9c   : > { %v2256_v32 = vrot.slane %v2254_v42, 4  ;;  %v2259_v19 = vrot.slane %v2257_v24, 5  ;;  %v752_v24 = vshrl.u32 %v4601_v7, 16  ;;  %v755_v17 = vshll.u32 %v4601_v7, 16 }
  0x9d   : > { %v2269_v15 = vrot.slane %v2267_v38, 4  ;;  %3281 = vrot.lane.b32.xlu0 %v4487_v21, %s4895_s25  ;;  %v2265_v48 = vrot.slane %v2263_v6, 5  ;;  %v760_v38 = vshrl.u32 %v4602_v0, 16  ;;  %v2275_v6 = vrot.slane %v2273_v23, 5 }
  0x9e   : > { %v2260_v42 = vor.u32 %v2259_v19, %v2256_v32  ;;  %v763_v59 = vshll.u32 %v4602_v0, 16  ;;  %v1933_v60 = vshrl.u32 %v5603_v44, 16  ;;  %v754_v30 = vrot.slane %v752_v24, 7  ;;  %v207_v32 = vld [vmem:[%s5006_s22 + $0x40] sm:$0xff]  ;;  %v931_v24 = vld [vmem:[#allocation2 + $0xc8] sm:$0x1] }
  0x9f   : > { %v2270_v21 = vor.u32 %v2269_v15, %v2265_v48  ;;  %v762_v10 = vrot.slane %v760_v38, 7  ;;  %v5608_v61 = vsel %vm4996_vm5, %v4355_v51, %v1536_v27  ;;  %v4419_v19 = vcombine.low %v1334_v16, %v1344_v58  ;;  %v940_v58 = vld [vmem:[#allocation2 + $0x24] sm:$0xf]  ;;  %v5619_v16 = vld [vmem:[#allocation2 + $0x28] sm:$0xf] }
  0xa0   : > { %v2261_v22 = vrot.slane %v2260_v42, 4  ;;  %v1538_v28 = vrot.slane %v1536_v27, 4  ;;  %v1936_v23 = vshll.u32 %v5603_v44, 16  ;;  %v757_v15 = vor.u32 %v755_v17, %v754_v30  ;;  %v5627_v17 = vld [vmem:[#allocation2 + $0x34] sm:$0xf] }
  0xa1   : > { %3209 = vrot.lane.b32.xlu0 %v4483_v34, %s4896_s26  ;;  %v2271_v7 = vrot.slane %v2270_v21, 4  ;;  %v758_v50 = vrot.slane %v754_v30, 4  ;;  %v765_v42 = vor.u32 %v763_v59, %v762_v10  ;;  %v767_v38 = vrot.slane %v762_v10, 4  ;;  %v5629_v10 = vld [vmem:[#allocation2 + $0x2c] sm:$0x1] }
  0xa2   : > { %v2266_v0 = vsel %vm5032_vm10, %v2261_v22, %v2265_v48  ;;  %v246_v27 = vmul.f32 %v5455_v47, %v207_v32  ;;  %v928_v59 = vsel %vm5047_vm11, %v757_v15, %v927_v26  ;;  %v1540_v22 = vsel %vm4996_vm5, %v1538_v28, %v1539_v36  ;;  %v1983_v26 = vld [vmem:[#allocation2 + $0x30] sm:$0xe] }
  0xa3   : > { %v2276_v51 = vsel %vm5032_vm10, %v2271_v7, %v2275_v6  ;;  %v766_v30 = vsel %vm5058_vm12, %v758_v50, %v765_v42  ;;  %v208_v6 = vld [vmem:[%s5006_s22 + $0x48] sm:$0xff]  ;;  %929 = vst [vmem:[#allocation2 + $0xc0] sm:$0xf] %v928_v59  ;;  %v932_v32 = vsel %vm5137_vm13, %v767_v38, %v931_v24  ;;  %v5638_v7 = vrot.slane %v1933_v60, 4  ;;  %v1372_v24 = vld [vmem:[#allocation2 + $0x24] sm:$0xe] }
  0xa4   : > { %v4503_v48 = vcombine.low %v2266_v0, %v2276_v51  ;;  %930 = vst.msk [vmem:[#allocation2 + $0xc4] sm:$0xf] %vm341_vm0, %v766_v30  ;;  %v5640_v0 = vrot.slane %v1936_v23, 5  ;;  %933 = vst [vmem:[#allocation2 + $0xc8] sm:$0x1] %v932_v32  ;;  %v1058_v15 = vshrl.u32 %v940_v58, 16  ;;  %v247_v60 = vmul.f32 %v5455_v47, %v208_v6 }
  0xa5   : > { %2905 = vrot.lane.b32.xlu0 %v4419_v19, %s4896_s26  ;;  %v1061_v50 = vshll.u32 %v940_v58, 16  ;;  %v1067_v19 = vshll.u32 %v5619_v16, 16  ;;  %v1071_v42 = vshrl.u32 %v5619_v16, 16  ;;  %v5645_v51 = vld [vmem:[#allocation2 + $0x38] sm:$0x1]  ;;  %v2067_v36 = vrot.slane %v5627_v17, 5 }
  0xa6   : > { %3361 = vrot.lane.b32.xlu1 %v4503_v48, %s4897_s27  ;;  %7395 = vst [vmem:[#allocation21_spill] sm:$0xff] %v5645_v51  ;;  %v1077_v28 = vshll.u32 %v5629_v10, 16  ;;  %v285_v23 = vadd.f32 %v5484_v11, %v246_v27  ;;  %v4360_v38 = vrot.slane %v1983_v26, 9  ;;  %v1060_v48 = vrot.slane %v1058_v15, 4  ;;  %v4825_v6 = vld [vmem:[%s7300_s3 + $0x28] sm:$0xff]  }
  0xa7   : > { %v1063_v30 = vrot.slane %v1061_v50, 5  ;;  %v1069_v59 = vrot.slane %v1067_v19, 5  ;;  %v4435_v58 = vcombine.low %v5608_v61, %v1540_v22  ;;  %v1073_v32 = vrot.slane %v1071_v42, 4  ;;  %4614 = vmatpush3.bf16.msra.mxu0 %v4825_v6  ;;  %4782 = vmatpush3.bf16.msra.mxu1 %v4825_v6 }
  0xa8   : > { %v286_v21 = vadd.f32 %v5484_v11, %v247_v60  ;;  %v317_v43 = vmax.f32 %v285_v23, 0.0  ;;  %v2070_v27 = vrot.slane %v5645_v51, 5  ;;  %v4344_v26 = vrot.slane %v1372_v24, 9 }
  0xa9   : > { %v1064_v22 = vor.u32 %v1063_v30, %v1060_v48  ;;  %v2069_v15 = vrot.slane %v2067_v36, 4  ;;  %v1079_v50 = vrot.slane %v1077_v28, 5  ;;  %v1459_v19 = vrot.slane %v5619_v16, 5 }
  0xaa   : > { %3057 = vrot.lane.b32.xlu1 %v4439_v46, %s4897_s27  ;;  %v1462_v42 = vrot.slane %v5629_v10, 5  ;;  %v2185_v60 = vld [vmem:[#allocation2 + $0xc0] sm:$0xf]  ;;  %v5672_v40 = vsel %vm4996_vm5, %v4360_v38, %v2067_v36  ;;  %v1074_v46 = vor.u32 %v1073_v32, %v1069_v59  ;;  %v318_v9 = vmax.f32 %v286_v21, 0.0 }
  0xab   : > { %v5668_v23 = vld [vmem:[#allocation2 + $0xc4] sm:$0xf]  ;;  %v1065_v49 = vrot.slane %v1064_v22, 4  ;;  %v2542_v24 = vshrl.u32 %v2185_v60, 16  ;;  %v2545_v28 = vshll.u32 %v2185_v60, 16  ;;  %v4579_v10 = vpack.c.bf16 %v317_v43, %v317_v43 }
  0xac   : > { %7396 = vst [vmem:[#allocation22_spill] sm:$0xff] %v5668_v23  ;;  %v2555_v16 = vshrl.u32 %v5668_v23, 16  ;;  %v5675_v48 = vld [vmem:[#allocation2 + $0xc8] sm:$0x1]  ;;  %v4499_v14 = vcombine.low %v2185_v60, %v5668_v23  ;;  %v2551_v30 = vshll.u32 %v5668_v23, 16  ;;  %v5683_v21 = vsel %vm4996_vm5, %v4344_v26, %v1459_v19  ;;  %v4826_v26 = vld [vmem:[%s7300_s3 + $0x70] sm:$0xff]  }
  0xad   : > { %7397 = vst [vmem:[#allocation23_spill] sm:$0xff] %v5675_v48  ;;  %v2561_v36 = vshll.u32 %v5675_v48, 16  ;;  %v2544_v38 = vrot.slane %v2542_v24, 4  ;;  %v2547_v32 = vrot.slane %v2545_v28, 5  ;;  %v1461_v22 = vrot.slane %v1459_v19, 4  ;;  %v4827_v28 = vld [vmem:[%s7300_s3 + $0x30] sm:$0xff]   ;;  %4615 = vmatprep.subr.bf16.mxu0 %v4826_v26  ;;  %4775 = vmatprep.subr.bf16.mxu1 %v4826_v26 }
  0xae   : > { %2985 = vrot.lane.b32.xlu1 %v4435_v58, %s4895_s25  ;;  %v2557_v6 = vrot.slane %v2555_v16, 4  ;;  %3305 = vrot.lane.b32.xlu0 %v4499_v14, %s4895_s25  ;;  %v2553_v61 = vrot.slane %v2551_v30, 5  ;;  %v1070_v43 = vsel %vm5032_vm10, %v1065_v49, %v1069_v59  ;;  %v1075_v60 = vrot.slane %v1074_v46, 4  ;;  %v5697_v46 = vld [vmem:[#allocation2 + $0xc4] sm:$0xf]  ;;  %v4829_v26 = vld [vmem:[%s7300_s3 + $0x38] sm:$0xff]  }
  0xaf   : > { %v4580_v58 = vpack.c.bf16 %v318_v9, %v318_v9  ;;  %v2548_v54 = vor.u32 %v2547_v32, %v2544_v38  ;;  %v2563_v34 = vrot.slane %v2561_v36, 5  ;;  %v565_v39 = vshrl.u32 %v4579_v10, 16  ;;  %v850_v30 = vld [vmem:[#allocation2 + $0x3c] sm:$0xf]  ;;  %v1995_v38 = vld [vmem:[#allocation2 + $0xc0] sm:$0xe]  ;;  %4616 = vmatpush3.bf16.msra.mxu0 %v4827_v28  ;;  %4783 = vmatpush3.bf16.msra.mxu1 %v4827_v28 }
  0xb0   : > { %v568_v52 = vshll.u32 %v4579_v10, 16  ;;  %v2558_v24 = vor.u32 %v2557_v6, %v2553_v61  ;;  %v7398_v19 = vcombine.low %v5603_v44, %v5507_v57  ;;  %v1080_v59 = vsel %vm5032_vm10, %v1075_v60, %v1079_v50  ;;  %v854_v60 = vld [vmem:[#allocation2 + $0x44] sm:$0x1] }
  0xb1   : > { %v573_v49 = vshrl.u32 %v4580_v58, 16  ;;  %v576_v9 = vshll.u32 %v4580_v58, 16  ;;  %v2549_v16 = vrot.slane %v2548_v54, 4  ;;  %v4408_v10 = vcombine.low %v1070_v43, %v1080_v59  ;;  %v5716_v58 = vld [vmem:[#allocation2 + $0xc8] sm:$0x1] }
  0xb2   : > { %3081 = vrot.lane.b32.xlu1 %v7398_v19, %s4897_s27  ;;  %v567_v14 = vrot.slane %v565_v39, 7  ;;  %v1463_v36 = vsel %vm4996_vm5, %v1461_v22, %v1462_v42  ;;  %v2559_v57 = vrot.slane %v2558_v24, 4  ;;  %v2071_v44 = vsel %vm4996_vm5, %v2069_v15, %v2070_v27  ;;  %v4828_v42 = vld [vmem:[%s7300_s3 + $0x78] sm:$0xff]   ;;  %7399 = vst [vmem:[#allocation24_spill] sm:$0xff] %v5716_v58 }
  0xb3   : > { %v575_v50 = vrot.slane %v573_v49, 7  ;;  %v1346_v32 = vshrl.u32 %v964_v20, 16  ;;  %v2554_v54 = vsel %vm5032_vm10, %v2549_v16, %v2553_v61  ;;  %v2151_v43 = vrot.slane %v5697_v46, 5  ;;  %v5726_v49 = vld [vmem:[#allocation2 + $0xbc] sm:$0x1]  ;;  %4617 = vmatprep.subr.bf16.mxu0 %v4828_v42  ;;  %4776 = vmatprep.subr.bf16.mxu1 %v4828_v42 }
  0xb4   : > { %v570_v6 = vor.u32 %v568_v52, %v567_v14  ;;  %v571_v39 = vrot.slane %v567_v14, 4  ;;  %v2564_v27 = vsel %vm5032_vm10, %v2559_v57, %v2563_v34  ;;  %v4424_v22 = vcombine.low %v5683_v21, %v1463_v36  ;;  %v5718_v52 = vld [vmem:[#allocation2 + $0xb8] sm:$0xf]  ;;  %4618 = vmatpush3.bf16.msra.mxu0 %v4829_v26  ;;  %4784 = vmatpush3.bf16.msra.mxu1 %v4829_v26  ;;  %v5782_v57 = vld [vmem:[#allocation2 + $0xd4] sm:$0x1] }
  0xb5   : > { %v578_v15 = vor.u32 %v576_v9, %v575_v50  ;;  %v580_v61 = vrot.slane %v575_v50, 4  ;;  %v4515_v24 = vcombine.low %v2554_v54, %v2564_v27  ;;  %v4472_v19 = vcombine.low %v5672_v40, %v2071_v44  ;;  %7407 = vst [vmem:[#allocation30_spill] sm:$0xff] %v5782_v57 }
  0xb6   : > { %2883 = vrot.lane.b32.xlu1 %v4408_v10, %s4896_s26  ;;  %v851_v34 = vsel %vm5047_vm11, %v570_v6, %v850_v30  ;;  %v4372_v59 = vrot.slane %v1995_v38, 9  ;;  %v1348_v28 = vrot.slane %v1346_v32, 4  ;;  %v1349_v16 = vshll.u32 %v964_v20, 16  ;;  %v5732_v10 = vld [vmem:[#allocation2 + $0xcc] sm:$0xf] }
  0xb7   : > { %v579_v21 = vsel %vm5058_vm12, %v571_v39, %v578_v15  ;;  %852 = vst [vmem:[#allocation2 + $0x3c] sm:$0xf] %v851_v34  ;;  %v855_v9 = vsel %vm5137_vm13, %v580_v61, %v854_v60  ;;  %3385 = vrot.lane.b32.xlu0 %v4515_v24, %s4897_s27  ;;  %v2153_v40 = vrot.slane %v2151_v43, 4  ;;  %v2154_v14 = vrot.slane %v5716_v58, 5  ;;  %v5762_v24 = vld [vmem:[#allocation2 + $0x30] sm:$0xf] }
  0xb8   : > { %853 = vst.msk [vmem:[#allocation2 + $0x40] sm:$0xf] %vm341_vm0, %v579_v21  ;;  %856 = vst [vmem:[#allocation2 + $0x44] sm:$0x1] %v855_v9  ;;  %v1355_v30 = vshll.u32 %v5718_v52, 16  ;;  %v1359_v36 = vshrl.u32 %v5718_v52, 16  ;;  %v7400_v20 = vor.u32 %v5575_v1, %v5573_v37  ;;  %v7402_v42 = vor.u32 %v5640_v0, %v5638_v7 }
  0xb9   : > { %v1351_v50 = vrot.slane %v1349_v16, 5  ;;  %v1365_v38 = vshll.u32 %v5726_v49, 16  ;;  %v2566_v39 = vshrl.u32 %v5732_v10, 16  ;;  %v2569_v1 = vshll.u32 %v5732_v10, 16  ;;  %v5767_v9 = vld [vmem:[#allocation2 + $0xd0] sm:$0xf] }
  0xba   : > { %v5743_v44 = vrot.slane %v7400_v20, 4  ;;  %2963 = vrot.lane.b32.xlu1 %v4424_v22, %s4895_s25  ;;  %v1357_v54 = vrot.slane %v1355_v30, 5  ;;  %v1361_v6 = vrot.slane %v1359_v36, 4  ;;  %v5753_v27 = vrot.slane %v7402_v42, 4  ;;  %7404 = vst [vmem:[#allocation27_spill] sm:$0xff] %v5767_v9 }
  0xbb   : > { %v1352_v37 = vor.u32 %v1351_v50, %v1348_v28  ;;  %3187 = vrot.lane.b32.xlu0 %v4472_v19, %s4896_s26  ;;  %v2152_v22 = vsel %vm4996_vm5, %v4372_v59, %v2151_v43  ;;  %v2155_v61 = vsel %vm4996_vm5, %v2153_v40, %v2154_v14  ;;  %v1367_v0 = vrot.slane %v1365_v38, 5  ;;  %v1384_v15 = vld [vmem:[#allocation2 + $0xb4] sm:$0xe]  ;;  %v4844_v58 = vld [vmem:[#allocation2] sm:$0xf] }
  0xbc   : > { %7401 = vst [vmem:[#allocation25_spill] sm:$0xff] %v5743_v44  ;;  %7403 = vst [vmem:[#allocation26_spill] sm:$0xff] %v5753_v27  ;;  %v1362_v26 = vor.u32 %v1361_v6, %v1357_v54  ;;  %v1669_v34 = vshrl.u32 %v5762_v24, 16  ;;  %v1672_v21 = vshll.u32 %v5762_v24, 16  ;;  %v2568_v30 = vrot.slane %v2566_v39, 4 }
  0xbd   : > { %v1353_v19 = vrot.slane %v1352_v37, 4  ;;  %v2571_v43 = vrot.slane %v2569_v1, 5  ;;  %v4484_v36 = vcombine.low %v2152_v22, %v2155_v61  ;;  %v2579_v42 = vshrl.u32 %v5767_v9, 16 }
  0xbe   : > { %v2163_v28 = vld [vmem:[#allocation2 + $0x3c] sm:$0xf]  ;;  %v1363_v16 = vrot.slane %v1362_v26, 4  ;;  %v1543_v1 = vrot.slane %v5718_v52, 5  ;;  %v5780_v60 = vrot.slane %v1669_v34, 4  ;;  %v1546_v52 = vrot.slane %v5726_v49, 5 }
  0xbf   : > { %v5769_v59 = vld [vmem:[#allocation2 + $0x40] sm:$0xf]  ;;  %v2278_v40 = vshrl.u32 %v2163_v28, 16  ;;  %v2281_v14 = vshll.u32 %v2163_v28, 16  ;;  %v5771_v20 = vld [vmem:[#allocation2 + $0x44] sm:$0x1]  ;;  %v1358_v32 = vsel %vm5032_vm10, %v1353_v19, %v1357_v54 }
  0xc0   : > { %7405 = vst [vmem:[#allocation28_spill] sm:$0xff] %v5769_v59  ;;  %7406 = vst [vmem:[#allocation29_spill] sm:$0xff] %v5771_v20  ;;  %v2291_v50 = vshrl.u32 %v5769_v59, 16  ;;  %v4488_v38 = vcombine.low %v2163_v28, %v5769_v59  ;;  %v2287_v6 = vshll.u32 %v5769_v59, 16  ;;  %v2297_v39 = vshll.u32 %v5771_v20, 16 }
  0xc1   : > { %v2280_v37 = vrot.slane %v2278_v40, 4  ;;  %v2283_v26 = vrot.slane %v2281_v14, 5  ;;  %v2572_v28 = vor.u32 %v2571_v43, %v2568_v30  ;;  %v1368_v40 = vsel %vm5032_vm10, %v1363_v16, %v1367_v0  ;;  %v5792_v0 = vld [vmem:[#allocation2 + $0x34] sm:$0xf] }
  0xc2   : > { %3283 = vrot.lane.b32.xlu0 %v4488_v38, %s4895_s25  ;;  %v2289_v22 = vrot.slane %v2287_v6, 5  ;;  %v2293_v61 = vrot.slane %v2291_v50, 4  ;;  %v4356_v14 = vrot.slane %v1384_v15, 9  ;;  %v2299_v23 = vrot.slane %v2297_v39, 5 }
  0xc3   : > { %v2284_v7 = vor.u32 %v2283_v26, %v2280_v37  ;;  %v2575_v38 = vshll.u32 %v5767_v9, 16  ;;  %v1545_v34 = vrot.slane %v1543_v1, 4  ;;  %v2581_v6 = vrot.slane %v2579_v42, 4  ;;  %v942_v37 = vld [vmem:[#allocation2 + $0x30] sm:$0xf] }
  0xc4   : > { %v2294_v48 = vor.u32 %v2293_v61, %v2289_v22  ;;  %v2585_v5 = vshll.u32 %v5782_v57, 16  ;;  %v4420_v43 = vcombine.low %v1358_v32, %v1368_v40  ;;  %v2573_v54 = vrot.slane %v2572_v28, 4  ;;  %v5801_v42 = vld [vmem:[#allocation2 + $0x40] sm:$0xf] }
  0xc5   : > { %v2285_v50 = vrot.slane %v2284_v7, 4  ;;  %v2577_v19 = vrot.slane %v2575_v38, 5  ;;  %v5796_v49 = vrot.slane %v1672_v21, 5  ;;  %v4440_v7 = vcombine.low %v5762_v24, %v5627_v17  ;;  %v5807_v61 = vld [vmem:[#allocation2 + $0xc0] sm:$0xf] }
  0xc6   : > { %3211 = vrot.lane.b32.xlu0 %v4484_v36, %s4896_s26  ;;  %v2295_v30 = vrot.slane %v2294_v48, 4  ;;  %v1984_v36 = vld [vmem:[#allocation2 + $0x3c] sm:$0xe]  ;;  %v4500_v32 = vcombine.low %v5732_v10, %v5767_v9  ;;  %v2587_v39 = vrot.slane %v2585_v5, 5  ;;  %v5809_v21 = vld [vmem:[#allocation2 + $0x44] sm:$0x1]  ;;  %v1544_v17 = vsel %vm4996_vm5, %v4356_v14, %v1543_v1 }
  0xc7   : > { %v2290_v15 = vsel %vm5032_vm10, %v2285_v50, %v2289_v22  ;;  %v2582_v26 = vor.u32 %v2581_v6, %v2577_v19  ;;  %7408 = vst [vmem:[#allocation31_spill] sm:$0xff] %v5809_v21  ;;  %v1547_v24 = vsel %vm4996_vm5, %v1545_v34, %v1546_v52  ;;  %v1957_v28 = vshrl.u32 %v5807_v61, 16  ;;  %v970_v14 = vld [vmem:[#allocation2 + $0x38] sm:$0x1]  ;;  %v5823_v34 = vpop.permute.xlu1 %2957 }
  0xc8   : > { %v2300_v48 = vsel %vm5032_vm10, %v2295_v30, %v2299_v23  ;;  %v2578_v23 = vsel %vm5032_vm10, %v2573_v54, %v2577_v19  ;;  %v4361_v10 = vrot.slane %v1984_v36, 9  ;;  %v2074_v40 = vrot.slane %v5801_v42, 5  ;;  %v209_v19 = vld [vmem:[%s5006_s22 + $0x50] sm:$0xff] }
  0xc9   : > { %v4504_v22 = vcombine.low %v2290_v15, %v2300_v48  ;;  %v2583_v5 = vrot.slane %v2582_v26, 4  ;;  %v2077_v1 = vrot.slane %v5809_v21, 5  ;;  %v1082_v38 = vshrl.u32 %v942_v37, 16  ;;  %v210_v15 = vld [vmem:[%s5006_s22 + $0x58] sm:$0xff] }
  0xca   : > { %2907 = vrot.lane.b32.xlu0 %v4420_v43, %s4896_s26  ;;  %v1085_v52 = vshll.u32 %v942_v37, 16  ;;  %v1091_v50 = vshll.u32 %v5792_v0, 16  ;;  %v4436_v6 = vcombine.low %v1544_v17, %v1547_v24  ;;  %v2076_v43 = vrot.slane %v2074_v40, 4 }
  0xcb   : > { %3363 = vrot.lane.b32.xlu1 %v4504_v22, %s4897_s27  ;;  %v2588_v30 = vsel %vm5032_vm10, %v2583_v5, %v2587_v39  ;;  %v1095_v54 = vshrl.u32 %v5792_v0, 16  ;;  %v1960_v36 = vshll.u32 %v5807_v61, 16  ;;  %v2075_v48 = vsel %vm4996_vm5, %v4361_v10, %v2074_v40  ;;  %v1373_v22 = vld [vmem:[#allocation2 + $0x30] sm:$0xe] }
  0xcc   : > { %v1084_v26 = vrot.slane %v1082_v38, 4  ;;  %v1087_v37 = vrot.slane %v1085_v52, 5  ;;  %v4516_v16 = vcombine.low %v2578_v23, %v2588_v30  ;;  %v1093_v17 = vrot.slane %v1091_v50, 5 }
  0xcd   : > { %v1097_v24 = vrot.slane %v1095_v54, 4  ;;  %v1101_v9 = vshll.u32 %v970_v14, 16  ;;  %v2078_v39 = vsel %vm4996_vm5, %v2076_v43, %v2077_v1  ;;  %v248_v55 = vmul.f32 %v5455_v47, %v209_v19  ;;  %v5844_v54 = vpop.permute.xlu1 %3277  ;;  %v944_v19 = vld [vmem:[#allocation2 + $0x3c] sm:$0xf] }
  0xce   : > { %3307 = vrot.lane.b32.xlu0 %v4500_v32, %s4895_s25  ;;  %v1088_v5 = vor.u32 %v1087_v37, %v1084_v26  ;;  %v249_v31 = vmul.f32 %v5455_v47, %v210_v15  ;;  %v4345_v38 = vrot.slane %v1373_v22, 9  ;;  %v1466_v52 = vrot.slane %v5792_v0, 5  ;;  %v5854_v15 = vld [vmem:[#allocation2 + $0x40] sm:$0xf] }
  0xcf   : > { %3059 = vrot.lane.b32.xlu1 %v4440_v7, %s4897_s27  ;;  %v1098_v10 = vor.u32 %v1097_v24, %v1093_v17  ;;  %v1103_v40 = vrot.slane %v1101_v9, 5  ;;  %v287_v23 = vadd.f32 %v5484_v11, %v248_v55  ;;  %v1469_v30 = vrot.slane %v970_v14, 5  ;;  %v5842_v7 = vpop.permute.xlu0 %2877 }
  0xd0   : > { %v1089_v32 = vrot.slane %v1088_v5, 4  ;;  %v288_v50 = vadd.f32 %v5484_v11, %v249_v31  ;;  %v4473_v47 = vcombine.low %v2075_v48, %v2078_v39  ;;  %v1468_v43 = vrot.slane %v1466_v52, 4  ;;  %v212_v5 = vld [vmem:[%s5006_s22 + $0x68] sm:$0xff] }
  0xd1   : > { %v1099_v9 = vrot.slane %v1098_v10, 4  ;;  %v4452_v55 = vcombine.low %v5807_v61, %v5697_v46  ;;  %v319_v0 = vmax.f32 %v287_v23, 0.0  ;;  %v5857_v48 = vrot.slane %v1957_v28, 4 }
  0xd2   : > { %3387 = vrot.lane.b32.xlu0 %v4516_v16, %s4897_s27  ;;  %v1094_v31 = vsel %vm5032_vm10, %v1089_v32, %v1093_v17  ;;  %v320_v14 = vmax.f32 %v288_v50, 0.0  ;;  %v5859_v26 = vrot.slane %v1960_v36, 5  ;;  %v1467_v37 = vsel %vm4996_vm5, %v4345_v38, %v1466_v52  ;;  %v211_v36 = vld [vmem:[%s5006_s22 + $0x60] sm:$0xff]  ;;  %v5876_v52 = vpop.permute.xlu1 %3053 }
  0xd3   : > { %2987 = vrot.lane.b32.xlu1 %v4436_v6, %s4895_s25  ;;  %v1104_v6 = vsel %vm5032_vm10, %v1099_v9, %v1103_v40  ;;  %v4581_v46 = vpack.c.bf16 %v319_v0, %v319_v0  ;;  %v1470_v22 = vsel %vm4996_vm5, %v1468_v43, %v1469_v30  ;;  %v1106_v24 = vshrl.u32 %v944_v19, 16  ;;  %v5872_v50 = vld [vmem:[#allocation2 + $0x44] sm:$0x1]  ;;  %v5874_v38 = vpop.permute.xlu0 %3301  ;;  %7410 = vst [vmem:[#allocation33_spill] sm:$0xff] %v5876_v52  ;;  %v5885_v16 = vld [vmem:[%s7298_s1] ss:$0 sm:$0xff] }
  0xd4   : > { %v4582_v61 = vpack.c.bf16 %v320_v14, %v320_v14  ;;  %v4409_v17 = vcombine.low %v1094_v31, %v1104_v6  ;;  %v1109_v39 = vshll.u32 %v944_v19, 16  ;;  %v1115_v28 = vshll.u32 %v5854_v15, 16  ;;  %7409 = vst [vmem:[#allocation32_spill] sm:$0xff] %v5874_v38  ;;  %v857_v19 = vld [vmem:[#allocation2 + $0x48] sm:$0xf] }
  0xd5   : > { %v582_v10 = vshrl.u32 %v4581_v46, 16  ;;  %v585_v40 = vshll.u32 %v4581_v46, 16  ;;  %v1963_v30 = vor.u32 %v5859_v26, %v5857_v48  ;;  %v1108_v9 = vrot.slane %v1106_v24, 4  ;;  %v861_v6 = vld [vmem:[#allocation2 + $0x50] sm:$0x1] }
  0xd6   : > { %3189 = vrot.lane.b32.xlu0 %v4473_v47, %s4896_s26  ;;  %v590_v32 = vshrl.u32 %v4582_v61, 16  ;;  %v593_v23 = vshll.u32 %v4582_v61, 16  ;;  %v4425_v47 = vcombine.low %v1467_v37, %v1470_v22  ;;  %v1111_v43 = vrot.slane %v1109_v39, 5 }
  0xd7   : > { %3083 = vrot.lane.b32.xlu1 %v4452_v55, %s4897_s27  ;;  %v584_v31 = vrot.slane %v582_v10, 7  ;;  %v1117_v14 = vrot.slane %v1115_v28, 5  ;;  %v1119_v55 = vshrl.u32 %v5854_v15, 16  ;;  %v1125_v61 = vshll.u32 %v5872_v50, 16  ;;  %v1556_v28 = vld [vmem:[#allocation2 + $0x3c] sm:$0xf] }
  0xd8   : > { %v592_v0 = vrot.slane %v590_v32, 7  ;;  %v1112_v46 = vor.u32 %v1111_v43, %v1108_v9  ;;  %v250_v48 = vmul.f32 %v5885_v16, %v211_v36  ;;  %v251_v26 = vmul.f32 %v5885_v16, %v212_v5 }
  0xd9   : > { %v587_v37 = vor.u32 %v585_v40, %v584_v31  ;;  %v588_v22 = vrot.slane %v584_v31, 4  ;;  %v1693_v10 = vshrl.u32 %v1556_v28, 16  ;;  %v1121_v9 = vrot.slane %v1119_v55, 4  ;;  %v1374_v40 = vld [vmem:[#allocation2 + $0x3c] sm:$0xe]  ;;  %v5900_v31 = vpop.permute.xlu1 %3077 }
  0xda   : > { %v595_v24 = vor.u32 %v593_v23, %v592_v0  ;;  %v597_v39 = vrot.slane %v592_v0, 4  ;;  %v1113_v32 = vrot.slane %v1112_v46, 4  ;;  %v289_v43 = vadd.f32 %v5484_v11, %v250_v48  ;;  %v5898_v23 = vpop.permute.xlu0 %3279  ;;  %7412 = vst [vmem:[#allocation35_spill] sm:$0xff] %v5900_v31 }
  0xdb   : > { %2885 = vrot.lane.b32.xlu1 %v4409_v17, %s4896_s26  ;;  %v858_v36 = vsel %vm5047_vm11, %v587_v37, %v857_v19  ;;  %v290_v17 = vadd.f32 %v5484_v11, %v251_v26  ;;  %7411 = vst [vmem:[#allocation34_spill] sm:$0xff] %v5898_v23  ;;  %v1696_v0 = vshll.u32 %v1556_v28, 16  ;;  %v1122_v55 = vor.u32 %v1121_v9, %v1117_v14 }
  0xdc   : > { %v596_v1 = vsel %vm5058_vm12, %v588_v22, %v595_v24  ;;  %v862_v5 = vsel %vm5137_vm13, %v597_v39, %v861_v6  ;;  %859 = vst [vmem:[#allocation2 + $0x48] sm:$0xf] %v858_v36  ;;  %v1127_v46 = vrot.slane %v1125_v61, 5  ;;  %v321_v48 = vmax.f32 %v289_v43, 0.0 }
  0xdd   : > { %860 = vst.msk [vmem:[#allocation2 + $0x4c] sm:$0xf] %vm341_vm0, %v596_v1  ;;  %863 = vst [vmem:[#allocation2 + $0x50] sm:$0x1] %v862_v5  ;;  %v4441_v19 = vcombine.low %v1556_v28, %v5801_v42  ;;  %v1118_v11 = vsel %vm5032_vm10, %v1113_v32, %v1117_v14  ;;  %v322_v6 = vmax.f32 %v290_v17, 0.0  ;;  %v1473_v26 = vrot.slane %v5854_v15, 5  ;;  %v5931_v17 = vpop.permute.xlu1 %3055 }
  0xde   : > { %v1123_v37 = vrot.slane %v1122_v55, 4  ;;  %v4583_v22 = vpack.c.bf16 %v321_v48, %v321_v48  ;;  %v4346_v24 = vrot.slane %v1374_v40, 9  ;;  %v1476_v1 = vrot.slane %v5872_v50, 5  ;;  %v213_v50 = vld [vmem:[%s5006_s22 + $0x70] sm:$0xff]  ;;  %v5929_v5 = vpop.permute.xlu0 %3303  ;;  %7417 = vst [vmem:[#allocation39_spill] sm:$0xff] %v5931_v17 }
  0xdf   : > { %2965 = vrot.lane.b32.xlu1 %v4425_v47, %s4895_s25  ;;  %v7413_v61 = vor.u32 %v5796_v49, %v5780_v60  ;;  %v5915_v42 = vpack.c.bf16 %v322_v6, %v322_v6  ;;  %v1475_v28 = vrot.slane %v1473_v26, 4  ;;  %v5922_v43 = vrot.slane %v1963_v30, 4  ;;  %7416 = vst [vmem:[#allocation38_spill] sm:$0xff] %v5929_v5 }
  0xe0   : > { %v1128_v32 = vsel %vm5032_vm10, %v1123_v37, %v1127_v46  ;;  %v599_v9 = vshrl.u32 %v4583_v22, 16  ;;  %v5924_v36 = vrot.slane %v1693_v10, 4  ;;  %v5926_v60 = vrot.slane %v1696_v0, 5  ;;  %v214_v10 = vld [vmem:[%s5006_s22 + $0x78] sm:$0xff] }
  0xe1   : > { %v5913_v47 = vrot.slane %v7413_v61, 4  ;;  %7415 = vst [vmem:[#allocation37_spill] sm:$0xff] %v5922_v43  ;;  %v4410_v49 = vcombine.low %v1118_v11, %v1128_v32  ;;  %v602_v40 = vshll.u32 %v4583_v22, 16  ;;  %v607_v55 = vshrl.u32 %v5915_v42, 16  ;;  %v5967_v21 = vpop.permute.xlu1 %2981  ;;  %v4843_v43 = vld [vmem:[#allocation2 + $0x4] sm:$0xf] }
  0xe2   : > { %v1474_v46 = vsel %vm4996_vm5, %v4346_v24, %v1473_v26  ;;  %v1477_v30 = vsel %vm4996_vm5, %v1475_v28, %v1476_v1  ;;  %v7418_v0 = vrot.slane %v5112_v33, 5  ;;  %v7419_v48 = vrot.slane %v5128_v45, 9  ;;  %v5965_v63 = vpop.permute.xlu0 %3181  ;;  %7424 = vst [vmem:[#allocation44_spill] sm:$0xff] %v5967_v21  ;;  %v871_v21 = vld [vmem:[#allocation2 + $0x60] sm:$0xf] }
  0xe3   : > { %7414 = vst [vmem:[#allocation36_spill] sm:$0xff] %v5913_v47  ;;  %3061 = vrot.lane.b32.xlu1 %v4441_v19, %s4897_s27  ;;  %v2165_v11 = vld [vmem:[#allocation2 + $0x48] sm:$0xf]  ;;  %v252_v22 = vmul.f32 %v5885_v16, %v213_v50  ;;  %v601_v33 = vrot.slane %v599_v9, 7  ;;  %v253_v57 = vmul.f32 %v5885_v16, %v214_v10  ;;  %v610_v59 = vshll.u32 %v5915_v42, 16 }
  0xe4   : > { %v5945_v19 = vsel %vm4996_vm5, %v7419_v48, %v7418_v0  ;;  %v5947_v6 = vld [vmem:[#allocation2 + $0x4c] sm:$0xf]  ;;  %v5949_v37 = vld [vmem:[#allocation2 + $0x50] sm:$0x1]  ;;  %v2302_v26 = vshrl.u32 %v2165_v11, 16  ;;  %v2305_v24 = vshll.u32 %v2165_v11, 16  ;;  %v4426_v48 = vcombine.low %v1474_v46, %v1477_v30 }
  0xe5   : > { %7420 = vst [vmem:[#allocation40_spill] sm:$0xff] %v5945_v19  ;;  %7421 = vst [vmem:[#allocation41_spill] sm:$0xff] %v5947_v6  ;;  %v2315_v1 = vshrl.u32 %v5947_v6, 16  ;;  %v5953_v61 = vld [vmem:[#allocation2 + $0x4c] sm:$0xf]  ;;  %v4489_v45 = vcombine.low %v2165_v11, %v5947_v6  ;;  %v2311_v28 = vshll.u32 %v5947_v6, 16  ;;  %v1699_v42 = vor.u32 %v5926_v60, %v5924_v36 }
  0xe6   : > { %7422 = vst [vmem:[#allocation42_spill] sm:$0xff] %v5949_v37  ;;  %v2321_v32 = vshll.u32 %v5949_v37, 16  ;;  %v5958_v0 = vld [vmem:[#allocation2 + $0x50] sm:$0x1]  ;;  %v2304_v14 = vrot.slane %v2302_v26, 4  ;;  %v2307_v50 = vrot.slane %v2305_v24, 5  ;;  %v604_v26 = vor.u32 %v602_v40, %v601_v33 }
  0xe7   : > { %7423 = vst [vmem:[#allocation43_spill] sm:$0xff] %v5958_v0  ;;  %2887 = vrot.lane.b32.xlu1 %v4410_v49, %s4896_s26  ;;  %v2317_v39 = vrot.slane %v2315_v1, 4  ;;  %v1985_v15 = vld [vmem:[#allocation2 + $0x48] sm:$0xe]  ;;  %3285 = vrot.lane.b32.xlu0 %v4489_v45, %s4895_s25  ;;  %v2313_v9 = vrot.slane %v2311_v28, 5  ;;  %v2081_v11 = vrot.slane %v5953_v61, 5 }
  0xe8   : > { %v2323_v20 = vrot.slane %v2321_v32, 5  ;;  %v864_v19 = vld [vmem:[#allocation2 + $0x54] sm:$0xf]  ;;  %v2308_v49 = vor.u32 %v2307_v50, %v2304_v14  ;;  %v4362_v46 = vrot.slane %v1985_v15, 9  ;;  %v2084_v30 = vrot.slane %v5958_v0, 5 }
  0xe9   : > { %v2318_v24 = vor.u32 %v2317_v39, %v2313_v9  ;;  %v2083_v10 = vrot.slane %v2081_v11, 4  ;;  %v605_v1 = vrot.slane %v601_v33, 4  ;;  %v609_v45 = vrot.slane %v607_v55, 7  ;;  %v868_v15 = vld [vmem:[#allocation2 + $0x5c] sm:$0x1] }
  0xea   : > { %v2309_v28 = vrot.slane %v2308_v49, 4  ;;  %v865_v32 = vsel %vm5047_vm11, %v604_v26, %v864_v19  ;;  %v4389_v14 = vcombine.low %v4844_v58, %v4843_v43  ;;  %v5975_v50 = vld [vmem:[#allocation2 + $0x48] sm:$0xf]  ;;  %v2082_v58 = vsel %vm4996_vm5, %v4362_v46, %v2081_v11  ;;  %v5991_v19 = vld [vmem:[#allocation2 + $0x50] sm:$0x1]  ;;  %v6002_v46 = vpop.permute.xlu0 %3205 }
  0xeb   : > { %2967 = vrot.lane.b32.xlu1 %v4426_v48, %s4895_s25  ;;  %v2319_v40 = vrot.slane %v2318_v24, 4  ;;  %v612_v39 = vor.u32 %v610_v59, %v609_v45  ;;  %866 = vst [vmem:[#allocation2 + $0x54] sm:$0xf] %v865_v32  ;;  %v614_v33 = vrot.slane %v609_v45, 4  ;;  %v946_v55 = vld [vmem:[#allocation2 + $0x48] sm:$0xf]  ;;  %v2085_v43 = vsel %vm4996_vm5, %v2083_v10, %v2084_v30  ;;  %v6004_v30 = vpop.permute.xlu1 %2959 }
  0xec   : > { %v5980_v48 = vld [vmem:[%s7299_s2] ss:$0 sm:$0xff]  ;;  %v2314_v60 = vsel %vm5032_vm10, %v2309_v28, %v2313_v9  ;;  %v5989_v59 = vld [vmem:[#allocation2 + $0x4c] sm:$0xf]  ;;  %v4442_v11 = vcombine.low %v5975_v50, %v5953_v61  ;;  %7425 = vst [vmem:[#allocation45_spill] sm:$0xff] %v6004_v30  ;;  %v1149_v45 = vshll.u32 %v5991_v19, 16 }
  0xed   : > { %v291_v36 = vadd.f32 %v5980_v48, %v252_v22  ;;  %v292_v49 = vadd.f32 %v5980_v48, %v253_v57  ;;  %v2324_v26 = vsel %vm5032_vm10, %v2319_v40, %v2323_v20  ;;  %v613_v22 = vsel %vm5058_vm12, %v605_v1, %v612_v39  ;;  %v215_v28 = vld [vmem:[%s5006_s22 + $0x80] sm:$0xff]  ;;  %v216_v32 = vld [vmem:[%s5006_s22 + $0x88] sm:$0xff] }
  0xee   : > { %v869_v9 = vsel %vm5137_vm13, %v614_v33, %v868_v15  ;;  %v4505_v24 = vcombine.low %v2314_v60, %v2324_v26  ;;  %867 = vst.msk [vmem:[#allocation2 + $0x58] sm:$0xf] %vm341_vm0, %v613_v22  ;;  %v1130_v57 = vshrl.u32 %v946_v55, 16  ;;  %v1133_v20 = vshll.u32 %v946_v55, 16 }
  0xef   : > { %870 = vst [vmem:[#allocation2 + $0x5c] sm:$0x1] %v869_v9  ;;  %3063 = vrot.lane.b32.xlu1 %v4442_v11, %s4897_s27  ;;  %v1139_v10 = vshll.u32 %v5989_v59, 16  ;;  %v1143_v1 = vshrl.u32 %v5989_v59, 16  ;;  %v323_v61 = vmax.f32 %v291_v36, 0.0  ;;  %v4474_v15 = vcombine.low %v2082_v58, %v2085_v43 }
  0xf0   : > { %3365 = vrot.lane.b32.xlu0 %v4505_v24, %s4897_s27  ;;  %v1132_v40 = vrot.slane %v1130_v57, 4  ;;  %v1135_v39 = vrot.slane %v1133_v20, 5  ;;  %v324_v33 = vmax.f32 %v292_v49, 0.0  ;;  %v6014_v60 = vrot.slane %v1699_v42, 4  ;;  %v1375_v9 = vld [vmem:[#allocation2 + $0x48] sm:$0xe] }
  0xf1   : > { %v6018_v55 = vsel %vm3437_vm14, %v4389_v14, %v5842_v7  ;;  %v6020_v26 = vrot.slane %v1139_v10, 5  ;;  %v1145_v22 = vrot.slane %v1143_v1, 4  ;;  %v4585_v51 = vpack.c.bf16 %v323_v61, %v323_v61  ;;  %v6028_v7 = vpop.permute.xlu0 %3183  ;;  %v6030_v14 = vpop.permute.xlu1 %2983 }
  0xf2   : > { %7426 = vst [vmem:[#allocation46_spill] sm:$0xff] %v6014_v60  ;;  %v2167_v11 = vld [vmem:[#allocation2 + $0x54] sm:$0xf]  ;;  %v1136_v47 = vor.u32 %v1135_v39, %v1132_v40  ;;  %v6023_v24 = vmul.f32 %v5885_v16, %v215_v28  ;;  %v6026_v58 = vmul.f32 %v5885_v16, %v216_v32  ;;  %v1151_v49 = vrot.slane %v1149_v45, 5  ;;  %7427 = vst [vmem:[#allocation47_spill] sm:$0xff] %v6028_v7 }
  0xf3   : > { %v1986_v36 = vld [vmem:[#allocation2 + $0x54] sm:$0xe]  ;;  %v2326_v42 = vshrl.u32 %v2167_v11, 16  ;;  %v2329_v43 = vshll.u32 %v2167_v11, 16  ;;  %v4586_v57 = vpack.c.bf16 %v324_v33, %v324_v33  ;;  %7428 = vst [vmem:[#allocation48_spill] sm:$0xff] %v6030_v14  ;;  %v4347_v1 = vrot.slane %v1375_v9, 9 }
  0xf4   : > { %3191 = vrot.lane.b32.xlu0 %v4474_v15, %s4896_s26  ;;  %v4363_v20 = vrot.slane %v1986_v36, 9  ;;  %v1137_v10 = vrot.slane %v1136_v47, 4  ;;  %v1480_v61 = vrot.slane %v5989_v59, 5  ;;  %v1146_v45 = vor.u32 %v1145_v22, %v6020_v26  ;;  %v6039_v33 = vld [vmem:[#allocation2 + $0x90] sm:$0xf] }
  0xf5   : > { %v6034_v28 = vld [vmem:[#allocation2 + $0x58] sm:$0xf]  ;;  %v2328_v40 = vrot.slane %v2326_v42, 4  ;;  %v2331_v32 = vrot.slane %v2329_v43, 5  ;;  %v6041_v60 = vld [vmem:[#allocation2 + $0x94] sm:$0xf]  ;;  %v6060_v23 = vpop.permute.xlu1 %3357 }
  0xf6   : > { %7429 = vst [vmem:[#allocation49_spill] sm:$0xff] %v6034_v28  ;;  %v6036_v39 = vld [vmem:[#allocation2 + $0x5c] sm:$0x1]  ;;  %v2339_v47 = vshrl.u32 %v6034_v28, 16  ;;  %v4490_v9 = vcombine.low %v2167_v11, %v6034_v28  ;;  %v2335_v59 = vshll.u32 %v6034_v28, 16  ;;  %v616_v42 = vshrl.u32 %v4585_v51, 16 }
  0xf7   : > { %7430 = vst [vmem:[#allocation50_spill] sm:$0xff] %v6036_v39  ;;  %v6048_v36 = vld [vmem:[#allocation2 + $0x58] sm:$0xf]  ;;  %v2332_v43 = vor.u32 %v2331_v32, %v2328_v40  ;;  %v2345_v27 = vshll.u32 %v6036_v39, 16  ;;  %v6051_v22 = vld [vmem:[#allocation2 + $0x5c] sm:$0x1]  ;;  %v1481_v40 = vsel %vm4996_vm5, %v4347_v1, %v1480_v61  ;;  %v6058_v32 = vpop.permute.xlu0 %3207 }
  0xf8   : > { %7431 = vst [vmem:[#allocation51_spill] sm:$0xff] %v6051_v22  ;;  %v2088_v56 = vrot.slane %v6048_v36, 5  ;;  %v624_v44 = vshrl.u32 %v4586_v57, 16  ;;  %3287 = vrot.lane.b32.xlu0 %v4490_v9, %s4895_s25  ;;  %v2337_v15 = vrot.slane %v2335_v59, 5  ;;  %v2341_v4 = vrot.slane %v2339_v47, 4  ;;  %7432 = vst [vmem:[#allocation52_spill] sm:$0xff] %v6058_v32 }
  0xf9   : > { %v2091_v14 = vrot.slane %v6051_v22, 5  ;;  %v619_v11 = vshll.u32 %v4585_v51, 16  ;;  %v2333_v5 = vrot.slane %v2332_v43, 4  ;;  %v2347_v17 = vrot.slane %v2345_v27, 5 }
  0xfa   : > { %v2090_v30 = vrot.slane %v2088_v56, 4  ;;  %v2342_v31 = vor.u32 %v2341_v4, %v2337_v15  ;;  %v1142_v9 = vsel %vm5032_vm10, %v1137_v10, %v6020_v26  ;;  %v1147_v47 = vrot.slane %v1146_v45, 4  ;;  %v217_v26 = vld [vmem:[%s5006_s22 + $0x90] sm:$0xff] }
  0xfb   : > { %v618_v59 = vrot.slane %v616_v42, 7  ;;  %v2338_v51 = vsel %vm5032_vm10, %v2333_v5, %v2337_v15  ;;  %v2089_v27 = vsel %vm4996_vm5, %v4363_v20, %v2088_v56  ;;  %v626_v43 = vrot.slane %v624_v44, 7  ;;  %v875_v5 = vld [vmem:[#allocation2 + $0x68] sm:$0x1]  ;;  %v948_v20 = vld [vmem:[#allocation2 + $0x54] sm:$0xf] }
  0xfc   : > { %v627_v1 = vshll.u32 %v4586_v57, 16  ;;  %v2343_v7 = vrot.slane %v2342_v31, 4  ;;  %v2092_v32 = vsel %vm4996_vm5, %v2090_v30, %v2091_v14  ;;  %v1152_v4 = vsel %vm5032_vm10, %v1147_v47, %v1151_v49  ;;  %v6096_v15 = vld [vmem:[#allocation2 + $0x54] sm:$0xf] }
  0xfd   : > { %v621_v38 = vor.u32 %v619_v11, %v618_v59  ;;  %v4411_v10 = vcombine.low %v1142_v9, %v1152_v4  ;;  %v622_v45 = vrot.slane %v618_v59, 4  ;;  %v1482_v52 = vrot.slane %v1480_v61, 4  ;;  %v6083_v61 = vpop.permute.xlu0 %2901  ;;  %v7433_v11 = vld [vmem:[#allocation5_spill] sm:$0xff]  ;;  %v6100_v59 = vld [vmem:[#allocation2 + $0x58] sm:$0xf] }
  0xfe   : > { %v629_v42 = vor.u32 %v627_v1, %v626_v43  ;;  %v2348_v56 = vsel %vm5032_vm10, %v2343_v7, %v2347_v17  ;;  %v1483_v31 = vrot.slane %v5991_v19, 5  ;;  %v631_v57 = vrot.slane %v626_v43, 4  ;;  %v6088_v7 = vpop.permute.xlu1 %2879  ;;  %v7435_v4 = vld [vmem:[#allocation7_spill] sm:$0xff] }
  0xff   : > { %v872_v44 = vsel %vm5047_vm11, %v621_v38, %v871_v21  ;;  %v4506_v14 = vcombine.low %v2338_v51, %v2348_v56  ;;  %2889 = vrot.lane.b32.xlu1 %v4411_v10, %s4896_s26  ;;  %v6086_v17 = vmul.f32 %v5885_v16, %v217_v26  ;;  %v1717_v21 = vshrl.u32 %v5975_v50, 16  ;;  %v7437_v10 = vld [vmem:[#allocation9_spill] sm:$0xff] }
 0x100   : > { %v630_v49 = vsel %vm5058_vm12, %v622_v45, %v629_v42  ;;  %873 = vst [vmem:[#allocation2 + $0x60] sm:$0xf] %v872_v44  ;;  %v1484_v38 = vsel %vm4996_vm5, %v1482_v52, %v1483_v31  ;;  %v876_v19 = vsel %vm5137_vm13, %v631_v57, %v875_v5  ;;  %v7434_v9 = vshll.u32 %v7433_v11, 16  ;;  %v7438_v42 = vld [vmem:[#allocation12_spill] sm:$0xff] }
 0x101   : > { %874 = vst.msk [vmem:[#allocation2 + $0x64] sm:$0xf] %vm341_vm0, %v630_v49  ;;  %3367 = vrot.lane.b32.xlu0 %v4506_v14, %s4897_s27  ;;  %v1720_v51 = vshll.u32 %v5975_v50, 16  ;;  %v4475_v43 = vcombine.low %v2089_v27, %v2092_v32  ;;  %v4427_v1 = vcombine.low %v1481_v40, %v1484_v38  ;;  %877 = vst [vmem:[#allocation2 + $0x68] sm:$0x1] %v876_v19  ;;  %v7436_v26 = vshll.u32 %v7435_v4, 16 }
 0x102   : > { %v1608_v47 = vrot.slane %v7434_v9, 5  ;;  %v1154_v56 = vshrl.u32 %v948_v20, 16  ;;  %v1157_v44 = vshll.u32 %v948_v20, 16  ;;  %v4443_v50 = vcombine.low %v6096_v15, %v6048_v36  ;;  %v6114_v40 = vld [vmem:[#allocation2 + $0x5c] sm:$0x1]  ;;  %v6154_v31 = vld [vmem:[%s7300_s3 + $0x80] sm:$0xff]  }
 0x103   : > { %v1618_v52 = vrot.slane %v7436_v26, 5  ;;  %2969 = vrot.lane.b32.xlu1 %v4427_v1, %s4895_s25  ;;  %v1163_v32 = vshll.u32 %v6100_v59, 16  ;;  %v1167_v27 = vshrl.u32 %v6100_v59, 16  ;;  %v7439_v38 = vshll.u32 %v5226_v18, 16  ;;  %v6128_v1 = vpop.permute.xlu1 %3359  ;;  %4733 = vmatprep.subr.bf16.mxu1 %v6154_v31 }
 0x104   : > { %v1613_v45 = vor.u32 %v7437_v10, %v1608_v47  ;;  %v1609_v5 = vsel %vm5032_vm10, %v7438_v42, %v1608_v47  ;;  %v1156_v14 = vrot.slane %v1154_v56, 4  ;;  %v1159_v49 = vrot.slane %v1157_v44, 5  ;;  %v6126_v47 = vpop.permute.xlu0 %3381 }
 0x105   : > { %v6120_v19 = vrot.slane %v7439_v38, 5  ;;  %v6123_v11 = vrot.slane %v1717_v21, 4  ;;  %3193 = vrot.lane.b32.xlu0 %v4475_v43, %s4896_s26  ;;  %v1165_v36 = vrot.slane %v1163_v32, 5  ;;  %v1169_v9 = vrot.slane %v1167_v27, 4 }
 0x106   : > { %v1614_v57 = vrot.slane %v1613_v45, 4  ;;  %v6130_v4 = vrot.slane %v1720_v51, 5  ;;  %v1173_v45 = vshll.u32 %v6114_v40, 16  ;;  %v1160_v32 = vor.u32 %v1159_v49, %v1156_v14 }
 0x107   : > { %v2169_v26 = vld [vmem:[#allocation2 + $0x60] sm:$0xf]  ;;  %v1897_v21 = vsel %vm5032_vm10, %v5431_v13, %v6120_v19  ;;  %3065 = vrot.lane.b32.xlu1 %v4443_v50, %s4897_s27  ;;  %v1170_v13 = vor.u32 %v1169_v9, %v1165_v36  ;;  %v1901_v14 = vor.u32 %v5422_v8, %v6120_v19  ;;  %v293_v9 = vadd.f32 %v5980_v48, %v6023_v24 }
 0x108   : > { %v1619_v18 = vsel %vm5032_vm10, %v1614_v57, %v1618_v52  ;;  %v1987_v10 = vld [vmem:[#allocation2 + $0x60] sm:$0xe]  ;;  %v6139_v43 = vld [vmem:[#allocation2 + $0x64] sm:$0xf]  ;;  %v2350_v42 = vshrl.u32 %v2169_v26, 16  ;;  %v2353_v56 = vshll.u32 %v2169_v26, 16  ;;  %v6166_v0 = vpop.permute.xlu0 %2903 }
 0x109   : > { %7440 = vst [vmem:[#allocation5_spill] sm:$0xff] %v6139_v43  ;;  %v6142_v51 = vcombine.low %v1609_v5, %v1619_v18  ;;  %v6144_v44 = vld [vmem:[#allocation2 + $0x64] sm:$0xf]  ;;  %v2363_v52 = vshrl.u32 %v6139_v43, 16  ;;  %v4491_v27 = vcombine.low %v2169_v26, %v6139_v43  ;;  %v6148_v57 = vld [vmem:[#allocation2 + $0x68] sm:$0x1] }
 0x10a   : > { %7441 = vst [vmem:[#allocation7_spill] sm:$0xff] %v6148_v57  ;;  %v2359_v38 = vshll.u32 %v6139_v43, 16  ;;  %v2352_v50 = vrot.slane %v2350_v42, 4  ;;  %v2355_v5 = vrot.slane %v2353_v56, 5  ;;  %v2369_v18 = vshll.u32 %v6148_v57, 16  ;;  %v6168_v57 = vpop.permute.xlu1 %3079 }
 0x10b   : > { %v6157_v30 = vld [vmem:[#allocation2 + $0x68] sm:$0x1]  ;;  %3289 = vrot.lane.b32.xlu0 %v4491_v27, %s4895_s25  ;;  %v2365_v26 = vrot.slane %v2363_v52, 4  ;;  %v1175_v20 = vrot.slane %v1173_v45, 5  ;;  %v4364_v56 = vrot.slane %v1987_v10, 9  ;;  %v2095_v6 = vrot.slane %v6144_v44, 5 }
 0x10c   : > { %7442 = vst [vmem:[#allocation9_spill] sm:$0xff] %v6157_v30  ;;  %v2361_v49 = vrot.slane %v2359_v38, 5  ;;  %v2356_v37 = vor.u32 %v2355_v5, %v2352_v50  ;;  %v2371_v42 = vrot.slane %v2369_v18, 5  ;;  %7443 = vst [vmem:[#allocation12_spill] sm:$0xff] %v6168_v57  ;;  %v2098_v19 = vrot.slane %v6157_v30, 5 }
 0x10d   : > { %v1161_v27 = vrot.slane %v1160_v32, 4  ;;  %v1171_v52 = vrot.slane %v1170_v13, 4  ;;  %v1723_v45 = vor.u32 %v6130_v4, %v6123_v11  ;;  %v2097_v38 = vrot.slane %v2095_v6, 4  ;;  %v1376_v57 = vld [vmem:[#allocation2 + $0x54] sm:$0xe] }
 0x10e   : > { %v2366_v8 = vor.u32 %v2365_v26, %v2361_v49  ;;  %v2357_v24 = vrot.slane %v2356_v37, 4  ;;  %v1902_v43 = vrot.slane %v1901_v14, 4  ;;  %v7444_v18 = vshll.u32 %v5233_v35, 16 }
 0x10f   : > { %v1166_v10 = vsel %vm5032_vm10, %v1161_v27, %v1165_v36  ;;  %v1176_v5 = vsel %vm5032_vm10, %v1171_v52, %v1175_v20  ;;  %v2096_v11 = vsel %vm4996_vm5, %v4364_v56, %v2095_v6  ;;  %v294_v4 = vadd.f32 %v5980_v48, %v6026_v58  ;;  %v6196_v58 = vpop.permute.xlu1 %2881  ;;  %v7445_v52 = vld [vmem:[#allocation6_spill] sm:$0xff] }
 0x110   : > { %v2367_v50 = vrot.slane %v2366_v8, 4  ;;  %v1906_v26 = vrot.slane %v7444_v18, 5  ;;  %v2362_v32 = vsel %vm5032_vm10, %v2357_v24, %v2361_v49  ;;  %v4412_v37 = vcombine.low %v1166_v10, %v1176_v5  ;;  %v6194_v8 = vpop.permute.xlu0 %3383 }
 0x111   : > { %v2099_v20 = vsel %vm4996_vm5, %v2097_v38, %v2098_v19  ;;  %v325_v13 = vmax.f32 %v293_v9, 0.0  ;;  %v326_v6 = vmax.f32 %v294_v4, 0.0  ;;  %v4348_v56 = vrot.slane %v1376_v57, 9  ;;  %v7449_v4 = vld [vmem:[#allocation11_spill] sm:$0xff] }
 0x112   : > { %v2372_v36 = vsel %vm5032_vm10, %v2367_v50, %v2371_v42  ;;  %v1907_v35 = vsel %vm5032_vm10, %v1902_v43, %v1906_v26  ;;  %2891 = vrot.lane.b32.xlu1 %v4412_v37, %s4896_s26  ;;  %v1487_v42 = vrot.slane %v6100_v59, 5  ;;  %v1490_v19 = vrot.slane %v6114_v40, 5  ;;  %v7475_v62 = vld [vmem:[#allocation7_spill] sm:$0xff] }
 0x113   : > { %v4507_v14 = vcombine.low %v2362_v32, %v2372_v36  ;;  %v6192_v49 = vcombine.low %v1897_v21, %v1907_v35  ;;  %v4587_v27 = vpack.c.bf16 %v325_v13, %v325_v13  ;;  %v7446_v24 = vshll.u32 %v7445_v52, 16  ;;  %v7448_v32 = vld [vmem:[#allocation10_spill] sm:$0xff]  ;;  %v6212_v35 = vld [vmem:[#allocation2 + $0x60] sm:$0xf] }
 0x114   : > { %v1741_v9 = vshrl.u32 %v6096_v15, 16  ;;  %v4476_v21 = vcombine.low %v2096_v11, %v2099_v20  ;;  %v4588_v38 = vpack.c.bf16 %v326_v6, %v326_v6  ;;  %v7447_v57 = vshll.u32 %v5251_v3, 16  ;;  %v6222_v52 = vpop.permute.xlu0 %3185 }
 0x115   : > { %v1632_v43 = vrot.slane %v7446_v24, 5  ;;  %3369 = vrot.lane.b32.xlu0 %v4507_v14, %s4897_s27  ;;  %v633_v10 = vshrl.u32 %v4587_v27, 16  ;;  %v636_v5 = vshll.u32 %v4587_v27, 16  ;;  %v1488_v18 = vsel %vm4996_vm5, %v4348_v56, %v1487_v42  ;;  %v878_v56 = vld [vmem:[#allocation2 + $0x6c] sm:$0xf]  ;;  %v6224_v24 = vpop.permute.xlu1 %2961 }
 0x116   : > { %v1642_v50 = vrot.slane %v7447_v57, 5  ;;  %v1489_v59 = vrot.slane %v1487_v42, 4  ;;  %v641_v26 = vshrl.u32 %v4588_v38, 16  ;;  %v644_v40 = vshll.u32 %v4588_v38, 16  ;;  %v882_v38 = vld [vmem:[#allocation2 + $0x74] sm:$0x1] }
 0x117   : > { %v1633_v37 = vsel %vm5032_vm10, %v7448_v32, %v1632_v43  ;;  %v1637_v36 = vor.u32 %v7449_v4, %v1632_v43  ;;  %v6214_v11 = vrot.slane %v1723_v45, 4  ;;  %v1744_v3 = vshll.u32 %v6096_v15, 16  ;;  %v4848_v57 = vld [vmem:[#allocation2 + $0xac] sm:$0xf]  ;;  %v6237_v4 = vld [vmem:[#allocation2 + $0x64] sm:$0xf] }
 0x118   : > { %v635_v20 = vrot.slane %v633_v10, 7  ;;  %v1491_v13 = vsel %vm4996_vm5, %v1489_v59, %v1490_v19  ;;  %v6219_v14 = vrot.slane %v1741_v9, 4  ;;  %v643_v6 = vrot.slane %v641_v26, 7  ;;  %v950_v59 = vld [vmem:[#allocation2 + $0x60] sm:$0xf] }
 0x119   : > { %7450 = vst [vmem:[#allocation6_spill] sm:$0xff] %v6214_v11  ;;  %3195 = vrot.lane.b32.xlu0 %v4476_v21, %s4896_s26  ;;  %v4428_v27 = vcombine.low %v1488_v18, %v1491_v13  ;;  %v1638_v42 = vrot.slane %v1637_v36, 4  ;;  %v4444_v15 = vcombine.low %v6212_v35, %v6144_v44  ;;  %v1918_v19 = vshll.u32 %v4848_v57, 16  ;;  %v218_v13 = vld [vmem:[%s5006_s22 + $0x98] sm:$0xff] }
 0x11a   : > { %v638_v45 = vor.u32 %v636_v5, %v635_v20  ;;  %v639_v43 = vrot.slane %v635_v20, 4  ;;  %v646_v9 = vor.u32 %v644_v40, %v643_v6  ;;  %v648_v10 = vrot.slane %v643_v6, 4 }
 0x11b   : > { %2971 = vrot.lane.b32.xlu1 %v4428_v27, %s4895_s25  ;;  %v1643_v21 = vsel %vm5032_vm10, %v1638_v42, %v1642_v50  ;;  %v1922_v18 = vshrl.u32 %v4848_v57, 16  ;;  %v6231_v26 = vrot.slane %v1744_v3, 5  ;;  %v1920_v44 = vrot.slane %v1918_v19, 5  ;;  %v6244_v3 = vld [vmem:[#allocation2 + $0x68] sm:$0x1]  ;;  %v6255_v19 = vpop.permute.xlu0 %3281 }
 0x11c   : > { %v879_v5 = vsel %vm5047_vm11, %v638_v45, %v878_v56  ;;  %v6235_v32 = vcombine.low %v1633_v37, %v1643_v21  ;;  %v647_v36 = vsel %vm5058_vm12, %v639_v43, %v646_v9  ;;  %v883_v50 = vsel %vm5137_vm13, %v648_v10, %v882_v38  ;;  %v6257_v9 = vpop.permute.xlu1 %3361 }
 0x11d   : > { %880 = vst [vmem:[#allocation2 + $0x6c] sm:$0xf] %v879_v5  ;;  %v1924_v20 = vrot.slane %v1922_v18, 4  ;;  %881 = vst.msk [vmem:[#allocation2 + $0x70] sm:$0xf] %vm341_vm0, %v647_v36  ;;  %v7451_v56 = vshll.u32 %v5321_v29, 16  ;;  %v3570_v29 = vsel %vm3437_vm14, %v6142_v51, %v5965_v63  ;;  %v1921_v18 = vsel %vm5032_vm10, %v5557_v25, %v1920_v44 }
 0x11e   : > { %884 = vst [vmem:[#allocation2 + $0x74] sm:$0x1] %v883_v50  ;;  %v1178_v42 = vshrl.u32 %v950_v59, 16  ;;  %v1181_v43 = vshll.u32 %v950_v59, 16  ;;  %v1187_v38 = vshll.u32 %v6237_v4, 16  ;;  %v1191_v57 = vshrl.u32 %v6237_v4, 16 }
 0x11f   : > { %v1930_v27 = vrot.slane %v7451_v56, 5  ;;  %3067 = vrot.lane.b32.xlu1 %v4444_v15, %s4897_s27  ;;  %v1925_v45 = vor.u32 %v1924_v20, %v1920_v44  ;;  %v1197_v10 = vshll.u32 %v6244_v3, 16  ;;  %v257_v15 = vmul.f32 %v5885_v16, %v218_v13 }
 0x120   : > { %v1180_v5 = vrot.slane %v1178_v42, 4  ;;  %v1183_v36 = vrot.slane %v1181_v43, 5  ;;  %v6272_v50 = vsel %vm3437_vm14, %v6192_v49, %v6002_v46  ;;  %v1189_v20 = vrot.slane %v1187_v38, 5  ;;  %v6296_v43 = vpop.permute.xlu0 %3209  ;;  %v6298_v38 = vpop.permute.xlu1 %3057 }
 0x121   : > { %v1926_v59 = vrot.slane %v1925_v45, 4  ;;  %v1193_v56 = vrot.slane %v1191_v57, 4  ;;  %v7452_v63 = vcombine.low %v6039_v33, %v6041_v60  ;;  %v1199_v51 = vrot.slane %v1197_v10, 5 }
 0x122   : > { %v295_v44 = vadd.f32 %v5980_v48, %v6086_v17  ;;  %v296_v49 = vadd.f32 %v5980_v48, %v257_v15  ;;  %v3617_v60 = vsel %vm3486_vm15, %v3570_v29, %v5844_v54 }
 0x123   : > { %v6279_v16 = vsel %vm3437_vm14, %v7452_v63, %v6083_v61  ;;  %v1931_v25 = vsel %vm5032_vm10, %v1926_v59, %v1930_v27  ;;  %v1184_v27 = vor.u32 %v1183_v36, %v1180_v5  ;;  %v3649_v17 = vsel %vm3519_vm1, %v3617_v60, %v6060_v23 }
 0x124   : > { %v2171_v13 = vld [vmem:[#allocation2 + $0x6c] sm:$0xf]  ;;  %v6285_v46 = vcombine.low %v1921_v18, %v1931_v25  ;;  %v6290_v33 = vld [vmem:[#allocation2 + $0x70] sm:$0xf]  ;;  %v1194_v18 = vor.u32 %v1193_v56, %v1189_v20  ;;  %3920 = vmatprep.mubr.bf16.mxu0 %v3649_v17  ;;  %v327_v63 = vmax.f32 %v295_v44, 0.0  ;;  %v328_v37 = vmax.f32 %v296_v49, 0.0  ;;  %v6318_v39 = vpop.permute.xlu1 %2985 }
 0x125   : > { %v2374_v61 = vshrl.u32 %v2171_v13, 16  ;;  %v2377_v42 = vshll.u32 %v2171_v13, 16  ;;  %v6292_v45 = vld [vmem:[#allocation2 + $0x74] sm:$0x1]  ;;  %v2387_v57 = vshrl.u32 %v6290_v33, 16  ;;  %v4492_v10 = vcombine.low %v2171_v13, %v6290_v33 }
 0x126   : > { %v2383_v54 = vshll.u32 %v6290_v33, 16  ;;  %v6303_v29 = vld [vmem:[#allocation2 + $0x70] sm:$0xf]  ;;  %v1988_v15 = vld [vmem:[#allocation2 + $0x6c] sm:$0xe]  ;;  %v2393_v36 = vshll.u32 %v6292_v45, 16  ;;  %v3488_v13 = vsel %vm3486_vm15, %v6018_v55, %v5823_v34  ;;  %v4589_v49 = vpack.c.bf16 %v327_v63, %v327_v63 }
 0x127   : > { %v2376_v59 = vrot.slane %v2374_v61, 4  ;;  %v2379_v5 = vrot.slane %v2377_v42, 5  ;;  %v6306_v23 = vld [vmem:[#allocation2 + $0x74] sm:$0x1]  ;;  %3291 = vrot.lane.b32.xlu0 %v4492_v10, %s4895_s25  ;;  %v2389_v60 = vrot.slane %v2387_v57, 4  ;;  %v4365_v56 = vrot.slane %v1988_v15, 9 }
 0x128   : > { %7453 = vst [vmem:[#allocation10_spill] sm:$0xff] %v6306_v23  ;;  %v2385_v25 = vrot.slane %v2383_v54, 5  ;;  %v2395_v40 = vrot.slane %v2393_v36, 5  ;;  %v2102_v61 = vrot.slane %v6303_v29, 5  ;;  %v2105_v17 = vrot.slane %v6306_v23, 5  ;;  %v6316_v54 = vpop.permute.xlu0 %2905 }
 0x129   : > { %v2380_v6 = vor.u32 %v2379_v5, %v2376_v59  ;;  %v1185_v21 = vrot.slane %v1184_v27, 4  ;;  %v1195_v22 = vrot.slane %v1194_v18, 4  ;;  %v4590_v59 = vpack.c.bf16 %v328_v37, %v328_v37  ;;  %v1377_v27 = vld [vmem:[#allocation2 + $0x60] sm:$0xe] }
 0x12a   : > { %v2390_v42 = vor.u32 %v2389_v60, %v2385_v25  ;;  %v2103_v10 = vsel %vm4996_vm5, %v4365_v56, %v2102_v61  ;;  %v2104_v57 = vrot.slane %v2102_v61, 4  ;;  %v650_v36 = vshrl.u32 %v4589_v49, 16 }
 0x12b   : > { %v2381_v44 = vrot.slane %v2380_v6, 4  ;;  %v1190_v55 = vsel %vm5032_vm10, %v1185_v21, %v1189_v20  ;;  %v1200_v15 = vsel %vm5032_vm10, %v1195_v22, %v1199_v51  ;;  %v653_v56 = vshll.u32 %v4589_v49, 16  ;;  %v4849_v49 = vld [vmem:[#allocation2 + $0x10] sm:$0xf] }
 0x12c   : > { %v2391_v34 = vrot.slane %v2390_v42, 4  ;;  %v2106_v18 = vsel %vm4996_vm5, %v2104_v57, %v2105_v17  ;;  %v4413_v5 = vcombine.low %v1190_v55, %v1200_v15  ;;  %v658_v61 = vshrl.u32 %v4590_v59, 16  ;;  %v885_v42 = vld [vmem:[#allocation2 + $0x78] sm:$0xf]  ;;  %v889_v15 = vld [vmem:[#allocation2 + $0x80] sm:$0x1] }
 0x12d   : > { %v2386_v6 = vsel %vm5032_vm10, %v2381_v44, %v2385_v25  ;;  %v4477_v60 = vcombine.low %v2103_v10, %v2106_v18  ;;  %v652_v22 = vrot.slane %v650_v36, 7  ;;  %v661_v37 = vshll.u32 %v4590_v59, 16  ;;  %v7454_v44 = vld [vmem:[#allocation33_spill] sm:$0xff]  ;;  %v7455_v59 = vld [vmem:[#allocation32_spill] sm:$0xff] }
 0x12e   : > { %v2396_v63 = vsel %vm5032_vm10, %v2391_v34, %v2395_v40  ;;  %2893 = vrot.lane.b32.xlu1 %v4413_v5, %s4896_s26  ;;  %v4349_v20 = vrot.slane %v1377_v27, 9  ;;  %v660_v51 = vrot.slane %v658_v61, 7  ;;  %v1494_v25 = vrot.slane %v6237_v4, 5  ;;  %v4850_v34 = vld [vmem:[#allocation2 + $0xc] sm:$0xf]  ;;  %v6341_v4 = vpop.permute.xlu1 %3081 }
 0x12f   : > { %v4508_v21 = vcombine.low %v2386_v6, %v2396_v63  ;;  %v1497_v17 = vrot.slane %v6244_v3, 5  ;;  %v3521_v57 = vsel %vm3519_vm1, %v3488_v13, %v7454_v44  ;;  %v655_v40 = vor.u32 %v653_v56, %v652_v22  ;;  %v6339_v6 = vpop.permute.xlu0 %3305  ;;  %v7459_v44 = vld [vmem:[#allocation44_spill] sm:$0xff] }
 0x130   : > { %v656_v10 = vrot.slane %v652_v22, 4  ;;  %3921 = vmatmul.mubr.bf16.vlgmr.msra.gmra.mrb[0].mxu0 %v3521_v57  ;;  %v4390_v55 = vcombine.low %v4850_v34, %v4849_v49  ;;  %v3641_v27 = vsel %vm3486_vm15, %v6272_v50, %v7455_v59  ;;  %v663_v3 = vor.u32 %v661_v37, %v660_v51  ;;  %v952_v22 = vld [vmem:[#allocation2 + $0x6c] sm:$0xf]  ;;  %v4851_v49 = vld [vmem:[#allocation2 + $0xa0] sm:$0xf] }
 0x131   : > { %3371 = vrot.lane.b32.xlu0 %v4508_v21, %s4897_s27  ;;  %v1495_v13 = vsel %vm4996_vm5, %v4349_v20, %v1494_v25  ;;  %v1496_v18 = vrot.slane %v1494_v25, 4  ;;  %v665_v5 = vrot.slane %v660_v51, 4  ;;  %v7456_v36 = vor.u32 %v6231_v26, %v6219_v14  ;;  %v6355_v21 = vld [vmem:[#allocation2 + $0x6c] sm:$0xf]  ;;  %v6364_v51 = vld [vmem:[#allocation2 + $0x70] sm:$0xf] }
 0x132   : > { %v1765_v56 = vshrl.u32 %v6212_v35, 16  ;;  %v886_v50 = vsel %vm5047_vm11, %v655_v40, %v885_v42  ;;  %v3685_v61 = vsel %vm3519_vm1, %v3641_v27, %v6126_v47  ;;  %v1768_v37 = vshll.u32 %v6212_v35, 16  ;;  %v6366_v42 = vld [vmem:[#allocation2 + $0x74] sm:$0x1]  ;;  %v7458_v47 = vld [vmem:[#allocation47_spill] sm:$0xff]  ;;  %v4837_v40 = vld [vmem:[%s7300_s3 + $0x88] sm:$0xff]  }
 0x133   : > { %v6348_v63 = vrot.slane %v7456_v36, 4  ;;  %v664_v20 = vsel %vm5058_vm12, %v656_v10, %v663_v3  ;;  %887 = vst [vmem:[#allocation2 + $0x78] sm:$0xf] %v886_v50  ;;  %v1498_v14 = vsel %vm4996_vm5, %v1496_v18, %v1497_v17  ;;  %v890_v26 = vsel %vm5137_vm13, %v665_v5, %v889_v15  ;;  %4016 = vmatprep.mubr.bf16.mxu1 %v3685_v61  ;;  %v4852_v34 = vld [vmem:[#allocation2 + $0x9c] sm:$0xf]  ;;  %v219_v3 = vld [vmem:[%s5006_s22 + $0xa0] sm:$0xff] }
 0x134   : > { %v3573_v25 = vsel %vm3437_vm14, %v6235_v32, %v7458_v47  ;;  %888 = vst.msk [vmem:[#allocation2 + $0x7c] sm:$0xf] %vm341_vm0, %v664_v20  ;;  %v4429_v35 = vcombine.low %v1495_v13, %v1498_v14  ;;  %v3443_v17 = vsel %vm3437_vm14, %v4390_v55, %v6088_v7  ;;  %891 = vst [vmem:[#allocation2 + $0x80] sm:$0x1] %v890_v26  ;;  %v1202_v7 = vshrl.u32 %v952_v22, 16  ;;  %v6392_v13 = vpop.permute.xlu1 %2883  ;;  %v7461_v36 = vld [vmem:[#allocation52_spill] sm:$0xff] }
 0x135   : > { %7457 = vst [vmem:[#allocation11_spill] sm:$0xff] %v6348_v63  ;;  %3197 = vrot.lane.b32.xlu0 %v4477_v60, %s4896_s26  ;;  %v3512_v57 = vsel %vm3486_vm15, %v6279_v16, %v7459_v44  ;;  %v4445_v32 = vcombine.low %v6355_v21, %v6303_v29  ;;  %v7460_v60 = vld [vmem:[#allocation35_spill] sm:$0xff]  ;;  %v4402_v15 = vcombine.low %v4852_v34, %v4851_v49  ;;  %v1205_v55 = vshll.u32 %v952_v22, 16  ;;  %v6390_v29 = vpop.permute.xlu0 %3385  ;;  %v7462_v26 = vld [vmem:[#allocation34_spill] sm:$0xff]  ;;  %v220_v44 = vld [vmem:[%s5006_s22 + $0xa8] sm:$0xff] }
 0x136   : > { %v3557_v10 = vsel %vm3519_vm1, %v3512_v57, %v7460_v60  ;;  %2973 = vrot.lane.b32.xlu1 %v4429_v35, %s4895_s25  ;;  %v1211_v16 = vshll.u32 %v6364_v51, 16  ;;  %v1215_v59 = vshrl.u32 %v6364_v51, 16  ;;  %v1221_v27 = vshll.u32 %v6366_v42, 16  ;;  %v7463_v35 = vld [vmem:[#allocation45_spill] sm:$0xff] }
 0x137   : > { %4017 = vmatmul.mubr.bf16.vlgmr.msra.gmra.mrb[0].mxu1 %v3557_v10  ;;  %v6394_v18 = vrot.slane %v1765_v56, 4  ;;  %v6396_v5 = vrot.slane %v1768_v37, 5  ;;  %v6401_v50 = vsel %vm3437_vm14, %v6285_v46, %v7461_v36  ;;  %v1204_v61 = vrot.slane %v1202_v7, 4  ;;  %v6417_v60 = vld [vmem:[#allocation2 + $0x6c] sm:$0xe] }
 0x138   : > { %4734 = vmatpush3.bf16.msra.mxu1 %v6154_v31  ;;  %v1207_v22 = vrot.slane %v1205_v55, 5  ;;  %v6404_v20 = vrot.slane %v1211_v16, 5  ;;  %v1217_v14 = vrot.slane %v1215_v59, 4  ;;  %v3619_v47 = vsel %vm3486_vm15, %v3573_v25, %v7462_v26  ;;  %v4853_v31 = vld [vmem:[%s7298_s1] ss:$0 sm:$0xff] }
 0x139   : > { %4735 = vmatprep.subr.bf16.mxu1 %v4837_v40  ;;  %v3652_v37 = vsel %vm3519_vm1, %v3619_v47, %v6128_v1  ;;  %v3490_v46 = vsel %vm3486_vm15, %v3443_v17, %v7463_v35  ;;  %v258_v57 = vmul.f32 %v4853_v31, %v219_v3  ;;  %v6423_v49 = vsel %vm3437_vm14, %v4402_v15, %v6166_v0  ;;  %v7464_v17 = vld [vmem:[#allocation39_spill] sm:$0xff]  ;;  %v6439_v35 = vpop.permute.xlu1 %2963 }
 0x13a   : > { %v2173_v10 = vld [vmem:[#allocation2 + $0x78] sm:$0xf]  ;;  %3069 = vrot.lane.b32.xlu1 %v4445_v32, %s4897_s27  ;;  %v1223_v34 = vrot.slane %v1221_v27, 5  ;;  %3928 = vmatprep.mubr.bf16.mxu0 %v3652_v37  ;;  %v3524_v7 = vsel %vm3519_vm1, %v3490_v46, %v7464_v17  ;;  %v1208_v36 = vor.u32 %v1207_v22, %v1204_v61  ;;  %v1218_v26 = vor.u32 %v1217_v14, %v6404_v20  ;;  %v6437_v37 = vpop.permute.xlu0 %3187 }
 0x13b   : > { %v1989_v1 = vld [vmem:[#allocation2 + $0x78] sm:$0xe]  ;;  %v6427_v55 = vld [vmem:[#allocation2 + $0x7c] sm:$0xf]  ;;  %v2398_v16 = vshrl.u32 %v2173_v10, 16  ;;  %v2401_v59 = vshll.u32 %v2173_v10, 16  ;;  %3929 = vmatmul.mubr.bf16.gmra.mrb[4].mxu0 %v3524_v7  ;;  %v259_v47 = vmul.f32 %v4853_v31, %v220_v44 }
 0x13c   : > { %v6429_v3 = vld [vmem:[#allocation2 + $0x80] sm:$0x1]  ;;  %4736 = vmatpush3.bf16.msra.mxu1 %v4837_v40  ;;  %v2411_v0 = vshrl.u32 %v6427_v55, 16  ;;  %v4493_v32 = vcombine.low %v2173_v10, %v6427_v55  ;;  %v2407_v15 = vshll.u32 %v6427_v55, 16  ;;  %v6435_v27 = vld [vmem:[#allocation2 + $0x7c] sm:$0xf]  ;;  %v297_v40 = vadd.f32 %v5980_v48, %v258_v57 }
 0x13d   : > { %7465 = vst [vmem:[#allocation33_spill] sm:$0xff] %v6439_v35  ;;  %v2400_v46 = vrot.slane %v2398_v16, 4  ;;  %v2403_v17 = vrot.slane %v2401_v59, 5  ;;  %v2417_v61 = vshll.u32 %v6429_v3, 16  ;;  %v6442_v22 = vld [vmem:[#allocation2 + $0x80] sm:$0x1]  ;;  %v298_v11 = vadd.f32 %v5980_v48, %v259_v47 }
 0x13e   : > { %7466 = vst [vmem:[#allocation32_spill] sm:$0xff] %v6442_v22  ;;  %3293 = vrot.lane.b32.xlu0 %v4493_v32, %s4895_s25  ;;  %v2409_v14 = vrot.slane %v2407_v15, 5  ;;  %v2413_v10 = vrot.slane %v2411_v0, 4  ;;  %v4366_v7 = vrot.slane %v1989_v1, 9  ;;  %v4350_v25 = vrot.slane %v6417_v60, 9 }
 0x13f   : > { %v2404_v44 = vor.u32 %v2403_v17, %v2400_v46  ;;  %v2419_v31 = vrot.slane %v2417_v61, 5  ;;  %v2109_v56 = vrot.slane %v6435_v27, 5  ;;  %v2112_v16 = vrot.slane %v6442_v22, 5  ;;  %v6457_v17 = vpop.permute.xlu0 %3283  ;;  %v6515_v12 = vld [vmem:[#allocation2 + $0x80] sm:$0x1] }
 0x140   : > { %v2414_v59 = vor.u32 %v2413_v10, %v2409_v14  ;;  %v1209_v63 = vrot.slane %v1208_v36, 4  ;;  %v1219_v28 = vrot.slane %v1218_v26, 4  ;;  %v329_v0 = vmax.f32 %v297_v40, 0.0  ;;  %v6459_v36 = vpop.permute.xlu1 %3363  ;;  %v7467_v40 = vld [vmem:[#allocation38_spill] sm:$0xff] }
 0x141   : > { %v2405_v35 = vrot.slane %v2404_v44, 4  ;;  %v2110_v57 = vsel %vm4996_vm5, %v4366_v7, %v2109_v56  ;;  %v2111_v32 = vrot.slane %v2109_v56, 4  ;;  %v330_v46 = vmax.f32 %v298_v11, 0.0 }
 0x142   : > { %v2415_v1 = vrot.slane %v2414_v59, 4  ;;  %v1214_v60 = vsel %vm5032_vm10, %v1209_v63, %v6404_v20  ;;  %v1224_v15 = vsel %vm5032_vm10, %v1219_v28, %v1223_v34  ;;  %v4591_v47 = vpack.c.bf16 %v329_v0, %v329_v0  ;;  %v7468_v59 = vld [vmem:[#allocation48_spill] sm:$0xff] }
 0x143   : > { %v2410_v48 = vsel %vm5032_vm10, %v2405_v35, %v2409_v14  ;;  %v2113_v56 = vsel %vm4996_vm5, %v2111_v32, %v2112_v16  ;;  %v4414_v26 = vcombine.low %v1214_v60, %v1224_v15  ;;  %v4592_v20 = vpack.c.bf16 %v330_v46, %v330_v46  ;;  %v892_v60 = vld [vmem:[#allocation2 + $0x84] sm:$0xf] }
 0x144   : > { %v2420_v61 = vsel %vm5032_vm10, %v2415_v1, %v2419_v31  ;;  %v4478_v63 = vcombine.low %v2110_v57, %v2113_v56  ;;  %v3643_v28 = vsel %vm3486_vm15, %v6401_v50, %v7467_v40  ;;  %v667_v34 = vshrl.u32 %v4591_v47, 16  ;;  %v4854_v57 = vld [vmem:[#allocation2 + $0x28] sm:$0xf]  ;;  %v7469_v46 = vld [vmem:[#allocation12_spill] sm:$0xff] }
 0x145   : > { %v4509_v11 = vcombine.low %v2410_v48, %v2420_v61  ;;  %2895 = vrot.lane.b32.xlu1 %v4414_v26, %s4896_s26  ;;  %v670_v10 = vshll.u32 %v4591_v47, 16  ;;  %v3688_v35 = vsel %vm3519_vm1, %v3643_v28, %v6194_v8  ;;  %v675_v14 = vshrl.u32 %v4592_v20, 16  ;;  %v6485_v48 = vpop.permute.xlu1 %3059 }
 0x146   : > { %v678_v7 = vshll.u32 %v4592_v20, 16  ;;  %4024 = vmatprep.mubr.bf16.mxu1 %v3688_v35  ;;  %v1501_v44 = vrot.slane %v6364_v51, 5  ;;  %v1504_v31 = vrot.slane %v6366_v42, 5  ;;  %v669_v16 = vrot.slane %v667_v34, 7  ;;  %v6483_v42 = vpop.permute.xlu0 %3211  ;;  %v6493_v34 = vld [vmem:[#allocation2 + $0x78] sm:$0xf] }
 0x147   : > { %3373 = vrot.lane.b32.xlu0 %v4509_v11, %s4897_s27  ;;  %v3514_v50 = vsel %vm3486_vm15, %v6423_v49, %v7468_v59  ;;  %v1654_v32 = vshll.u32 %v4854_v57, 16  ;;  %v1658_v0 = vshrl.u32 %v4854_v57, 16  ;;  %v677_v1 = vrot.slane %v675_v14, 7  ;;  %v954_v57 = vld [vmem:[#allocation2 + $0x78] sm:$0xf] }
 0x148   : > { %v1502_v8 = vsel %vm4996_vm5, %v4350_v25, %v1501_v44  ;;  %v1503_v15 = vrot.slane %v1501_v44, 4  ;;  %v3560_v51 = vsel %vm3519_vm1, %v3514_v50, %v7469_v46  ;;  %v672_v56 = vor.u32 %v670_v10, %v669_v16  ;;  %v7472_v44 = vld [vmem:[#allocation15_spill] sm:$0xff]  ;;  %v896_v50 = vld [vmem:[#allocation2 + $0x8c] sm:$0x1] }
 0x149   : > { %v673_v26 = vrot.slane %v669_v16, 4  ;;  %4025 = vmatmul.mubr.bf16.gmra.mrb[4].mxu1 %v3560_v51  ;;  %v1656_v49 = vrot.slane %v1654_v32, 5  ;;  %v1660_v47 = vrot.slane %v1658_v0, 4  ;;  %v7470_v61 = vshrl.u32 %v6355_v21, 16  ;;  %v6505_v0 = vld [vmem:[#allocation2 + $0x7c] sm:$0xf] }
 0x14a   : > { %v7471_v40 = vshll.u32 %v6355_v21, 16  ;;  %v680_v25 = vor.u32 %v678_v7, %v677_v1  ;;  %v1505_v11 = vsel %vm4996_vm5, %v1503_v15, %v1504_v31  ;;  %v893_v10 = vsel %vm5047_vm11, %v672_v56, %v892_v60  ;;  %v7474_v21 = vld [vmem:[#allocation5_spill] sm:$0xff] }
 0x14b   : > { %v1791_v20 = vrot.slane %v7470_v61, 4  ;;  %3199 = vrot.lane.b32.xlu0 %v4478_v63, %s4896_s26  ;;  %v4430_v35 = vcombine.low %v1502_v8, %v1505_v11  ;;  %v1661_v14 = vor.u32 %v1660_v47, %v1656_v49  ;;  %v7473_v16 = vshll.u32 %v7472_v44, 16  ;;  %894 = vst [vmem:[#allocation2 + $0x84] sm:$0xf] %v893_v10  ;;  %v7476_v8 = vld [vmem:[#allocation25_spill] sm:$0xff]  ;;  %v6522_v47 = vpop.permute.xlu1 %2987 }
 0x14c   : > { %v1794_v28 = vrot.slane %v7471_v40, 5  ;;  %v1771_v7 = vor.u32 %v6396_v5, %v6394_v18  ;;  %v681_v31 = vsel %vm5058_vm12, %v673_v26, %v680_v25  ;;  %v682_v63 = vrot.slane %v677_v1, 4  ;;  %v6520_v26 = vpop.permute.xlu0 %2907 }
 0x14d   : > { %v1666_v59 = vrot.slane %v7473_v16, 5  ;;  %895 = vst.msk [vmem:[#allocation2 + $0x88] sm:$0xf] %vm341_vm0, %v681_v31  ;;  %2975 = vrot.lane.b32.xlu1 %v4430_v35, %s4895_s25  ;;  %v1657_v15 = vsel %vm5032_vm10, %v7476_v8, %v1656_v49  ;;  %v1662_v46 = vrot.slane %v1661_v14, 4  ;;  %v4446_v18 = vcombine.low %v6493_v34, %v6435_v27  ;;  %v4855_v16 = vld [vmem:[#allocation2 + $0x18] sm:$0xf] }
 0x14e   : > { %v897_v1 = vsel %vm5137_vm13, %v682_v63, %v896_v50  ;;  %v1226_v51 = vshrl.u32 %v954_v57, 16  ;;  %v1229_v56 = vshll.u32 %v954_v57, 16  ;;  %v1795_v61 = vor.u32 %v1794_v28, %v1791_v20 }
 0x14f   : > { %v1667_v49 = vsel %vm5032_vm10, %v1662_v46, %v1666_v59  ;;  %898 = vst [vmem:[#allocation2 + $0x8c] sm:$0x1] %v897_v1  ;;  %v1235_v27 = vshll.u32 %v6505_v0, 16  ;;  %v1239_v40 = vshrl.u32 %v6505_v0, 16  ;;  %v6529_v11 = vrot.slane %v1771_v7, 4 }
 0x150   : > { %v4455_v53 = vcombine.low %v1657_v15, %v1667_v49  ;;  %v1245_v10 = vshll.u32 %v6515_v12, 16  ;;  %v1228_v20 = vrot.slane %v1226_v51, 4  ;;  %v1231_v28 = vrot.slane %v1229_v56, 5  ;;  %v4856_v59 = vld [vmem:[#allocation2 + $0x1c] sm:$0xf] }
 0x151   : > { %7477 = vst [vmem:[#allocation47_spill] sm:$0xff] %v6529_v11  ;;  %3071 = vrot.lane.b32.xlu1 %v4446_v18, %s4897_s27  ;;  %v4391_v50 = vcombine.low %v4855_v16, %v4856_v59  ;;  %v1237_v57 = vrot.slane %v1235_v27, 5  ;;  %v1241_v7 = vrot.slane %v1239_v40, 4  ;;  %v6537_v31 = vrot.slane %v1795_v61, 4  ;;  %v4857_v46 = vld [vmem:[#allocation2 + $0xb8] sm:$0xf]  ;;  %v6546_v27 = vpop.permute.xlu0 %3307  ;;  %v6548_v61 = vpop.permute.xlu1 %3083 }
 0x152   : > { %v3576_v44 = vsel %vm3437_vm14, %v4455_v53, %v6222_v52  ;;  %v2175_v63 = vld [vmem:[#allocation2 + $0x84] sm:$0xf]  ;;  %v1942_v18 = vshll.u32 %v4857_v46, 16  ;;  %v1247_v52 = vrot.slane %v1245_v10, 5  ;;  %v1232_v59 = vor.u32 %v1231_v28, %v1228_v20  ;;  %v1379_v11 = vld [vmem:[#allocation2 + $0x78] sm:$0xe] }
 0x153   : > { %7478 = vst [vmem:[#allocation44_spill] sm:$0xff] %v6537_v31  ;;  %v3621_v15 = vsel %vm3486_vm15, %v3576_v44, %v6255_v19  ;;  %v2422_v51 = vshrl.u32 %v2175_v63, 16  ;;  %v2425_v56 = vshll.u32 %v2175_v63, 16  ;;  %v1990_v16 = vld [vmem:[#allocation2 + $0x84] sm:$0xe]  ;;  %v1242_v35 = vor.u32 %v1241_v7, %v1237_v57 }
 0x154   : > { %v6542_v1 = vld [vmem:[#allocation2 + $0x88] sm:$0xf]  ;;  %v3655_v49 = vsel %vm3519_vm1, %v3621_v15, %v6257_v9  ;;  %v6557_v9 = vsel %vm3437_vm14, %v4391_v50, %v6196_v58  ;;  %v1946_v32 = vshrl.u32 %v4857_v46, 16  ;;  %v4367_v28 = vrot.slane %v1990_v16, 9  ;;  %v6567_v31 = vld [vmem:[#allocation2 + $0x90] sm:$0xf] }
 0x155   : > { %v2435_v40 = vshrl.u32 %v6542_v1, 16  ;;  %v4494_v53 = vcombine.low %v2175_v63, %v6542_v1  ;;  %v2431_v19 = vshll.u32 %v6542_v1, 16  ;;  %v6553_v44 = vld [vmem:[#allocation2 + $0x88] sm:$0xf]  ;;  %3936 = vmatprep.mubr.bf16.mxu0 %v3655_v49  ;;  %v2424_v14 = vrot.slane %v2422_v51, 4  ;;  %v6570_v23 = vpop.permute.xlu0 %3387  ;;  %v6572_v46 = vpop.permute.xlu1 %2885 }
 0x156   : > { %7479 = vst [vmem:[#allocation35_spill] sm:$0xff] %v6553_v44  ;;  %v2427_v10 = vrot.slane %v2425_v56, 5  ;;  %v6559_v15 = vld [vmem:[#allocation2 + $0x8c] sm:$0x1]  ;;  %v2116_v51 = vrot.slane %v6553_v44, 5  ;;  %v1944_v56 = vrot.slane %v1942_v18, 5 }
 0x157   : > { %v6561_v5 = vld [vmem:[#allocation2 + $0x8c] sm:$0x1]  ;;  %3295 = vrot.lane.b32.xlu0 %v4494_v53, %s4895_s25  ;;  %v2433_v63 = vrot.slane %v2431_v19, 5  ;;  %v2437_v60 = vrot.slane %v2435_v40, 4  ;;  %v2441_v25 = vshll.u32 %v6559_v15, 16  ;;  %v1233_v8 = vrot.slane %v1232_v59, 4 }
 0x158   : > { %7480 = vst [vmem:[#allocation52_spill] sm:$0xff] %v6561_v5  ;;  %v2428_v20 = vor.u32 %v2427_v10, %v2424_v14  ;;  %v2119_v50 = vrot.slane %v6561_v5, 5  ;;  %v1816_v53 = vshll.u32 %v6493_v34, 16  ;;  %v2118_v19 = vrot.slane %v2116_v51, 4  ;;  %v6578_v16 = vld [vmem:[#allocation2 + $0x94] sm:$0xf] }
 0x159   : > { %v2438_v49 = vor.u32 %v2437_v60, %v2433_v63  ;;  %v2443_v58 = vrot.slane %v2441_v25, 5  ;;  %v1243_v40 = vrot.slane %v1242_v35, 4  ;;  %v2117_v18 = vsel %vm4996_vm5, %v4367_v28, %v2116_v51  ;;  %v7481_v10 = vld [vmem:[#allocation18_spill] sm:$0xff] }
 0x15a   : > { %v2429_v7 = vrot.slane %v2428_v20, 4  ;;  %v1238_v60 = vsel %vm5032_vm10, %v1233_v8, %v1237_v57  ;;  %v1948_v25 = vrot.slane %v1946_v32, 4  ;;  %v7482_v20 = vshll.u32 %v7481_v10, 16 }
 0x15b   : > { %v2439_v14 = vrot.slane %v2438_v49, 4  ;;  %v1248_v35 = vsel %vm5032_vm10, %v1243_v40, %v1247_v52  ;;  %v2446_v49 = vshrl.u32 %v6567_v31, 16  ;;  %v2120_v32 = vsel %vm4996_vm5, %v2118_v19, %v2119_v50 }
 0x15c   : > { %v2434_v59 = vsel %vm5032_vm10, %v2429_v7, %v2433_v63  ;;  %v1954_v5 = vrot.slane %v7482_v20, 5  ;;  %v4415_v57 = vcombine.low %v1238_v60, %v1248_v35  ;;  %v1949_v8 = vor.u32 %v1948_v25, %v1944_v56  ;;  %v7483_v7 = vld [vmem:[#allocation26_spill] sm:$0xff]  ;;  %v6605_v35 = vpop.permute.xlu1 %2965 }
 0x15d   : > { %v2444_v28 = vsel %vm5032_vm10, %v2439_v14, %v2443_v58  ;;  %v2448_v30 = vrot.slane %v2446_v49, 4  ;;  %v2449_v63 = vshll.u32 %v6567_v31, 16  ;;  %v2459_v52 = vshrl.u32 %v6578_v16, 16  ;;  %v6598_v14 = vld [vmem:[#allocation2 + $0x98] sm:$0x1] }
 0x15e   : > { %v4510_v51 = vcombine.low %v2434_v59, %v2444_v28  ;;  %2897 = vrot.lane.b32.xlu1 %v4415_v57, %s4896_s26  ;;  %v1945_v40 = vsel %vm5032_vm10, %v7483_v7, %v1944_v56  ;;  %v1950_v10 = vrot.slane %v1949_v8, 4  ;;  %v4351_v20 = vrot.slane %v1379_v11, 9  ;;  %v6603_v59 = vpop.permute.xlu0 %3189  ;;  %v4859_v7 = vld [vmem:[#allocation2 + $0xac] sm:$0xf] }
 0x15f   : > { %v1508_v58 = vrot.slane %v6505_v0, 5  ;;  %v4479_v50 = vcombine.low %v2117_v18, %v2120_v32  ;;  %v2451_v19 = vrot.slane %v2449_v63, 5  ;;  %v1511_v60 = vrot.slane %v6515_v12, 5 }
 0x160   : > { %3375 = vrot.lane.b32.xlu0 %v4510_v51, %s4897_s27  ;;  %v2455_v25 = vshll.u32 %v6578_v16, 16  ;;  %v1955_v56 = vsel %vm5032_vm10, %v1950_v10, %v1954_v5  ;;  %v2461_v49 = vrot.slane %v2459_v52, 4  ;;  %v2465_v32 = vshll.u32 %v6598_v14, 16  ;;  %v4858_v5 = vld [vmem:[#allocation2 + $0xa8] sm:$0xf] }
 0x161   : > { %v1509_v0 = vsel %vm4996_vm5, %v4351_v20, %v1508_v58  ;;  %v1510_v11 = vrot.slane %v1508_v58, 4  ;;  %v4467_v28 = vcombine.low %v1945_v40, %v1955_v56  ;;  %v2452_v57 = vor.u32 %v2451_v19, %v2448_v30  ;;  %v6620_v20 = vld [vmem:[#allocation2 + $0x84] sm:$0xf]  ;;  %v6622_v52 = vld [vmem:[#allocation2 + $0x94] sm:$0xf] }
 0x162   : > { %v2457_v18 = vrot.slane %v2455_v25, 5  ;;  %v7484_v12 = vshrl.u32 %v6493_v34, 16  ;;  %v6616_v51 = vrot.slane %v1816_v53, 5  ;;  %v4403_v10 = vcombine.low %v4858_v5, %v4859_v7  ;;  %v6627_v53 = vld [vmem:[#allocation2 + $0x98] sm:$0x1] }
 0x163   : > { %v1512_v63 = vsel %vm4996_vm5, %v1510_v11, %v1511_v60  ;;  %v4495_v30 = vcombine.low %v6567_v31, %v6578_v16  ;;  %v2453_v40 = vrot.slane %v2452_v57, 4  ;;  %7487 = vst [vmem:[#allocation39_spill] sm:$0xff] %v6627_v53  ;;  %v1991_v19 = vld [vmem:[#allocation2 + $0x90] sm:$0xe]  ;;  %v3492_v56 = vsel %vm3486_vm15, %v6557_v9, %v6224_v24  ;;  %v6643_v57 = vld [vmem:[#allocation2 + $0x88] sm:$0xf]  ;;  %v6647_v24 = vpop.permute.xlu1 %3061 }
 0x164   : > { %v6614_v8 = vrot.slane %v7484_v12, 4  ;;  %7486 = vst [vmem:[#allocation45_spill] sm:$0xff] %v6616_v51  ;;  %3201 = vrot.lane.b32.xlu0 %v4479_v50, %s4896_s26  ;;  %v4431_v34 = vcombine.low %v1509_v0, %v1512_v63  ;;  %v2462_v58 = vor.u32 %v2461_v49, %v2457_v18  ;;  %v2467_v11 = vrot.slane %v2465_v32, 5  ;;  %v6634_v12 = vld [vmem:[#allocation2 + $0x84] sm:$0xf]  ;;  %v6645_v63 = vpop.permute.xlu0 %3285 }
 0x165   : > { %7488 = vst [vmem:[#allocation38_spill] sm:$0xff] %v6634_v12  ;;  %v2458_v31 = vsel %vm5032_vm10, %v2453_v40, %v2457_v18  ;;  %v4447_v0 = vcombine.low %v6620_v20, %v6553_v44  ;;  %v3527_v49 = vsel %vm3519_vm1, %v3492_v56, %v6298_v38  ;;  %v3482_v18 = vsel %vm3437_vm14, %v4403_v10, %v6316_v54  ;;  %v6654_v7 = vld [vmem:[#allocation2 + $0x9c] sm:$0xf] }
 0x166   : > { %7485 = vst [vmem:[#allocation34_spill] sm:$0xff] %v6614_v8  ;;  %2977 = vrot.lane.b32.xlu1 %v4431_v34, %s4895_s25  ;;  %v2463_v50 = vrot.slane %v2462_v58, 4  ;;  %3937 = vmatmul.mubr.bf16.gmra.mrb[8].mxu0 %v3527_v49  ;;  %v4368_v5 = vrot.slane %v1991_v19, 9  ;;  %v2123_v34 = vrot.slane %v6622_v52, 5  ;;  %v2126_v40 = vrot.slane %v6627_v53, 5 }
 0x167   : > { %v977_v58 = vld [vmem:[#allocation2 + $0x8c] sm:$0x1]  ;;  %v1250_v56 = vshrl.u32 %v6634_v12, 16  ;;  %v3612_v9 = vsel %vm3437_vm14, %v4467_v28, %v6296_v43  ;;  %v1253_v10 = vshll.u32 %v6634_v12, 16  ;;  %v1259_v19 = vshll.u32 %v6643_v57, 16 }
 0x168   : > { %3297 = vrot.lane.b32.xlu0 %v4495_v30, %s4895_s25  ;;  %v2468_v38 = vsel %vm5032_vm10, %v2463_v50, %v2467_v11  ;;  %v2124_v30 = vsel %vm4996_vm5, %v4368_v5, %v2123_v34  ;;  %v2125_v11 = vrot.slane %v2123_v34, 4  ;;  %v1263_v49 = vshrl.u32 %v6643_v57, 16  ;;  %v1380_v5 = vld [vmem:[#allocation2 + $0x84] sm:$0xe]  ;;  %v6679_v34 = vpop.permute.xlu1 %2887  ;;  %v6683_v12 = vld [vmem:[#allocation2 + $0xa0] sm:$0xf] }
 0x169   : > { %v4511_v54 = vcombine.low %v2458_v31, %v2468_v38  ;;  %v1252_v50 = vrot.slane %v1250_v56, 4  ;;  %v1255_v32 = vrot.slane %v1253_v10, 5  ;;  %v1261_v25 = vrot.slane %v1259_v19, 5  ;;  %v6677_v38 = vpop.permute.xlu0 %3365 }
 0x16a   : > { %3073 = vrot.lane.b32.xlu1 %v4447_v0, %s4897_s27  ;;  %v1269_v60 = vshll.u32 %v977_v58, 16  ;;  %v2470_v53 = vshrl.u32 %v6654_v7, 16  ;;  %v3645_v43 = vsel %vm3486_vm15, %v3612_v9, %v6339_v6  ;;  %v2127_v28 = vsel %vm4996_vm5, %v2125_v11, %v2126_v40 }
 0x16b   : > { %v1265_v31 = vrot.slane %v1263_v49, 4  ;;  %v2473_v0 = vshll.u32 %v6654_v7, 16  ;;  %v3516_v56 = vsel %vm3486_vm15, %v3482_v18, %v6318_v39  ;;  %v4480_v10 = vcombine.low %v2124_v30, %v2127_v28 }
 0x16c   : > { %3377 = vrot.lane.b32.xlu0 %v4511_v54, %s4897_s27  ;;  %v1256_v19 = vor.u32 %v1255_v32, %v1252_v50  ;;  %v1271_v54 = vrot.slane %v1269_v60, 5  ;;  %v2472_v9 = vrot.slane %v2470_v53, 4  ;;  %v4496_v40 = vcombine.low %v6654_v7, %v6683_v12  ;;  %v4860_v32 = vld [vmem:[#allocation2 + $0x34] sm:$0xf] }
 0x16d   : > { %v1266_v6 = vor.u32 %v1265_v31, %v1261_v25  ;;  %v2475_v22 = vrot.slane %v2473_v0, 5  ;;  %v4352_v49 = vrot.slane %v1380_v5, 9  ;;  %v1515_v44 = vrot.slane %v6643_v57, 5  ;;  %v6703_v31 = vpop.permute.xlu0 %3191 }
 0x16e   : > { %v1257_v11 = vrot.slane %v1256_v19, 4  ;;  %v1518_v8 = vrot.slane %v977_v58, 5  ;;  %v3691_v39 = vsel %vm3519_vm1, %v3645_v43, %v6390_v29  ;;  %v3563_v60 = vsel %vm3519_vm1, %v3516_v56, %v6341_v4  ;;  %v6701_v43 = vld [vmem:[#allocation2 + $0xa4] sm:$0x1] }
 0x16f   : > { %v1267_v51 = vrot.slane %v1266_v6, 4  ;;  %v1678_v53 = vshll.u32 %v4860_v32, 16  ;;  %v2483_v7 = vshrl.u32 %v6683_v12, 16  ;;  %v1517_v30 = vrot.slane %v1515_v44, 4  ;;  %4032 = vmatprep.mubr.bf16.mxu1 %v3691_v39 }
 0x170   : > { %3203 = vrot.lane.b32.xlu0 %v4480_v10, %s4896_s26  ;;  %v1262_v18 = vsel %vm5032_vm10, %v1257_v11, %v1261_v25  ;;  %v1682_v50 = vshrl.u32 %v4860_v32, 16  ;;  %v1516_v29 = vsel %vm4996_vm5, %v4352_v49, %v1515_v44  ;;  %4033 = vmatmul.mubr.bf16.gmra.mrb[8].mxu1 %v3563_v60  ;;  %v6705_v25 = vpop.permute.xlu1 %2967  ;;  %v2476_v10 = vor.u32 %v2475_v22, %v2472_v9  ;;  %v7489_v44 = vld [vmem:[#allocation21_spill] sm:$0xff] }
 0x171   : > { %v1272_v28 = vsel %vm5032_vm10, %v1267_v51, %v1271_v54  ;;  %v1680_v4 = vrot.slane %v1678_v53, 5  ;;  %v1519_v5 = vsel %vm4996_vm5, %v1517_v30, %v1518_v8  ;;  %v1837_v19 = vshrl.u32 %v6620_v20, 16  ;;  %v6719_v53 = vld [vmem:[#allocation2 + $0x90] sm:$0xf] }
 0x172   : > { %v4416_v0 = vcombine.low %v1262_v18, %v1272_v28  ;;  %v1684_v56 = vrot.slane %v1682_v50, 4  ;;  %v1840_v51 = vshll.u32 %v6620_v20, 16  ;;  %v7490_v54 = vshll.u32 %v7489_v44, 16  ;;  %v7491_v18 = vld [vmem:[#allocation36_spill] sm:$0xff] }
 0x173   : > { %v2479_v11 = vshll.u32 %v6683_v12, 16  ;;  %v4432_v49 = vcombine.low %v1516_v29, %v1519_v5  ;;  %v2485_v60 = vrot.slane %v2483_v7, 4  ;;  %v2489_v8 = vshll.u32 %v6701_v43, 16  ;;  %v4861_v28 = vld [vmem:[#allocation2 + $0x24] sm:$0xf] }
 0x174   : > { %3299 = vrot.lane.b32.xlu0 %v4496_v40, %s4895_s25  ;;  %v1690_v6 = vrot.slane %v7490_v54, 5  ;;  %2899 = vrot.lane.b32.xlu1 %v4416_v0, %s4896_s26  ;;  %v1685_v39 = vor.u32 %v1684_v56, %v1680_v4  ;;  %v2477_v32 = vrot.slane %v2476_v10, 4  ;;  %v1681_v30 = vsel %vm5032_vm10, %v7491_v18, %v1680_v4  ;;  %v4862_v29 = vld [vmem:[#allocation2 + $0x28] sm:$0xf]  ;;  %v6729_v10 = vpop.permute.xlu0 %3287  ;;  %v6731_v54 = vpop.permute.xlu1 %3063  ;;  %s7214_s26 = scalar_lea.vmem %s7301_s4, %s4569_s19 }
 0x175   : > { %v2481_v20 = vrot.slane %v2479_v11, 5  ;;  %v4392_v7 = vcombine.low %v4861_v28, %v4862_v29  ;;  %v6725_v0 = vrot.slane %v1837_v19, 4  ;;  %v6727_v5 = vrot.slane %v1840_v51, 5  ;;  %v4865_v29 = vld [vmem:[#allocation2 + $0xb8] sm:$0xf] }
 0x176   : > { %v1686_v50 = vrot.slane %v1685_v39, 4  ;;  %v2491_v44 = vrot.slane %v2489_v8, 5  ;;  %v4448_v4 = vcombine.low %v6719_v53, %v6622_v52  ;;  %v4863_v39 = vld [vmem:[#allocation2 + $0xc4] sm:$0xf]  ;;  %v4864_v8 = vld [vmem:[#allocation2 + $0xb4] sm:$0xf] }
 0x177   : > { %v2486_v56 = vor.u32 %v2485_v60, %v2481_v20  ;;  %v1966_v18 = vshll.u32 %v4863_v39, 16  ;;  %v1970_v19 = vshrl.u32 %v4863_v39, 16  ;;  %v2482_v51 = vsel %vm5032_vm10, %v2477_v32, %v2481_v20  ;;  %v7493_v20 = vld [vmem:[#allocation24_spill] sm:$0xff] }
 0x178   : > { %2979 = vrot.lane.b32.xlu1 %v4432_v49, %s4895_s25  ;;  %v1691_v11 = vsel %vm5032_vm10, %v1686_v50, %v1690_v6  ;;  %v4404_v40 = vcombine.low %v4864_v8, %v4865_v29  ;;  %v3449_v49 = vsel %vm3437_vm14, %v4392_v7, %v6392_v13  ;;  %v4866_v6 = vld [vmem:[#allocation2 + $0x40] sm:$0xf]  ;;  %v6759_v29 = vpop.permute.xlu0 %3367  ;;  %vm4210_vm0 = vcmask 64512  }
 0x179   : > { %v4456_v28 = vcombine.low %v1681_v30, %v1691_v11  ;;  %v2487_v60 = vrot.slane %v2486_v56, 4  ;;  %v1968_v9 = vrot.slane %v1966_v18, 5  ;;  %v1972_v22 = vrot.slane %v1970_v19, 4  ;;  %v7492_v11 = vld [vmem:[#allocation33_spill] sm:$0xff] }
 0x17a   : > { %v1702_v50 = vshll.u32 %v4866_v6, 16  ;;  %v3494_v32 = vsel %vm3486_vm15, %v3449_v49, %v7492_v11  ;;  %v7494_v56 = vshll.u32 %v7493_v20, 16  ;;  %v3485_v19 = vsel %vm3437_vm14, %v4404_v40, %v6520_v26 }
 0x17b   : > { %v3579_v58 = vsel %vm3437_vm14, %v4456_v28, %v6437_v37  ;;  %v2492_v30 = vsel %vm5032_vm10, %v2487_v60, %v2491_v44  ;;  %v1973_v7 = vor.u32 %v1972_v22, %v1968_v9  ;;  %v3530_v18 = vsel %vm3519_vm1, %v3494_v32, %v6485_v48  ;;  %v2589_v37 = vld [vmem:[#allocation2 + $0x18] sm:$0xe]  ;;  %v4867_v22 = vld [vmem:[#allocation2 + $0x30] sm:$0xf] }
 0x17c   : > { %v1978_v39 = vrot.slane %v7494_v56, 5  ;;  %v4512_v8 = vcombine.low %v2482_v51, %v2492_v30  ;;  %3075 = vrot.lane.b32.xlu1 %v4448_v4, %s4897_s27  ;;  %v3623_v13 = vsel %vm3486_vm15, %v3579_v58, %v6457_v17  ;;  %v1704_v28 = vrot.slane %v1702_v50, 5  ;;  %v6761_v51 = vpop.permute.xlu1 %2889  ;;  %v7495_v17 = vld [vmem:[#allocation37_spill] sm:$0xff]  ;;  %v4868_v4 = vld [vmem:[#allocation2 + $0x34] sm:$0xf]  ;;  %v7496_v50 = vld [vmem:[#allocation4_spill] sm:$0xff] }
 0x17d   : > { %v3658_v44 = vsel %vm3519_vm1, %v3623_v13, %v6459_v36  ;;  %v1706_v60 = vshrl.u32 %v4866_v6, 16  ;;  %v1969_v58 = vsel %vm5032_vm10, %v7495_v17, %v1968_v9  ;;  %v1974_v48 = vrot.slane %v1973_v7, 4  ;;  %v7498_v32 = vld [vmem:[#allocation31_spill] sm:$0xff]  ;;  %v4869_v7 = vld [vmem:[#allocation2 + $0x4c] sm:$0xf] }
 0x17e   : > { %3379 = vrot.lane.b32.xlu0 %v4512_v8, %s4897_s27  ;;  %3944 = vmatprep.mubr.bf16.mxu0 %v3658_v44  ;;  %v3518_v36 = vsel %vm3486_vm15, %v3485_v19, %v6522_v47  ;;  %v4393_v26 = vcombine.low %v4867_v22, %v4868_v4  ;;  %v4373_v6 = vrot.slane %v2589_v37, 9  ;;  %v7497_v30 = vrot.slane %v7496_v50, 5  ;;  %v7500_v8 = vld [vmem:[#allocation16_spill] sm:$0xff]  ;;  %v7502_v19 = vld [vmem:[#allocation46_spill] sm:$0xff] }
 0x17f   : > { %3945 = vmatmul.mubr.bf16.gmra.mrb[12].mxu0 %v3530_v18  ;;  %v3566_v40 = vsel %vm3519_vm1, %v3518_v36, %v6548_v61  ;;  %v1708_v49 = vrot.slane %v1706_v60, 4  ;;  %v1979_v9 = vsel %vm5032_vm10, %v1974_v48, %v1978_v39  ;;  %v7499_v20 = vshll.u32 %v7498_v32, 16  ;;  %v7501_v47 = vld [vmem:[#allocation40_spill] sm:$0xff]  ;;  %v7504_v48 = vld [vmem:[#allocation13_spill] sm:$0xff]  ;;  %v6796_v32 = vpop.permute.xlu0 %3193 }
 0x180   : > { %v2657_v11 = vrot.slane %v7497_v30, 4  ;;  %v4518_v13 = vcombine.low %v7501_v47, %v7500_v8  ;;  %v1726_v44 = vshll.u32 %v4869_v7, 16  ;;  %v4468_v18 = vcombine.low %v1969_v58, %v1979_v9  ;;  %v7529_v8 = vld [vmem:[#allocation51_spill] sm:$0xff] }
 0x181   : > { %v1714_v56 = vrot.slane %v7499_v20, 5  ;;  %v1705_v61 = vsel %vm5032_vm10, %v7502_v19, %v1704_v28  ;;  %v1709_v37 = vor.u32 %v1708_v49, %v1704_v28  ;;  %v7503_v60 = vmov %v7497_v30  ;;  %v2591_v30 = vld [vmem:[#allocation2 + $0x30] sm:$0xe] }
 0x182   : > { %v2656_v17 = vsel %vm4996_vm5, %v4373_v6, %v7503_v60  ;;  %v3452_v39 = vsel %vm3437_vm14, %v4393_v26, %v6572_v46  ;;  %v7505_v36 = vrot.slane %v7504_v48, 5  ;;  %v1728_v4 = vrot.slane %v1726_v44, 5  ;;  %v2592_v6 = vld [vmem:[#allocation2 + $0x3c] sm:$0xe]  ;;  %v6798_v46 = vpop.permute.xlu1 %2969 }
 0x183   : > { %v1730_v58 = vshrl.u32 %v4869_v7, 16  ;;  %v3615_v9 = vsel %vm3437_vm14, %v4468_v18, %v6483_v42  ;;  %v1710_v28 = vrot.slane %v1709_v37, 4  ;;  %v3496_v49 = vsel %vm3486_vm15, %v3452_v39, %v6605_v35  ;;  %v7506_v7 = vld [vmem:[#allocation43_spill] sm:$0xff] }
 0x184   : > { %v2659_v22 = vsel %vm4996_vm5, %v2657_v11, %v7505_v36  ;;  %v3647_v26 = vsel %vm3486_vm15, %v3615_v9, %v6546_v27  ;;  %v3533_v11 = vsel %vm3519_vm1, %v3496_v49, %v6647_v24  ;;  %v7507_v44 = vshll.u32 %v7506_v7, 16  ;;  %v7508_v37 = vld [vmem:[#allocation19_spill] sm:$0xff]  ;;  %v4871_v36 = vld [vmem:[#allocation2 + $0x40] sm:$0xf]  ;;  %v7510_v9 = vld [vmem:[#allocation6_spill] sm:$0xff] }
 0x185   : > { %v4517_v50 = vcombine.low %v2656_v17, %v2659_v22  ;;  %v1732_v20 = vrot.slane %v1730_v58, 4  ;;  %v3694_v18 = vsel %vm3519_vm1, %v3647_v26, %v6570_v23  ;;  %v1715_v35 = vsel %vm5032_vm10, %v1710_v28, %v1714_v56  ;;  %v4870_v48 = vld [vmem:[#allocation2 + $0x3c] sm:$0xf]  ;;  %v2593_v58 = vld [vmem:[#allocation2 + $0x48] sm:$0xe]  ;;  %v7514_v26 = vld [vmem:[#allocation28_spill] sm:$0xff] }
 0x186   : > { %v1738_v42 = vrot.slane %v7507_v44, 5  ;;  %v4375_v19 = vrot.slane %v2591_v30, 9  ;;  %v7509_v60 = vrot.slane %v7508_v37, 5  ;;  %4040 = vmatprep.mubr.bf16.mxu1 %v3694_v18  ;;  %v4457_v39 = vcombine.low %v1705_v61, %v1715_v35  ;;  %v7512_v30 = vld [vmem:[#allocation20_spill] sm:$0xff]  ;;  %v2594_v35 = vld [vmem:[#allocation2 + $0x54] sm:$0xe] }
 0x187   : > { %v1733_v27 = vor.u32 %v1732_v20, %v1728_v4  ;;  %v4394_v24 = vcombine.low %v4870_v48, %v4871_v36  ;;  %v4376_v22 = vrot.slane %v2592_v6, 9  ;;  %4041 = vmatmul.mubr.bf16.gmra.mrb[12].mxu1 %v3566_v40  ;;  %v1729_v23 = vsel %vm5032_vm10, %v7510_v9, %v1728_v4  ;;  %v7517_v37 = vld [vmem:[#allocation29_spill] sm:$0xff]  ;;  %v6844_v48 = vpop.permute.xlu0 %3289  ;;  %v6846_v36 = vpop.permute.xlu1 %3065 }
 0x188   : > { %v2671_v17 = vrot.slane %v7509_v60, 4  ;;  %v7511_v49 = vmov %v7509_v60  ;;  %v7513_v28 = vrot.slane %v7512_v30, 5  ;;  %v7515_v20 = vrot.slane %v7514_v26, 5  ;;  %4737 = vmatprep.mubr.msk.bf16.mxu1 %vm3437_vm14, %v4517_v50  ;;  %v7519_v50 = vld [vmem:[#allocation41_spill] sm:$0xff] }
 0x189   : > { %v2670_v56 = vsel %vm4996_vm5, %v4375_v19, %v7511_v49  ;;  %v3582_v40 = vsel %vm3437_vm14, %v4457_v39, %v6603_v59  ;;  %v1734_v6 = vrot.slane %v1733_v27, 4  ;;  %v7518_v60 = vrot.slane %v7517_v37, 5 }
 0x18a   : > { %v2673_v61 = vsel %vm4996_vm5, %v2671_v17, %v7513_v28  ;;  %v2678_v7 = vrot.slane %v7515_v20, 4  ;;  %v7516_v44 = vmov %v7515_v20  ;;  %v3625_v19 = vsel %vm3486_vm15, %v3582_v40, %v6645_v63  ;;  %v7522_v28 = vld [vmem:[#allocation42_spill] sm:$0xff]  ;;  %v4872_v20 = vld [vmem:[#allocation2 + $0x58] sm:$0xf] }
 0x18b   : > { %v4519_v4 = vcombine.low %v2670_v56, %v2673_v61  ;;  %v6832_v18 = vsel %vm4996_vm5, %v4376_v22, %v7516_v44  ;;  %v4377_v59 = vrot.slane %v2593_v58, 9  ;;  %v7520_v39 = vrot.slane %v7519_v50, 5 }
 0x18c   : > { %v6840_v17 = vsel %vm4996_vm5, %v2678_v7, %v7518_v60  ;;  %v3661_v22 = vsel %vm3519_vm1, %v3625_v19, %v6677_v38  ;;  %v1739_v63 = vsel %vm5032_vm10, %v1734_v6, %v1738_v42  ;;  %v3455_v9 = vsel %vm3437_vm14, %v4394_v24, %v6679_v34  ;;  %v7524_v24 = vld [vmem:[#allocation49_spill] sm:$0xff]  ;;  %v2595_v6 = vld [vmem:[#allocation2 + $0x60] sm:$0xe] }
 0x18d   : > { %v2685_v27 = vrot.slane %v7520_v39, 4  ;;  %v4520_v49 = vcombine.low %v6832_v18, %v6840_v17  ;;  %3952 = vmatprep.mubr.bf16.mxu0 %v3661_v22  ;;  %v4458_v58 = vcombine.low %v1729_v23, %v1739_v63  ;;  %v7521_v56 = vmov %v7520_v39  ;;  %v4874_v60 = vld [vmem:[#allocation2 + $0x4c] sm:$0xf]  ;;  %v7527_v39 = vld [vmem:[#allocation50_spill] sm:$0xff] }
 0x18e   : > { %v6860_v30 = vsel %vm4996_vm5, %v4377_v59, %v7521_v56  ;;  %v7523_v61 = vrot.slane %v7522_v28, 5  ;;  %v4378_v42 = vrot.slane %v2594_v35, 9  ;;  %3953 = vmatmul.mubr.bf16.gmra.mrb[16].mxu0 %v3533_v11  ;;  %v7525_v26 = vrot.slane %v7524_v24, 5  ;;  %v4873_v35 = vld [vmem:[#allocation2 + $0x48] sm:$0xf]  ;;  %v3370_v28 = vpop.permute.xlu0 %3369 }
 0x18f   : > { %v1750_v7 = vshll.u32 %v4872_v20, 16  ;;  %v1754_v40 = vshrl.u32 %v4872_v20, 16  ;;  %v3585_v44 = vsel %vm3437_vm14, %v4458_v58, %v6703_v31  ;;  %v3498_v19 = vsel %vm3486_vm15, %v3455_v9, %v6705_v25  ;;  %v2596_v63 = vld [vmem:[#allocation2 + $0x6c] sm:$0xe]  ;;  %4738 = vmatmul.mubr.msk.bf16.vlgmr.msra.gmra.mrb[16].mxu1 %vm3437_vm14, %v4518_v13 }
 0x190   : > { %v6866_v38 = vsel %vm4996_vm5, %v2685_v27, %v7523_v61  ;;  %v2692_v23 = vrot.slane %v7525_v26, 4  ;;  %v7526_v37 = vmov %v7525_v26  ;;  %v4395_v59 = vcombine.low %v4873_v35, %v4874_v60  ;;  %v6900_v61 = vpop.permute.xlu1 %2891  ;;  %4741 = vmatprep.mubr.msk.bf16.mxu1 %vm3437_vm14, %v4519_v4  ;;  %v7532_v26 = vld [vmem:[#allocation11_spill] sm:$0xff] }
 0x191   : > { %v4521_v34 = vcombine.low %v6860_v30, %v6866_v38  ;;  %v6880_v11 = vsel %vm4996_vm5, %v4378_v42, %v7526_v37  ;;  %v3627_v50 = vsel %vm3486_vm15, %v3585_v44, %v6729_v10  ;;  %v7528_v27 = vrot.slane %v7527_v39, 5  ;;  %v4875_v37 = vld [vmem:[#allocation2 + $0x64] sm:$0xf] }
 0x192   : > { %v1752_v22 = vrot.slane %v1750_v7, 5  ;;  %v1756_v25 = vrot.slane %v1754_v40, 4  ;;  %v3664_v9 = vsel %vm3519_vm1, %v3627_v50, %v6759_v29  ;;  %v3536_v10 = vsel %vm3519_vm1, %v3498_v19, %v6731_v54 }
 0x193   : > { %v6888_v31 = vsel %vm4996_vm5, %v2692_v23, %v7528_v27  ;;  %v4379_v56 = vrot.slane %v2595_v6, 9  ;;  %3960 = vmatprep.mubr.bf16.mxu0 %v3664_v9  ;;  %v7530_v47 = vshll.u32 %v7529_v8, 16  ;;  %v3458_v29 = vsel %vm3437_vm14, %v4395_v59, %v6761_v51  ;;  %v2597_v59 = vld [vmem:[#allocation2 + $0x78] sm:$0xe] }
 0x194   : > { %v4522_v58 = vcombine.low %v6880_v11, %v6888_v31  ;;  %v1757_v42 = vor.u32 %v1756_v25, %v1752_v22  ;;  %v7531_v24 = vrot.slane %v7474_v21, 5  ;;  %v1753_v23 = vsel %vm5032_vm10, %v7532_v26, %v1752_v22  ;;  %v2598_v25 = vld [vmem:[#allocation2 + $0x84] sm:$0xe]  ;;  %v2972_v26 = vpop.permute.xlu1 %2971  ;;  %v4879_v31 = vld [vmem:[#allocation2 + $0x7c] sm:$0xf] }
 0x195   : > { %v1762_v13 = vrot.slane %v7530_v47, 5  ;;  %v4380_v7 = vrot.slane %v2596_v63, 9  ;;  %v7534_v40 = vrot.slane %v6290_v33, 5  ;;  %v7535_v51 = vrot.slane %v7475_v62, 5 }
 0x196   : > { %v2699_v54 = vrot.slane %v7531_v24, 4  ;;  %v7533_v20 = vmov %v7531_v24  ;;  %v1758_v44 = vrot.slane %v1757_v42, 4  ;;  %v1774_v35 = vshll.u32 %v4875_v37, 16  ;;  %3961 = vmatmul.mubr.bf16.gmra.mrb[20].mxu0 %v3536_v10  ;;  %v7538_v42 = vld [vmem:[#allocation9_spill] sm:$0xff]  ;;  %v4876_v10 = vld [vmem:[#allocation2 + $0x54] sm:$0xf] }
 0x197   : > { %v6916_v4 = vsel %vm4996_vm5, %v4379_v56, %v7533_v20  ;;  %v2706_v6 = vrot.slane %v7534_v40, 4  ;;  %v1778_v60 = vshrl.u32 %v4875_v37, 16  ;;  %v3500_v21 = vsel %vm3486_vm15, %v3458_v29, %v6798_v46  ;;  %v3196_v29 = vpop.permute.xlu0 %3195  ;;  %4742 = vmatmul.mubr.msk.bf16.gmra.mrb[20].mxu1 %vm3437_vm14, %v4520_v49  ;;  %v7542_v37 = vld [vmem:[#allocation47_spill] sm:$0xff] }
 0x198   : > { %v6924_v19 = vsel %vm4996_vm5, %v2699_v54, %v7535_v51  ;;  %v7536_v39 = vmov %v7534_v40  ;;  %v7537_v62 = vrot.slane %v6292_v45, 5  ;;  %v1763_v46 = vsel %vm5032_vm10, %v1758_v44, %v1762_v13  ;;  %v2599_v51 = vld [vmem:[#allocation2 + $0x90] sm:$0xe]  ;;  %4745 = vmatprep.mubr.msk.bf16.mxu1 %vm3437_vm14, %v4521_v34 }
 0x199   : > { %v4523_v50 = vcombine.low %v6916_v4, %v6924_v19  ;;  %v6934_v27 = vsel %vm4996_vm5, %v4380_v7, %v7536_v39  ;;  %v1776_v9 = vrot.slane %v1774_v35, 5  ;;  %v1780_v33 = vrot.slane %v1778_v60, 4  ;;  %v4877_v7 = vld [vmem:[#allocation2 + $0x58] sm:$0xf]  ;;  %v7562_v19 = vld [vmem:[#allocation14_spill] sm:$0xff] }
 0x19a   : > { %v6940_v22 = vsel %vm4996_vm5, %v2706_v6, %v7537_v62  ;;  %v4459_v56 = vcombine.low %v1753_v23, %v1763_v46  ;;  %v7539_v8 = vshll.u32 %v7538_v42, 16  ;;  %v4381_v45 = vrot.slane %v2597_v59, 9  ;;  %v7548_v46 = vld [vmem:[#allocation34_spill] sm:$0xff] }
 0x19b   : > { %v4524_v63 = vcombine.low %v6934_v27, %v6940_v22  ;;  %v7540_v24 = vrot.slane %v6427_v55, 5  ;;  %v1781_v20 = vor.u32 %v1780_v33, %v1776_v9  ;;  %v4396_v40 = vcombine.low %v4876_v10, %v4877_v7  ;;  %v2600_v27 = vld [vmem:[#allocation2 + $0x9c] sm:$0xe]  ;;  %v7579_v22 = vld [vmem:[#allocation30_spill] sm:$0xff] }
 0x19c   : > { %v1786_v47 = vrot.slane %v7539_v8, 5  ;;  %v4382_v13 = vrot.slane %v2598_v25, 9  ;;  %v7541_v6 = vrot.slane %v6542_v1, 5  ;;  %v3588_v23 = vsel %vm3437_vm14, %v4459_v56, %v6796_v32  ;;  %v7547_v25 = vld [vmem:[#allocation45_spill] sm:$0xff] }
 0x19d   : > { %v2713_v54 = vrot.slane %v7540_v24, 4  ;;  %v1777_v35 = vsel %vm5032_vm10, %v7542_v37, %v1776_v9  ;;  %v7543_v60 = vmov %v7540_v24  ;;  %v7544_v39 = vrot.slane %v6429_v3, 5  ;;  %v3068_v24 = vpop.permute.xlu1 %3067 }
 0x19e   : > { %v2720_v44 = vrot.slane %v7541_v6, 4  ;;  %v6965_v59 = vsel %vm4996_vm5, %v4381_v45, %v7543_v60  ;;  %v3629_v32 = vsel %vm3486_vm15, %v3588_v23, %v6844_v48  ;;  %v1782_v17 = vrot.slane %v1781_v20, 4  ;;  %v3292_v45 = vpop.permute.xlu0 %3291  ;;  %v2602_v23 = vld [vmem:[#allocation2 + $0xb4] sm:$0xe] }
 0x19f   : > { %v6971_v18 = vsel %vm4996_vm5, %v2713_v54, %v7544_v39  ;;  %v7545_v49 = vmov %v7541_v6  ;;  %v3667_v62 = vsel %vm3519_vm1, %v3629_v32, %v3370_v28  ;;  %v3539_v30 = vsel %vm3519_vm1, %v3500_v21, %v6846_v36  ;;  %v7551_v21 = vld [vmem:[#allocation52_spill] sm:$0xff]  ;;  %v7554_v39 = vld [vmem:[#allocation10_spill] sm:$0xff]  ;;  %4746 = vmatmul.mubr.msk.bf16.gmra.mrb[24].mxu1 %vm3437_vm14, %v4522_v58 }
 0x1a0   : > { %v4525_v55 = vcombine.low %v6965_v59, %v6971_v18  ;;  %v6985_v3 = vsel %vm4996_vm5, %v4382_v13, %v7545_v49  ;;  %v7546_v38 = vrot.slane %v6559_v15, 5  ;;  %v4383_v34 = vrot.slane %v2599_v51, 9  ;;  %3968 = vmatprep.mubr.bf16.mxu0 %v3667_v62  ;;  %v4878_v13 = vld [vmem:[#allocation2 + $0x70] sm:$0xf]  ;;  %v2601_v51 = vld [vmem:[#allocation2 + $0xa8] sm:$0xe]  ;;  %4749 = vmatprep.mubr.msk.bf16.mxu1 %vm3437_vm14, %v4523_v50 }
 0x1a1   : > { %v7549_v9 = vor.u32 %v7547_v25, %v7548_v46  ;;  %v1787_v33 = vsel %vm5032_vm10, %v1782_v17, %v1786_v47  ;;  %v7550_v36 = vrot.slane %v6578_v16, 5  ;;  %v1856_v56 = vshll.u32 %v7551_v21, 16  ;;  %3969 = vmatmul.mubr.bf16.gmra.mrb[24].mxu0 %v3539_v30  ;;  %v7556_v62 = vld [vmem:[#allocation3_spill] sm:$0xff]  ;;  %v7558_v46 = vld [vmem:[#allocation8_spill] sm:$0xff] }
 0x1a2   : > { %v6994_v48 = vsel %vm4996_vm5, %v2720_v44, %v7546_v38  ;;  %v1843_v42 = vor.u32 %v6727_v5, %v6725_v0  ;;  %v4460_v8 = vcombine.low %v1777_v35, %v1787_v33  ;;  %v3461_v47 = vsel %vm3437_vm14, %v4396_v40, %v6900_v61 }
 0x1a3   : > { %v6999_v1 = vrot.slane %v7549_v9, 4  ;;  %v4526_v28 = vcombine.low %v6985_v3, %v6994_v48  ;;  %v2727_v15 = vrot.slane %v7550_v36, 4  ;;  %v7552_v54 = vmov %v7550_v36  ;;  %v3372_v33 = vpop.permute.xlu0 %3371 }
 0x1a4   : > { %v7014_v20 = vsel %vm4996_vm5, %v4383_v34, %v7552_v54  ;;  %v7553_v10 = vrot.slane %v6598_v14, 5  ;;  %v1798_v6 = vshll.u32 %v4878_v13, 16  ;;  %v1802_v44 = vshrl.u32 %v4878_v13, 16  ;;  %v2603_v54 = vld [vmem:[#allocation2 + $0xc0] sm:$0xe] }
 0x1a5   : > { %v1861_v16 = vshrl.u32 %v6719_v53, 16  ;;  %v1864_v37 = vshll.u32 %v6719_v53, 16  ;;  %v3502_v35 = vsel %vm3486_vm15, %v3461_v47, %v2972_v26  ;;  %v7555_v32 = vshll.u32 %v7554_v39, 16 }
 0x1a6   : > { %v7022_v7 = vsel %vm4996_vm5, %v2727_v15, %v7553_v10  ;;  %v3542_v14 = vsel %vm3519_vm1, %v3502_v35, %v3068_v24  ;;  %v1800_v40 = vrot.slane %v1798_v6, 5  ;;  %v1804_v60 = vrot.slane %v1802_v44, 4  ;;  %v7565_v6 = vld [vmem:[#allocation17_spill] sm:$0xff] }
 0x1a7   : > { %v4527_v61 = vcombine.low %v7014_v20, %v7022_v7  ;;  %v1810_v17 = vrot.slane %v7555_v32, 5  ;;  %v3591_v49 = vsel %vm3437_vm14, %v4460_v8, %v3196_v29  ;;  %v4385_v53 = vrot.slane %v2601_v51, 9  ;;  %v7560_v29 = vld [vmem:[#allocation44_spill] sm:$0xff]  ;;  %4750 = vmatmul.mubr.msk.bf16.gmra.mrb[28].mxu1 %vm3437_vm14, %v4524_v63 }
 0x1a8   : > { %v7557_v26 = vrot.slane %v7556_v62, 5  ;;  %v4386_v38 = vrot.slane %v2602_v23, 9  ;;  %v3631_v34 = vsel %vm3486_vm15, %v3591_v49, %v3292_v45  ;;  %v1805_v25 = vor.u32 %v1804_v60, %v1800_v40  ;;  %v2604_v23 = vld [vmem:[#allocation2 + $0xcc] sm:$0xe]  ;;  %v7567_v62 = vld [vmem:[#allocation22_spill] sm:$0xff]  ;;  %4753 = vmatprep.mubr.msk.bf16.mxu1 %vm3437_vm14, %v4525_v55 }
 0x1a9   : > { %v7559_v9 = vrot.slane %v7558_v46, 5  ;;  %v1822_v58 = vshll.u32 %v4879_v31, 16  ;;  %v1801_v36 = vsel %vm5032_vm10, %v7560_v29, %v1800_v40  ;;  %v7563_v50 = vrot.slane %v7562_v19, 5 }
 0x1aa   : > { %v2741_v30 = vrot.slane %v7557_v26, 4  ;;  %v7561_v15 = vmov %v7557_v26  ;;  %v3670_v47 = vsel %vm3519_vm1, %v3631_v34, %v3372_v33  ;;  %v1806_v10 = vrot.slane %v1805_v25, 4  ;;  %v7574_v33 = vld [vmem:[#allocation35_spill] sm:$0xff] }
 0x1ab   : > { %v2748_v11 = vrot.slane %v7559_v9, 4  ;;  %v7053_v4 = vsel %vm4996_vm5, %v4385_v53, %v7561_v15  ;;  %v7564_v45 = vmov %v7559_v9  ;;  %v7566_v44 = vrot.slane %v7565_v6, 5  ;;  %3976 = vmatprep.mubr.bf16.mxu0 %v3670_v47  ;;  %v7578_v47 = vld [vmem:[#allocation39_spill] sm:$0xff] }
 0x1ac   : > { %v7059_v8 = vsel %vm4996_vm5, %v2741_v30, %v7563_v50  ;;  %v7065_v24 = vsel %vm4996_vm5, %v4386_v38, %v7564_v45  ;;  %v2732_v35 = vrot.slane %v6683_v12, 5  ;;  %v1824_v60 = vrot.slane %v1822_v58, 5  ;;  %3977 = vmatmul.mubr.bf16.gmra.mrb[28].mxu0 %v3542_v14 }
 0x1ad   : > { %v4529_v13 = vcombine.low %v7053_v4, %v7059_v8  ;;  %v7074_v51 = vsel %vm4996_vm5, %v2748_v11, %v7566_v44  ;;  %v1826_v39 = vshrl.u32 %v4879_v31, 16  ;;  %v1863_v32 = vrot.slane %v1861_v16, 4  ;;  %v7570_v11 = vld [vmem:[#allocation23_spill] sm:$0xff]  ;;  %v4882_v4 = vld [vmem:[#allocation2 + $0x6c] sm:$0xf] }
 0x1ae   : > { %v4530_v40 = vcombine.low %v7065_v24, %v7074_v51  ;;  %v1811_v49 = vsel %vm5032_vm10, %v1806_v10, %v1810_v17  ;;  %v4387_v53 = vrot.slane %v2603_v54, 9  ;;  %v7568_v26 = vrot.slane %v7567_v62, 5  ;;  %v7572_v17 = vld [vmem:[#allocation27_spill] sm:$0xff]  ;;  %v4883_v8 = vld [vmem:[#allocation2 + $0x70] sm:$0xf] }
 0x1af   : > { %v1866_v38 = vrot.slane %v1864_v37, 5  ;;  %v4461_v34 = vcombine.low %v1801_v36, %v1811_v49  ;;  %v1828_v25 = vrot.slane %v1826_v39, 4  ;;  %v4388_v46 = vrot.slane %v2604_v23, 9  ;;  %v7575_v36 = vld [vmem:[#allocation32_spill] sm:$0xff]  ;;  %v2894_v49 = vpop.permute.xlu1 %2893  ;;  %4754 = vmatmul.mubr.msk.bf16.gmra.mrb[32].mxu1 %vm3437_vm14, %v4526_v28 }
 0x1b0   : > { %v2755_v30 = vrot.slane %v7568_v26, 4  ;;  %v7569_v12 = vmov %v7568_v26  ;;  %v7571_v16 = vrot.slane %v7570_v11, 5  ;;  %v7573_v31 = vrot.slane %v7572_v17, 5  ;;  %4757 = vmatprep.mubr.msk.bf16.mxu1 %vm3437_vm14, %v4527_v61 }
 0x1b1   : > { %v7087_v9 = vsel %vm4996_vm5, %v4387_v53, %v7569_v12  ;;  %v1846_v37 = vshll.u32 %v7574_v33, 16  ;;  %v1829_v29 = vor.u32 %v1828_v25, %v1824_v60  ;;  %v7576_v15 = vshll.u32 %v7575_v36, 16 }
 0x1b2   : > { %v7093_v14 = vsel %vm4996_vm5, %v2755_v30, %v7571_v16  ;;  %v2762_v58 = vrot.slane %v7573_v31, 4  ;;  %v7577_v45 = vmov %v7573_v31  ;;  %v1880_v10 = vshll.u32 %v7578_v47, 16  ;;  %v4880_v31 = vld [vmem:[#allocation2 + $0x60] sm:$0xf] }
 0x1b3   : > { %v1834_v19 = vrot.slane %v7576_v15, 5  ;;  %v4531_v50 = vcombine.low %v7087_v9, %v7093_v14  ;;  %v7110_v54 = vsel %vm4996_vm5, %v4388_v46, %v7577_v45  ;;  %v7580_v63 = vrot.slane %v7579_v22, 5 }
 0x1b4   : > { %v1848_v44 = vrot.slane %v1846_v37, 5  ;;  %v1850_v23 = vshrl.u32 %v7574_v33, 16  ;;  %v1867_v39 = vor.u32 %v1866_v38, %v1863_v32  ;;  %v1825_v53 = vsel %vm5032_vm10, %v6999_v1, %v1824_v60  ;;  %v3198_v1 = vpop.permute.xlu0 %3197 }
 0x1b5   : > { %v2764_v6 = vsel %vm4996_vm5, %v2762_v58, %v7580_v63  ;;  %v1830_v62 = vrot.slane %v1829_v29, 4  ;;  %v1844_v18 = vrot.slane %v1843_v42, 4  ;;  %v1870_v26 = vshll.u32 %v6622_v52, 16  ;;  %v4881_v58 = vld [vmem:[#allocation2 + $0x64] sm:$0xf] }
 0x1b6   : > { %v4532_v59 = vcombine.low %v7110_v54, %v2764_v6  ;;  %v1852_v55 = vrot.slane %v1850_v23, 4  ;;  %v1874_v30 = vshrl.u32 %v6622_v52, 16  ;;  %v2735_v25 = vrot.slane %v6701_v43, 5  ;;  %v2974_v43 = vpop.permute.xlu1 %2973 }
 0x1b7   : > { %v4384_v32 = vrot.slane %v2600_v27, 9  ;;  %v2734_v38 = vrot.slane %v2732_v35, 4  ;;  %v1835_v46 = vsel %vm5032_vm10, %v1830_v62, %v1834_v19  ;;  %v1858_v9 = vrot.slane %v1856_v56, 5 }
 0x1b8   : > { %v4462_v60 = vcombine.low %v1825_v53, %v1835_v46  ;;  %v1853_v12 = vor.u32 %v1852_v55, %v1848_v44  ;;  %v1872_v0 = vrot.slane %v1870_v26, 5  ;;  %v1868_v5 = vrot.slane %v1867_v39, 4  ;;  %v3294_v20 = vpop.permute.xlu0 %3293  ;;  %v4884_v39 = vld [vmem:[#allocation2 + $0x78] sm:$0xf] }
 0x1b9   : > { %v1876_v42 = vrot.slane %v1874_v30, 4  ;;  %v1849_v11 = vsel %vm5032_vm10, %v1844_v18, %v1848_v44  ;;  %v1882_v14 = vrot.slane %v1880_v10, 5  ;;  %v2733_v21 = vsel %vm4996_vm5, %v4384_v32, %v2732_v35 }
 0x1ba   : > { %v1854_v52 = vrot.slane %v1853_v12, 4  ;;  %v2736_v56 = vsel %vm4996_vm5, %v2734_v38, %v2735_v25  ;;  %v1873_v48 = vsel %vm5032_vm10, %v1868_v5, %v1872_v0  ;;  %v4397_v33 = vcombine.low %v4880_v31, %v4881_v58  ;;  %v3070_v37 = vpop.permute.xlu1 %3069  ;;  %v7581_v12 = vld [vmem:[#allocation38_spill] sm:$0xff] }
 0x1bb   : > { %v1877_v16 = vor.u32 %v1876_v42, %v1872_v0  ;;  %v4528_v7 = vcombine.low %v2733_v21, %v2736_v56  ;;  %v3594_v29 = vsel %vm3437_vm14, %v4461_v34, %v3198_v1 }
 0x1bc   : > { %v1859_v17 = vsel %vm5032_vm10, %v1854_v52, %v1858_v9  ;;  %v3464_v2 = vsel %vm3437_vm14, %v4397_v33, %v2894_v49  ;;  %v3633_v15 = vsel %vm3486_vm15, %v3594_v29, %v3294_v20  ;;  %v3374_v19 = vpop.permute.xlu0 %3373  ;;  %v4885_v49 = vld [vmem:[#allocation2 + $0x7c] sm:$0xf]  ;;  %v4400_v9 = vcombine.low %v7581_v12, %v6643_v57 }
 0x1bd   : > { %v4463_v3 = vcombine.low %v1849_v11, %v1859_v17  ;;  %v1878_v28 = vrot.slane %v1877_v16, 4  ;;  %4758 = vmatmul.mubr.msk.bf16.gmra.mrb[36].mxu1 %vm3437_vm14, %v4528_v7  ;;  %v3504_v36 = vsel %vm3486_vm15, %v3464_v2, %v2974_v43  ;;  %v3673_v45 = vsel %vm3519_vm1, %v3633_v15, %v3374_v19 }
 0x1be   : > { %4761 = vmatprep.mubr.msk.bf16.mxu1 %vm3437_vm14, %v4529_v13  ;;  %v3545_v41 = vsel %vm3519_vm1, %v3504_v36, %v3070_v37  ;;  %3984 = vmatprep.mubr.bf16.mxu0 %v3673_v45  ;;  %v2896_v34 = vpop.permute.xlu1 %2895  ;;  %v4398_v13 = vcombine.low %v4882_v4, %v4883_v8  ;;  %v4399_v53 = vcombine.low %v4884_v39, %v4885_v49 }
 0x1bf   : > { %v1883_v61 = vsel %vm5032_vm10, %v1878_v28, %v1882_v14  ;;  %3985 = vmatmul.mubr.bf16.gmra.mrb[32].mxu0 %v3545_v41 }
 0x1c0   : > { %v4464_v35 = vcombine.low %v1873_v48, %v1883_v61  ;;  %v3200_v54 = vpop.permute.xlu0 %3199  ;;  %v3467_v22 = vsel %vm3437_vm14, %v4398_v13, %v2896_v34 }
 0x1c1   : > { %v3597_v63 = vsel %vm3437_vm14, %v4462_v60, %v3200_v54 }
 0x1c2   : > { %v2976_v47 = vpop.permute.xlu1 %2975 }
 0x1c3   : > { %v3506_v24 = vsel %vm3486_vm15, %v3467_v22, %v2976_v47 }
 0x1c5   : > { %4762 = vmatmul.mubr.msk.bf16.gmra.mrb[40].mxu1 %vm3437_vm14, %v4530_v40 }
 0x1c6   : > { %4765 = vmatprep.mubr.msk.bf16.mxu1 %vm3437_vm14, %v4531_v50  ;;  %v3072_v27 = vpop.permute.xlu1 %3071 }
 0x1c7   : > { %v3548_v50 = vsel %vm3519_vm1, %v3506_v24, %v3072_v27 }
 0x1c9   : > { %v3296_v10 = vpop.permute.xlu0 %3295 }
 0x1ca   : > { %v3635_v51 = vsel %vm3486_vm15, %v3597_v63, %v3296_v10 }
 0x1cd   : > { %4766 = vmatmul.mubr.msk.bf16.gmra.mrb[44].mxu1 %vm3437_vm14, %v4532_v59 }
 0x1d0   : > { %v2898_v6 = vpop.permute.xlu1 %2897 }
 0x1d1   : > { %v3470_v18 = vsel %vm3437_vm14, %v4399_v53, %v2898_v6 }
 0x1d2   : > { %v3376_v40 = vpop.permute.xlu0 %3375 }
 0x1d3   : > { %v3676_v44 = vsel %vm3519_vm1, %v3635_v51, %v3376_v40 }
 0x1d4   : > { %3992 = vmatprep.mubr.bf16.mxu0 %v3676_v44 }
 0x1d5   : > { %3993 = vmatmul.mubr.bf16.gmra.mrb[36].mxu0 %v3548_v50 }
 0x1d6   : > { %v3202_v23 = vpop.permute.xlu0 %3201 }
 0x1d7   : > { %v3600_v26 = vsel %vm3437_vm14, %v4463_v3, %v3202_v23 }
 0x1d8   : > { %v2978_v62 = vpop.permute.xlu1 %2977 }
 0x1d9   : > { %v3508_v30 = vsel %vm3486_vm15, %v3470_v18, %v2978_v62 }
 0x1da   : > { %v3298_v59 = vpop.permute.xlu0 %3297 }
 0x1db   : > { %v3637_v25 = vsel %vm3486_vm15, %v3600_v26, %v3298_v59 }
 0x1dc   : > { %v3074_v55 = vpop.permute.xlu1 %3073 }
 0x1dd   : > { %v3551_v38 = vsel %vm3519_vm1, %v3508_v30, %v3074_v55 }
 0x1de   : > { %v3378_v32 = vpop.permute.xlu0 %3377 }
 0x1df   : > { %v3679_v46 = vsel %vm3519_vm1, %v3637_v25, %v3378_v32 }
 0x1e0   : > { %4000 = vmatprep.mubr.bf16.mxu0 %v3679_v46 }
 0x1e1   : > { %4001 = vmatmul.mubr.bf16.gmra.mrb[40].mxu0 %v3551_v38 }
 0x1e2   : > { %v3204_v1 = vpop.permute.xlu0 %3203 }
 0x1e3   : > { %v3603_v52 = vsel %vm3437_vm14, %v4464_v35, %v3204_v1 }
 0x1e6   : > { %v2900_v60 = vpop.permute.xlu1 %2899  ;;  %v3300_v0 = vpop.permute.xlu0 %3299 }
 0x1e7   : > { %v3473_v42 = vsel %vm3437_vm14, %v4400_v9, %v2900_v60  ;;  %v3639_v16 = vsel %vm3486_vm15, %v3603_v52, %v3300_v0 }
 0x1ea   : > { %v2980_v5 = vpop.permute.xlu1 %2979 }
 0x1eb   : > { %v3510_v43 = vsel %vm3486_vm15, %v3473_v42, %v2980_v5 }
 0x1ee   : > { %v3076_v11 = vpop.permute.xlu1 %3075 }
 0x1ef   : > { %v3554_v21 = vsel %vm3519_vm1, %v3510_v43, %v3076_v11 }
 0x1f0   : > { %v3380_v14 = vpop.permute.xlu0 %3379 }
 0x1f1   : > { %v3682_v56 = vsel %vm3519_vm1, %v3639_v16, %v3380_v14 }
 0x1f2   : > { %4008 = vmatprep.mubr.bf16.mxu0 %v3682_v56 }
 0x1f3   : > { %4009 = vmatmul.mubr.bf16.gmra.mrb[44].mxu0 %v3554_v21 }
 0x203   : > { %v4619_v17 = vpop.f32.mrb[0].mxu0 }
 0x204   : > { %v4620_v57 = vpop.f32.mrb[1].mxu0 }
 0x205   : > { %v4621_v3 = vadd.f32 %v4620_v57, %v4619_v17  ;;  %v4622_v48 = vpop.f32.mrb[2].mxu0 }
 0x206   : > { %v4623_v28 = vpop.f32.mrb[3].mxu0 }
 0x207   : > { %v4624_v31 = vadd.f32 %v4623_v28, %v4622_v48 }
 0x20a   : > { %v4691_v58 = vpop.f32.mrb[0].mxu1 }
 0x20b   : > { %v4692_v33 = vpop.f32.mrb[1].mxu1 }
 0x20c   : > { %v7193_v20 = vadd.f32 %v4692_v33, %v4691_v58  ;;  %v4694_v7 = vpop.f32.mrb[2].mxu1 }
 0x20d   : > { %v4695_v61 = vpop.f32.mrb[3].mxu1 }
 0x20e   : > { %v7195_v35 = vadd.f32 %v4695_v61, %v4694_v7  ;;  %v4625_v37 = vpop.f32.mrb[4].mxu0 }
 0x20f   : > { %v4626_v2 = vpop.f32.mrb[5].mxu0 }
 0x210   : > { %v4627_v29 = vadd.f32 %v4626_v2, %v4625_v37  ;;  %v4628_v36 = vpop.f32.mrb[6].mxu0 }
 0x211   : > { %v4629_v15 = vpop.f32.mrb[7].mxu0 }
 0x212   : > { %v4630_v19 = vadd.f32 %v4629_v15, %v4628_v36 }
 0x21c   : > { %v4697_v41 = vpop.f32.mrb[4].mxu1 }
 0x21d   : > { %v4698_v45 = vpop.f32.mrb[5].mxu1 }
 0x21e   : > { %v7197_v34 = vadd.f32 %v4698_v45, %v4697_v41  ;;  %v4700_v54 = vpop.f32.mrb[6].mxu1 }
 0x21f   : > { %v4701_v47 = vpop.f32.mrb[7].mxu1 }
 0x220   : > { %v7199_v4 = vadd.f32 %v4701_v47, %v4700_v54 }
 0x239   : > { %v4631_v8 = vpop.f32.mrb[8].mxu0 }
 0x23a   : > { %v4632_v13 = vpop.f32.mrb[9].mxu0 }
 0x23b   : > { %v4633_v10 = vadd.f32 %v4632_v13, %v4631_v8  ;;  %v4634_v27 = vpop.f32.mrb[10].mxu0 }
 0x23c   : > { %v4635_v22 = vpop.f32.mrb[11].mxu0 }
 0x23d   : > { %v4636_v63 = vadd.f32 %v4635_v22, %v4634_v27 }
 0x243   : > { %v4703_v24 = vpop.f32.mrb[8].mxu1 }
 0x244   : > { %v4704_v51 = vpop.f32.mrb[9].mxu1 }
 0x245   : > { %v7201_v40 = vadd.f32 %v4704_v51, %v4703_v24  ;;  %v4706_v50 = vpop.f32.mrb[10].mxu1 }
 0x246   : > { %v4707_v6 = vpop.f32.mrb[11].mxu1 }
 0x247   : > { %v7203_v44 = vadd.f32 %v4707_v6, %v4706_v50 }
 0x252   : > { %v4637_v23 = vpop.f32.mrb[12].mxu0 }
 0x253   : > { %v4638_v39 = vpop.f32.mrb[13].mxu0 }
 0x254   : > { %v4639_v49 = vadd.f32 %v4638_v39, %v4637_v23  ;;  %v4640_v53 = vpop.f32.mrb[14].mxu0 }
 0x255   : > { %v4641_v62 = vpop.f32.mrb[15].mxu0 }
 0x256   : > { %v4642_v59 = vadd.f32 %v4641_v62, %v4640_v53 }
 0x25a   : > { %v4709_v18 = vpop.f32.mrb[12].mxu1 }
 0x25b   : > { %v4710_v55 = vpop.f32.mrb[13].mxu1 }
 0x25c   : > { %v7205_v26 = vadd.f32 %v4710_v55, %v4709_v18  ;;  %v4712_v30 = vpop.f32.mrb[14].mxu1 }
 0x25d   : > { %v4713_v25 = vpop.f32.mrb[15].mxu1 }
 0x25e   : > { %v7207_v32 = vadd.f32 %v4713_v25, %v4712_v30 }
 0x261   : > { %v4643_v38 = vpop.f32.mrb[16].mxu0 }
 0x262   : > { %v4644_v46 = vpop.f32.mrb[17].mxu0  ;;  %v4739_v12 = vpop.f32.mrb[16].mxu1 }
 0x263   : > { %v4645_v1 = vadd.f32 %v4644_v46, %v4643_v38  ;;  %v4646_v60 = vpop.f32.mrb[18].mxu0  ;;  %v4092_v0 = vadd.f32 %v4739_v12, %v4627_v29  ;;  %v4083_v5 = vpop.f32.mrb[17].mxu1 }
 0x264   : > { %v4647_v9 = vpop.f32.mrb[19].mxu0  ;;  %v4084_v11 = vadd.f32 %v4621_v3, %v4083_v5  ;;  %v4740_v52 = vpop.f32.mrb[18].mxu1 }
 0x265   : > { %v4648_v42 = vadd.f32 %v4647_v9, %v4646_v60  ;;  %4213 = vst.msk [vmem:[%s7214_s26 + $0x10] sm:$0xff] %vm4210_vm0, %v4092_v0  ;;  %v4095_v43 = vadd.f32 %v4740_v52, %v4630_v19  ;;  %v4086_v16 = vpop.f32.mrb[19].mxu1 }
 0x266   : > { %4211 = vst.msk [vmem:[%s7214_s26] sm:$0xff] %vm4210_vm0, %v4084_v11  ;;  %v4087_v14 = vadd.f32 %v4624_v31, %v4086_v16 }
 0x267   : > { %4214 = vst.msk [vmem:[%s7214_s26 + $0x18] sm:$0xff] %vm4210_vm0, %v4095_v43 }
 0x268   : > { %4212 = vst.msk [vmem:[%s7214_s26 + $0x8] sm:$0xff] %vm4210_vm0, %v4087_v14 }
 0x269   : > { %v4649_v21 = vpop.f32.mrb[20].mxu0 }
 0x26a   : > { %v4650_v56 = vpop.f32.mrb[21].mxu0  ;;  %v4743_v3 = vpop.f32.mrb[20].mxu1 }
 0x26b   : > { %v4651_v17 = vadd.f32 %v4650_v56, %v4649_v21  ;;  %v4652_v57 = vpop.f32.mrb[22].mxu0  ;;  %v4108_v28 = vadd.f32 %v4743_v3, %v4639_v49  ;;  %v4099_v58 = vpop.f32.mrb[21].mxu1 }
 0x26c   : > { %v4653_v48 = vpop.f32.mrb[23].mxu0  ;;  %v4100_v7 = vadd.f32 %v4633_v10, %v4099_v58  ;;  %v4744_v61 = vpop.f32.mrb[22].mxu1 }
 0x26d   : > { %v4654_v33 = vadd.f32 %v4653_v48, %v4652_v57  ;;  %4217 = vst.msk [vmem:[%s7214_s26 + $0x30] sm:$0xff] %vm4210_vm0, %v4108_v28  ;;  %v4111_v31 = vadd.f32 %v4744_v61, %v4642_v59  ;;  %v4102_v37 = vpop.f32.mrb[23].mxu1 }
 0x26e   : > { %4215 = vst.msk [vmem:[%s7214_s26 + $0x20] sm:$0xff] %vm4210_vm0, %v4100_v7  ;;  %v4103_v2 = vadd.f32 %v4636_v63, %v4102_v37 }
 0x26f   : > { %4218 = vst.msk [vmem:[%s7214_s26 + $0x38] sm:$0xff] %vm4210_vm0, %v4111_v31 }
 0x270   : > { %4216 = vst.msk [vmem:[%s7214_s26 + $0x28] sm:$0xff] %vm4210_vm0, %v4103_v2 }
 0x272   : > { %v4747_v41 = vpop.f32.mrb[24].mxu1 }
 0x273   : > { %v4124_v54 = vadd.f32 %v4747_v41, %v4651_v17  ;;  %v4115_v47 = vpop.f32.mrb[25].mxu1 }
 0x274   : > { %v4655_v29 = vpop.f32.mrb[24].mxu0  ;;  %v4116_v13 = vadd.f32 %v4645_v1, %v4115_v47  ;;  %v4748_v10 = vpop.f32.mrb[26].mxu1 }
 0x275   : > { %v4656_v36 = vpop.f32.mrb[25].mxu0  ;;  %4221 = vst.msk [vmem:[%s7214_s26 + $0x50] sm:$0xff] %vm4210_vm0, %v4124_v54  ;;  %v4127_v27 = vadd.f32 %v4748_v10, %v4654_v33  ;;  %v4118_v22 = vpop.f32.mrb[27].mxu1 }
 0x276   : > { %v4657_v15 = vadd.f32 %v4656_v36, %v4655_v29  ;;  %v4658_v19 = vpop.f32.mrb[26].mxu0  ;;  %4219 = vst.msk [vmem:[%s7214_s26 + $0x40] sm:$0xff] %vm4210_vm0, %v4116_v13  ;;  %v4119_v63 = vadd.f32 %v4648_v42, %v4118_v22 }
 0x277   : > { %v4659_v45 = vpop.f32.mrb[27].mxu0  ;;  %4222 = vst.msk [vmem:[%s7214_s26 + $0x58] sm:$0xff] %vm4210_vm0, %v4127_v27 }
 0x278   : > { %v4660_v8 = vadd.f32 %v4659_v45, %v4658_v19  ;;  %4220 = vst.msk [vmem:[%s7214_s26 + $0x48] sm:$0xff] %vm4210_vm0, %v4119_v63 }
 0x27a   : > { %v4751_v23 = vpop.f32.mrb[28].mxu1 }
 0x27b   : > { %v4131_v49 = vpop.f32.mrb[29].mxu1 }
 0x27c   : > { %v4132_v59 = vadd.f32 %v4657_v15, %v4131_v49  ;;  %v4752_v18 = vpop.f32.mrb[30].mxu1 }
 0x27d   : > { %v4134_v55 = vpop.f32.mrb[31].mxu1 }
 0x27e   : > { %4223 = vst.msk [vmem:[%s7214_s26 + $0x60] sm:$0xff] %vm4210_vm0, %v4132_v59  ;;  %v4135_v25 = vadd.f32 %v4660_v8, %v4134_v55 }
 0x27f   : > { %v4661_v24 = vpop.f32.mrb[28].mxu0 }
 0x280   : > { %v4662_v51 = vpop.f32.mrb[29].mxu0  ;;  %4224 = vst.msk [vmem:[%s7214_s26 + $0x68] sm:$0xff] %vm4210_vm0, %v4135_v25 }
 0x281   : > { %v4663_v50 = vadd.f32 %v4662_v51, %v4661_v24  ;;  %v4664_v6 = vpop.f32.mrb[30].mxu0 }
 0x282   : > { %v4665_v39 = vpop.f32.mrb[31].mxu0  ;;  %v4755_v38 = vpop.f32.mrb[32].mxu1 }
 0x283   : > { %v4140_v53 = vadd.f32 %v4751_v23, %v4663_v50  ;;  %v4666_v62 = vadd.f32 %v4665_v39, %v4664_v6  ;;  %v4147_v46 = vpop.f32.mrb[33].mxu1 }
 0x284   : > { %v4756_v1 = vpop.f32.mrb[34].mxu1 }
 0x285   : > { %4225 = vst.msk [vmem:[%s7214_s26 + $0x70] sm:$0xff] %vm4210_vm0, %v4140_v53  ;;  %v4143_v30 = vadd.f32 %v4752_v18, %v4666_v62  ;;  %v4150_v60 = vpop.f32.mrb[35].mxu1 }
 0x287   : > { %4226 = vst.msk [vmem:[%s7214_s26 + $0x78] sm:$0xff] %vm4210_vm0, %v4143_v30 }
 0x290   : > { %v7248_v12 = vpop.f32.mrb[36].mxu1 }
 0x291   : > { %v4163_v9 = vpop.f32.mrb[37].mxu1 }
 0x292   : > { %v7250_v0 = vpop.f32.mrb[38].mxu1  ;;  %v4667_v42 = vpop.f32.mrb[32].mxu0 }
 0x293   : > { %v4166_v5 = vpop.f32.mrb[39].mxu1  ;;  %v4668_v11 = vpop.f32.mrb[33].mxu0 }
 0x294   : > { %v4669_v52 = vadd.f32 %v4668_v11, %v4667_v42  ;;  %v4670_v43 = vpop.f32.mrb[34].mxu0 }
 0x295   : > { %v4671_v16 = vpop.f32.mrb[35].mxu0 }
 0x296   : > { %v4148_v21 = vadd.f32 %v4669_v52, %v4147_v46  ;;  %v4672_v56 = vadd.f32 %v4671_v16, %v4670_v43 }
 0x298   : > { %v4763_v14 = vpop.f32.mrb[40].mxu1  ;;  %4227 = vst.msk [vmem:[%s7214_s26 + $0x80] sm:$0xff] %vm4210_vm0, %v4148_v21  ;;  %v4151_v28 = vadd.f32 %v4672_v56, %v4150_v60 }
 0x299   : > { %v4188_v17 = vadd.f32 %v4763_v14, %v7197_v34  ;;  %v4179_v57 = vpop.f32.mrb[41].mxu1 }
 0x29a   : > { %v4180_v3 = vadd.f32 %v7193_v20, %v4179_v57  ;;  %v4764_v48 = vpop.f32.mrb[42].mxu1  ;;  %4228 = vst.msk [vmem:[%s7214_s26 + $0x88] sm:$0xff] %vm4210_vm0, %v4151_v28 }
 0x29b   : > { %4237 = vst.msk [vmem:[%s7214_s26 + $0xd0] sm:$0xff] %vm4210_vm0, %v4188_v17  ;;  %v4191_v58 = vadd.f32 %v4764_v48, %v7199_v4  ;;  %v4182_v33 = vpop.f32.mrb[43].mxu1 }
 0x29c   : > { %4235 = vst.msk [vmem:[%s7214_s26 + $0xc0] sm:$0xff] %vm4210_vm0, %v4180_v3  ;;  %v4183_v34 = vadd.f32 %v7195_v35, %v4182_v33 }
 0x29d   : > { %4238 = vst.msk [vmem:[%s7214_s26 + $0xd8] sm:$0xff] %vm4210_vm0, %v4191_v58 }
 0x29e   : > { %4236 = vst.msk [vmem:[%s7214_s26 + $0xc8] sm:$0xff] %vm4210_vm0, %v4183_v34 }
 0x2a0   : > { %v4767_v20 = vpop.f32.mrb[44].mxu1 }
 0x2a1   : > { %v4204_v7 = vadd.f32 %v4767_v20, %v7205_v26  ;;  %v4195_v61 = vpop.f32.mrb[45].mxu1 }
 0x2a2   : > { %v4196_v31 = vadd.f32 %v7201_v40, %v4195_v61  ;;  %v4768_v4 = vpop.f32.mrb[46].mxu1 }
 0x2a3   : > { %4241 = vst.msk [vmem:[%s7214_s26 + $0xf0] sm:$0xff] %vm4210_vm0, %v4204_v7  ;;  %v4207_v37 = vadd.f32 %v4768_v4, %v7207_v32  ;;  %v4198_v35 = vpop.f32.mrb[47].mxu1 }
 0x2a4   : > { %4239 = vst.msk [vmem:[%s7214_s26 + $0xe0] sm:$0xff] %vm4210_vm0, %v4196_v31  ;;  %v4199_v2 = vadd.f32 %v7203_v44, %v4198_v35 }
 0x2a5   : > { %4242 = vst.msk [vmem:[%s7214_s26 + $0xf8] sm:$0xff] %vm4210_vm0, %v4207_v37 }
 0x2a6   : > { %4240 = vst.msk [vmem:[%s7214_s26 + $0xe8] sm:$0xff] %vm4210_vm0, %v4199_v2 }
 0x2a8   : > { %v4673_v26 = vpop.f32.mrb[36].mxu0 }
 0x2a9   : > { %v4674_v29 = vpop.f32.mrb[37].mxu0 }
 0x2aa   : > { %v4675_v40 = vadd.f32 %v4674_v29, %v4673_v26  ;;  %v4676_v36 = vpop.f32.mrb[38].mxu0 }
 0x2ab   : > { %v4677_v15 = vpop.f32.mrb[39].mxu0 }
 0x2ac   : > { %v4156_v19 = vadd.f32 %v4755_v38, %v4675_v40  ;;  %v4678_v41 = vadd.f32 %v4677_v15, %v4676_v36 }
 0x2ae   : > { %4229 = vst.msk [vmem:[%s7214_s26 + $0x90] sm:$0xff] %vm4210_vm0, %v4156_v19  ;;  %v4159_v32 = vadd.f32 %v4756_v1, %v4678_v41 }
 0x2b0   : > { %4230 = vst.msk [vmem:[%s7214_s26 + $0x98] sm:$0xff] %vm4210_vm0, %v4159_v32 }
 0x2b4   : > { %v4679_v45 = vpop.f32.mrb[40].mxu0 }
 0x2b5   : > { %v4680_v44 = vpop.f32.mrb[41].mxu0 }
 0x2b6   : > { %v4681_v54 = vadd.f32 %v4680_v44, %v4679_v45  ;;  %v4682_v47 = vpop.f32.mrb[42].mxu0 }
 0x2b7   : > { %v4683_v8 = vpop.f32.mrb[43].mxu0 }
 0x2b8   : > { %v4164_v13 = vadd.f32 %v4681_v54, %v4163_v9  ;;  %v4684_v10 = vadd.f32 %v4683_v8, %v4682_v47 }
 0x2ba   : > { %4231 = vst.msk [vmem:[%s7214_s26 + $0xa0] sm:$0xff] %vm4210_vm0, %v4164_v13  ;;  %v4167_v27 = vadd.f32 %v4684_v10, %v4166_v5 }
 0x2bc   : > { %4232 = vst.msk [vmem:[%s7214_s26 + $0xa8] sm:$0xff] %vm4210_vm0, %v4167_v27 }
 0x2c6   : > { %v4685_v22 = vpop.f32.mrb[44].mxu0 }
 0x2c7   : > { %v4686_v63 = vpop.f32.mrb[45].mxu0 }
 0x2c8   : > { %v4687_v24 = vadd.f32 %v4686_v63, %v4685_v22  ;;  %v4688_v51 = vpop.f32.mrb[46].mxu0 }
 0x2c9   : > { %v4689_v50 = vpop.f32.mrb[47].mxu0 }
 0x2ca   : > { %v4172_v6 = vadd.f32 %v7248_v12, %v4687_v24  ;;  %v4690_v23 = vadd.f32 %v4689_v50, %v4688_v51 }
 0x2cc   : > { %4233 = vst.msk [vmem:[%s7214_s26 + $0xb0] sm:$0xff] %vm4210_vm0, %v4172_v6  ;;  %v4175_v39 = vadd.f32 %v7250_v0, %v4690_v23 }
 0x2ce   : > { %4234 = vst.msk [vmem:[%s7214_s26 + $0xb8] sm:$0xff] %vm4210_vm0, %v4175_v39 }
 0x2cf PF: > { %s14_s15 = sadd.s32 1, %s4892_s15  }
 0x2d0   : > { %p11_p4 = scmp.ge.s32.totalorder %s14_s15, 4  }
 0x2d2   :  { %13 = sbr.rel (!%p11_p4) target bundleno = 1 (0x1), region = 68 }

</bundles_post_ra>
